<compile_context>
chip_gen: v7x
topology: tpu7x:2x2x1
jax: 0.10.0
libtpu: 0.0.40
codegen_flags: <defaults>
</compile_context>

<pallas_src>
import functools

import jax
import jax.numpy as jnp
import numpy as np
from jax.experimental import pallas as pl
from jax.experimental.pallas import tpu as pltpu


# ----------------------------- helpers ------------------------------------ #
def _pad_amounts(kernel_size, stride):
    # Matches ConvBNReLU._get_padding (same pad low/high used for H and W).
    p = max(kernel_size - stride, 0)
    return p // 2, p - p // 2


def _swish(x):
    return x * jax.nn.sigmoid(x)


def _out_spatial(size, k, stride):
    p_lo, p_hi = _pad_amounts(k, stride)
    return (size + p_lo + p_hi - k) // stride + 1


_W_HALO = 8   # 8-aligned halo on each side of W in the padded scratch


# ----------------------------- Pallas kernel ------------------------------ #
def _mbconv_kernel(x_ref, w_exp_ref, bn1s_ref, bn1b_ref,
                   w_dw_ref, bn2s_ref, bn2b_ref,
                   w_se1_ref, b_se1_ref, w_se2_ref, b_se2_ref,
                   w_proj_ref, bn3s_ref, bn3b_ref,
                   out_ref, pad_ref, *,
                   B, H, W, Hout, Wout, Cin, Chid, Cout, K, stride,
                   has_expand, use_residual):
    p_lo, p_hi = _pad_amounts(K, stride)
    Hp = H + p_lo + p_hi
    Wpad = W + 2 * _W_HALO
    MO = B * Hout * Wout
    MOi = Hout * Wout

    # ---- 1) expansion 1x1 conv + BN + Swish (bf16 MXU matmul, f32 accum) ----
    x2d = x_ref[...]                                      # (B*H*W, Cin) bf16
    if has_expand:
        h = jnp.dot(x2d, w_exp_ref[...],
                    preferred_element_type=jnp.float32)   # (B*H*W, Chid) f32
        h = h * bn1s_ref[...] + bn1b_ref[...]
        h = _swish(h)
    else:
        h = x2d.astype(jnp.float32)
    # Split leading/sublane dims only (channel lane dim untouched) -> free.
    h4 = h.reshape(B, H, W, Chid)

    # ---- 2) depthwise KxK conv via a persistent padded VMEM scratch ----
    # Zero just the halo bands (O(halo), not O(H*W*C)); the interior is fully
    # rewritten every step, so nothing is carried across grid iterations
    # (safe with "parallel" dimension semantics / megacore split).  Do NOT
    # move this behind pl.when(program_id==0): with multiple cores the second
    # core never runs step 0 and would read stale VMEM.
    if p_lo > 0:
        pad_ref[:, 0:p_lo, :, :] = jnp.zeros((B, p_lo, Wpad, Chid), jnp.float32)
    if p_hi > 0:
        pad_ref[:, p_lo + H:p_lo + H + p_hi, :, :] = jnp.zeros(
            (B, p_hi, Wpad, Chid), jnp.float32)
    pad_ref[:, :, 0:_W_HALO, :] = jnp.zeros((B, Hp, _W_HALO, Chid), jnp.float32)
    pad_ref[:, :, _W_HALO + W:, :] = jnp.zeros((B, Hp, _W_HALO, Chid), jnp.float32)
    # Interior write at an 8-aligned W (sublane) offset.
    pad_ref[:, p_lo:p_lo + H, _W_HALO:_W_HALO + W, :] = h4

    w0 = _W_HALO - p_lo                                   # left edge of padded image
    w_dw = w_dw_ref[...]                                  # (K, K, Chid), loaded once
    acc = jnp.zeros((B, Hout, Wout, Chid), jnp.float32)
    # Static K*K loop (K=3/5 only).  kj outer: only K unaligned sublane-offset
    # window reads per step; the ki slices are free leading-dim slices.
    if stride == 1:
        for kj in range(K):
            w_slice = pad_ref[:, :, w0 + kj:w0 + kj + Wout, :]   # (B, Hp, Wout, Chid)
            for ki in range(K):
                win = w_slice[:, ki:ki + Hout, :, :]
                acc = acc + win * w_dw[ki, kj, :]
    else:
        hp = pad_ref[:, :, w0:w0 + W + p_lo + p_hi, :]    # (B, Hp, Wp, Chid)
        for ki in range(K):
            for kj in range(K):
                win = jax.lax.slice(
                    hp, (0, ki, kj, 0),
                    (B, ki + (Hout - 1) * stride + 1,
                     kj + (Wout - 1) * stride + 1, Chid),
                    (1, stride, stride, 1))
                acc = acc + win * w_dw[ki, kj, :]

    # Back to 2D rows (layout no-op: lane dim kept, Wout % 8 == 0 here).
    d2 = acc.reshape(MO, Chid)
    d2 = d2 * bn2s_ref[...] + bn2b_ref[...]
    d2 = _swish(d2)

    # ---- 3) squeeze-excitation, batched over the B images in the block ----
    # Global average pool = cross-sublane sum on the XLU (O(B*MOi*Chid));
    # the per-image gate is applied with a broadcast multiply.
    d3 = d2.reshape(B, MOi, Chid)                          # leading-dim split, free
    pooled = jnp.sum(d3, axis=1) * (1.0 / MOi)             # (B, Chid)
    r = _swish(jnp.dot(pooled, w_se1_ref[...],
                       preferred_element_type=jnp.float32) + b_se1_ref[...])
    g = jax.nn.sigmoid(jnp.dot(r, w_se2_ref[...],
                               preferred_element_type=jnp.float32) + b_se2_ref[...])
    d2 = (d3 * g[:, None, :]).reshape(MO, Chid)

    # ---- 4) projection 1x1 conv + BN (bf16 MXU matmul, f32 accum) ----
    y = jnp.dot(d2.astype(jnp.bfloat16), w_proj_ref[...],
                preferred_element_type=jnp.float32)        # (MO, Cout)
    y = y * bn3s_ref[...] + bn3b_ref[...]

    # ---- 5) residual (eval mode: drop_connect == identity) ----
    if use_residual:
        y = y + x2d.astype(jnp.float32)

    out_ref[...] = y.astype(out_ref.dtype)


# ----------------------------- VMEM sizing --------------------------------- #
def _round_up(x, m):
    return ((x + m - 1) // m) * m


def _padded_bytes(shape, itemsize, sublane=8):
    """Bytes of a VMEM tile with the last two dims padded to (sublane, 128)."""
    s = list(shape)
    if len(s) >= 1:
        s[-1] = _round_up(s[-1], 128)
    if len(s) >= 2:
        s[-2] = _round_up(s[-2], sublane)
    n = 1
    for d in s:
        n *= d
    return n * itemsize


def _pick_batch_block(N, H, W, Cin, Chid, Cout, K, stride, Cred,
                      budget_bytes=24 << 20):
    """Largest divisor of N (capped at N//2 so the grid has >= 2 steps, feeding
    both v7x TensorCores) whose lane-padded per-step VMEM footprint fits."""
    p_lo, p_hi = _pad_amounts(K, stride)
    Hp = H + p_lo + p_hi
    Wpad = W + 2 * _W_HALO
    Hout, Wout = _out_spatial(H, K, stride), _out_spatial(W, K, stride)

    def per_image():
        b = 0
        # pipelined (double-buffered) bf16 input block
        b += 2 * _padded_bytes((H * W, Cin), 2, sublane=16)
        # pipelined (double-buffered) f32 output block
        b += 2 * _padded_bytes((Hout * Wout, Cout), 4)
        # single-buffered padded f32 scratch
        b += _padded_bytes((Hp, Wpad, Chid), 4)
        # live intermediates (h, acc window, d2/d3) -- compiler-held VMEM
        b += _padded_bytes((H * W, Chid), 4)
        b += _padded_bytes((Hout, Wout, Chid), 4)
        b += 2 * _padded_bytes((Hout * Wout, Chid), 4)
        return b

    weight_bytes = 2 * (
        _padded_bytes((Cin, Chid), 2, sublane=16) +
        _padded_bytes((K, K, Chid), 4) +
        _padded_bytes((Chid, Cout), 2, sublane=16) +
        _padded_bytes((Chid, Cred), 4) + _padded_bytes((1, Cred), 4) +
        _padded_bytes((Cred, Chid), 4) + _padded_bytes((1, Chid), 4) +
        6 * _padded_bytes((1, max(Chid, Cout)), 4))

    pi = per_image()
    max_b = N // 2 if N >= 2 else N          # >= 2 grid steps (v7x megacore)
    for cand in range(max_b, 0, -1):
        if N % cand == 0 and cand * pi + weight_bytes <= budget_bytes:
            return cand
    return 1


# ----------------------------- wrapper ------------------------------------ #
def mbconv_forward(x_nchw, params, cfg):
    """x_nchw: (N, Cin, H, W) float32.  Returns (N, Cout, Hout, Wout)."""
    N, Cin, H, W = x_nchw.shape
    K, stride = cfg["kernel_size"], cfg["stride"]
    Chid, Cout = cfg["hidden_dim"], cfg["out_planes"]
    Cred = params["w_se1"].shape[1]
    has_expand, use_residual = cfg["has_expand"], cfg["use_residual"]
    Hout, Wout = _out_spatial(H, K, stride), _out_spatial(W, K, stride)
    p_lo, p_hi = _pad_amounts(K, stride)
    Hp = H + p_lo + p_hi
    Wpad = W + 2 * _W_HALO

    B = _pick_batch_block(N, H, W, Cin, Chid, Cout, K, stride, Cred)
    grid = (N // B,)

    # Layout plumbing (free, wrapper-side): NCHW -> NHWC -> (N*H*W, Cin) rows,
    # cast to bf16 so the per-step input DMA is halved (expand matmul consumes
    # bf16 anyway; residual re-ups to f32 in-kernel).
    x2d = jnp.transpose(x_nchw, (0, 2, 3, 1)).reshape(N * H * W, Cin)
    x2d = x2d.astype(jnp.bfloat16)

    kernel = functools.partial(
        _mbconv_kernel,
        B=B, H=H, W=W, Hout=Hout, Wout=Wout, Cin=Cin, Chid=Chid, Cout=Cout,
        K=K, stride=stride, has_expand=has_expand, use_residual=use_residual)

    # bf16 operands only for the two big MXU matmuls; everything else f32.
    weight_args = (
        params["w_exp"].astype(jnp.bfloat16),
        params["bn1_scale"], params["bn1_shift"],
        params["w_dw"], params["bn2_scale"], params["bn2_shift"],
        params["w_se1"], params["b_se1"], params["w_se2"], params["b_se2"],
        params["w_proj"].astype(jnp.bfloat16),
        params["bn3_scale"], params["bn3_shift"],
    )

    def full_spec(arr):
        nd = arr.ndim
        return pl.BlockSpec(arr.shape, lambda n, _nd=nd: (0,) * _nd)

    in_specs = [pl.BlockSpec((B * H * W, Cin), lambda n: (n, 0))]
    in_specs += [full_spec(a) for a in weight_args]

    # Cost hint so XLA can overlap the surrounding transpose/reshape.
    M_in, M_out = N * H * W, N * Hout * Wout
    flops = 2 * K * K * M_out * Chid + 2 * M_out * Chid * Cout \
        + 2 * N * Chid * Cred * 2
    if has_expand:
        flops += 2 * M_in * Cin * Chid
    transcendentals = (M_in * Chid if has_expand else 0) + 2 * M_out * Chid \
        + N * (Cred + Chid)
    weight_bytes = sum(int(np.prod(a.shape)) * a.dtype.itemsize
                       for a in weight_args)
    bytes_accessed = x2d.size * 2 + M_out * Cout * 4 + weight_bytes
    cost = pl.CostEstimate(flops=int(flops),
                           transcendentals=int(transcendentals),
                           bytes_accessed=int(bytes_accessed))

    out2d = pl.pallas_call(
        kernel,
        out_shape=jax.ShapeDtypeStruct((N * Hout * Wout, Cout), jnp.float32),
        grid=grid,
        in_specs=in_specs,
        out_specs=pl.BlockSpec((B * Hout * Wout, Cout), lambda n: (n, 0)),
        scratch_shapes=[pltpu.VMEM((B, Hp, Wpad, Chid), jnp.float32)],
        compiler_params=pltpu.CompilerParams(
            dimension_semantics=("parallel",),
            vmem_limit_bytes=48 << 20),
        cost_estimate=cost,
    )(x2d, *weight_args)

    return jnp.transpose(out2d.reshape(N, Hout, Wout, Cout), (0, 3, 1, 2))


# ----------------------------- params init -------------------------------- #
def init_params(key, Cin, Cout, Chid, Cred, K):
    eps = 1e-5
    ks = jax.random.split(key, 20)

    def bn(k, c):
        kg, kb, km, kv = jax.random.split(k, 4)
        gamma = jax.random.uniform(kg, (c,), jnp.float32, 0.5, 1.5)
        beta = 0.1 * jax.random.normal(kb, (c,), jnp.float32)
        mean = 0.1 * jax.random.normal(km, (c,), jnp.float32)
        var = jax.random.uniform(kv, (c,), jnp.float32, 0.5, 1.5)
        scale = gamma / jnp.sqrt(var + eps)
        shift = beta - mean * scale
        return scale.reshape(1, c), shift.reshape(1, c)

    bn1_scale, bn1_shift = bn(ks[0], Chid)
    bn2_scale, bn2_shift = bn(ks[1], Chid)
    bn3_scale, bn3_shift = bn(ks[2], Cout)

    return dict(
        w_exp=0.1 * jax.random.normal(ks[3], (Cin, Chid), jnp.float32),
        bn1_scale=bn1_scale, bn1_shift=bn1_shift,
        w_dw=0.1 * jax.random.normal(ks[4], (K, K, Chid), jnp.float32),
        bn2_scale=bn2_scale, bn2_shift=bn2_shift,
        w_se1=0.1 * jax.random.normal(ks[5], (Chid, Cred), jnp.float32),
        b_se1=0.1 * jax.random.normal(ks[6], (1, Cred), jnp.float32),
        w_se2=0.1 * jax.random.normal(ks[7], (Cred, Chid), jnp.float32),
        b_se2=0.1 * jax.random.normal(ks[8], (1, Chid), jnp.float32),
        w_proj=0.1 * jax.random.normal(ks[9], (Chid, Cout), jnp.float32),
        bn3_scale=bn3_scale, bn3_shift=bn3_shift,
    )


# ----------------------------- pure-JAX reference -------------------------- #
def reference_forward(x_nchw, p, cfg):
    K, stride = cfg["kernel_size"], cfg["stride"]
    Chid = cfg["hidden_dim"]
    prec = jax.lax.Precision.HIGHEST
    x = jnp.transpose(x_nchw, (0, 2, 3, 1)).astype(jnp.float32)   # NHWC

    h = x
    if cfg["has_expand"]:
        h = jnp.einsum("nhwc,cd->nhwd", x, p["w_exp"], precision=prec)
        h = h * p["bn1_scale"][0] + p["bn1_shift"][0]
        h = _swish(h)

    p_lo, p_hi = _pad_amounts(K, stride)
    wdw = p["w_dw"].reshape(K, K, 1, Chid)                         # HWIO, groups=Chid
    d = jax.lax.conv_general_dilated(
        h, wdw, window_strides=(stride, stride),
        padding=((p_lo, p_hi), (p_lo, p_hi)),
        dimension_numbers=("NHWC", "HWIO", "NHWC"),
        feature_group_count=Chid, precision=prec)
    d = d * p["bn2_scale"][0] + p["bn2_shift"][0]
    d = _swish(d)

    pooled = jnp.mean(d, axis=(1, 2))                              # (N, Chid)
    r = _swish(jnp.dot(pooled, p["w_se1"], precision=prec) + p["b_se1"])
    g = jax.nn.sigmoid(jnp.dot(r, p["w_se2"], precision=prec) + p["b_se2"])
    d = d * g[:, None, None, :]

    y = jnp.einsum("nhwc,cd->nhwd", d, p["w_proj"], precision=prec)
    y = y * p["bn3_scale"][0] + p["bn3_shift"][0]
    if cfg["use_residual"]:
        y = y + x
    return jnp.transpose(y, (0, 3, 1, 2))


# ----------------------------- main ---------------------------------------- #
if __name__ == "__main__":
    # Small MBConvBlock config: in=8, out=8, expand=2, k=3, stride=1, reduction=4.
    N, Cin, H, W = 2, 8, 16, 16
    out_planes = 8
    expand_ratio = 2
    kernel_size = 3
    stride = 1
    reduction_ratio = 4

    hidden_dim = Cin * expand_ratio
    reduced_dim = max(1, Cin // reduction_ratio)
    cfg = dict(
        kernel_size=kernel_size, stride=stride,
        hidden_dim=hidden_dim, out_planes=out_planes,
        has_expand=(Cin != hidden_dim),
        use_residual=(Cin == out_planes and stride == 1),
    )

    key = jax.random.PRNGKey(0)
    kx, kp = jax.random.split(key)
    x = jax.random.normal(kx, (N, Cin, H, W), jnp.float32)
    params = init_params(kp, Cin, out_planes, hidden_dim, reduced_dim, kernel_size)

    out = mbconv_forward(x, params, cfg)
    out = jax.block_until_ready(out)

    ref = reference_forward(x, params, cfg)
    # bf16 MXU operands / bf16 input rows in the kernel (f32 accumulation) ->
    # loosen tolerance vs. the f32 HIGHEST-precision reference.
    np.testing.assert_allclose(np.asarray(out), np.asarray(ref),
                               atol=3e-2, rtol=3e-2)
    print("KERNEL_OK")
</pallas_src>

<mosaic_0001>
module attributes {stable_mosaic.version = 11 : i64} {
  func.func @_mbconv_kernel(%arg0: i32, %arg1: memref<256x8xbf16, #tpu.memory_space<vmem>>, %arg2: memref<8x16xbf16, #tpu.memory_space<vmem>>, %arg3: memref<1x16xf32, #tpu.memory_space<vmem>>, %arg4: memref<1x16xf32, #tpu.memory_space<vmem>>, %arg5: memref<3x3x16xf32, #tpu.memory_space<vmem>>, %arg6: memref<1x16xf32, #tpu.memory_space<vmem>>, %arg7: memref<1x16xf32, #tpu.memory_space<vmem>>, %arg8: memref<16x2xf32, #tpu.memory_space<vmem>>, %arg9: memref<1x2xf32, #tpu.memory_space<vmem>>, %arg10: memref<2x16xf32, #tpu.memory_space<vmem>>, %arg11: memref<1x16xf32, #tpu.memory_space<vmem>>, %arg12: memref<16x8xbf16, #tpu.memory_space<vmem>>, %arg13: memref<1x8xf32, #tpu.memory_space<vmem>>, %arg14: memref<1x8xf32, #tpu.memory_space<vmem>>, %arg15: memref<256x8xf32, #tpu.memory_space<vmem>>, %arg16: memref<1x18x32x16xf32, #tpu.memory_space<vmem>>) attributes {dimension_semantics = [#tpu.dimension_semantics<parallel>], iteration_bounds = array<i64: 2>, scalar_prefetch = 0 : i64, scratch_operands = 1 : i64, tpu.core_type = #tpu.core_type<tc>, window_params = [{transform_indices = @transform_0, window_bounds = array<i64: 256, 8>}, {pipeline_mode = #tpu.pipeline_mode<synchronous>, transform_indices = @transform_1, window_bounds = array<i64: 8, 16>}, {pipeline_mode = #tpu.pipeline_mode<synchronous>, transform_indices = @transform_2, window_bounds = array<i64: 1, 16>}, {pipeline_mode = #tpu.pipeline_mode<synchronous>, transform_indices = @transform_3, window_bounds = array<i64: 1, 16>}, {pipeline_mode = #tpu.pipeline_mode<synchronous>, transform_indices = @transform_4, window_bounds = array<i64: 3, 3, 16>}, {pipeline_mode = #tpu.pipeline_mode<synchronous>, transform_indices = @transform_5, window_bounds = array<i64: 1, 16>}, {pipeline_mode = #tpu.pipeline_mode<synchronous>, transform_indices = @transform_6, window_bounds = array<i64: 1, 16>}, {pipeline_mode = #tpu.pipeline_mode<synchronous>, transform_indices = @transform_7, window_bounds = array<i64: 16, 2>}, {pipeline_mode = #tpu.pipeline_mode<synchronous>, transform_indices = @transform_8, window_bounds = array<i64: 1, 2>}, {pipeline_mode = #tpu.pipeline_mode<synchronous>, transform_indices = @transform_9, window_bounds = array<i64: 2, 16>}, {pipeline_mode = #tpu.pipeline_mode<synchronous>, transform_indices = @transform_10, window_bounds = array<i64: 1, 16>}, {pipeline_mode = #tpu.pipeline_mode<synchronous>, transform_indices = @transform_11, window_bounds = array<i64: 16, 8>}, {pipeline_mode = #tpu.pipeline_mode<synchronous>, transform_indices = @transform_12, window_bounds = array<i64: 1, 8>}, {pipeline_mode = #tpu.pipeline_mode<synchronous>, transform_indices = @transform_13, window_bounds = array<i64: 1, 8>}, {transform_indices = @transform_14, window_bounds = array<i64: 256, 8>}]} {
    %c0 = arith.constant 0 : index
    %c0_0 = arith.constant 0 : index
    %0 = vector.load %arg1[%c0, %c0_0] : memref<256x8xbf16, #tpu.memory_space<vmem>>, vector<256x8xbf16>
    %c0_1 = arith.constant 0 : index
    %c0_2 = arith.constant 0 : index
    %1 = vector.load %arg2[%c0_1, %c0_2] : memref<8x16xbf16, #tpu.memory_space<vmem>>, vector<8x16xbf16>
    %cst = arith.constant dense<0.000000e+00> : vector<256x16xf32>
    %2 = tpu.matmul %0, %1, %cst {dimension_numbers = #tpu.dot_dimension_numbers<[1], [0], [0], [1], [0, 0, 1, 1], [], []>} : vector<256x8xbf16>, vector<8x16xbf16>, vector<256x16xf32> -> vector<256x16xf32>
    %c0_3 = arith.constant 0 : index
    %c0_4 = arith.constant 0 : index
    %3 = vector.load %arg3[%c0_3, %c0_4] : memref<1x16xf32, #tpu.memory_space<vmem>>, vector<1x16xf32>
    %4 = vector.broadcast %3 : vector<1x16xf32> to vector<256x16xf32>
    %5 = arith.mulf %2, %4 : vector<256x16xf32>
    %c0_5 = arith.constant 0 : index
    %c0_6 = arith.constant 0 : index
    %6 = vector.load %arg4[%c0_5, %c0_6] : memref<1x16xf32, #tpu.memory_space<vmem>>, vector<1x16xf32>
    %7 = vector.broadcast %6 : vector<1x16xf32> to vector<256x16xf32>
    %8 = arith.addf %5, %7 : vector<256x16xf32>
    %9 = arith.negf %8 : vector<256x16xf32>
    %10 = math.exp %9 : vector<256x16xf32>
    %cst_7 = arith.constant 1.000000e+00 : f32
    %11 = vector.broadcast %cst_7 : f32 to vector<256x16xf32>
    %12 = arith.addf %11, %10 : vector<256x16xf32>
    %13 = arith.divf %11, %12 : vector<256x16xf32>
    %14 = arith.mulf %8, %13 : vector<256x16xf32>
    %15 = vector.shape_cast %14 : vector<256x16xf32> to vector<1x16x16x16xf32>
    %cst_8 = arith.constant 0.000000e+00 : f32
    %16 = vector.broadcast %cst_8 : f32 to vector<1x1x32x16xf32>
    %c0_9 = arith.constant 0 : index
    %c0_10 = arith.constant 0 : index
    %c0_11 = arith.constant 0 : index
    %c0_12 = arith.constant 0 : index
    %17 = vector.load %arg16[%c0_9, %c0_10, %c0_11, %c0_12] : memref<1x18x32x16xf32, #tpu.memory_space<vmem>>, vector<1x1x32x16xf32>
    tpu.vector_store %arg16[%c0_9, %c0_10, %c0_11, %c0_12], %16 {strides = array<i32>} : memref<1x18x32x16xf32, #tpu.memory_space<vmem>>, vector<1x1x32x16xf32>,
    %cst_13 = arith.constant 0.000000e+00 : f32
    %18 = vector.broadcast %cst_13 : f32 to vector<1x1x32x16xf32>
    %c0_14 = arith.constant 0 : index
    %c17 = arith.constant 17 : index
    %c0_15 = arith.constant 0 : index
    %c0_16 = arith.constant 0 : index
    %19 = vector.load %arg16[%c0_14, %c17, %c0_15, %c0_16] : memref<1x18x32x16xf32, #tpu.memory_space<vmem>>, vector<1x1x32x16xf32>
    tpu.vector_store %arg16[%c0_14, %c17, %c0_15, %c0_16], %18 {strides = array<i32>} : memref<1x18x32x16xf32, #tpu.memory_space<vmem>>, vector<1x1x32x16xf32>,
    %cst_17 = arith.constant 0.000000e+00 : f32
    %20 = vector.broadcast %cst_17 : f32 to vector<1x18x8x16xf32>
    %c0_18 = arith.constant 0 : index
    %c0_19 = arith.constant 0 : index
    %c0_20 = arith.constant 0 : index
    %c0_21 = arith.constant 0 : index
    %21 = vector.load %arg16[%c0_18, %c0_19, %c0_20, %c0_21] : memref<1x18x32x16xf32, #tpu.memory_space<vmem>>, vector<1x18x8x16xf32>
    tpu.vector_store %arg16[%c0_18, %c0_19, %c0_20, %c0_21], %20 {strides = array<i32>} : memref<1x18x32x16xf32, #tpu.memory_space<vmem>>, vector<1x18x8x16xf32>,
    %cst_22 = arith.constant 0.000000e+00 : f32
    %22 = vector.broadcast %cst_22 : f32 to vector<1x18x8x16xf32>
    %c0_23 = arith.constant 0 : index
    %c0_24 = arith.constant 0 : index
    %c24 = arith.constant 24 : index
    %c0_25 = arith.constant 0 : index
    %23 = vector.load %arg16[%c0_23, %c0_24, %c24, %c0_25] : memref<1x18x32x16xf32, #tpu.memory_space<vmem>>, vector<1x18x8x16xf32>
    tpu.vector_store %arg16[%c0_23, %c0_24, %c24, %c0_25], %22 {strides = array<i32>} : memref<1x18x32x16xf32, #tpu.memory_space<vmem>>, vector<1x18x8x16xf32>,
    %c0_26 = arith.constant 0 : index
    %c1 = arith.constant 1 : index
    %c8 = arith.constant 8 : index
    %c0_27 = arith.constant 0 : index
    %24 = vector.load %arg16[%c0_26, %c1, %c8, %c0_27] : memref<1x18x32x16xf32, #tpu.memory_space<vmem>>, vector<1x16x16x16xf32>
    tpu.vector_store %arg16[%c0_26, %c1, %c8, %c0_27], %15 {strides = array<i32>} : memref<1x18x32x16xf32, #tpu.memory_space<vmem>>, vector<1x16x16x16xf32>,
    %c0_28 = arith.constant 0 : index
    %c0_29 = arith.constant 0 : index
    %c0_30 = arith.constant 0 : index
    %25 = vector.load %arg5[%c0_28, %c0_29, %c0_30] : memref<3x3x16xf32, #tpu.memory_space<vmem>>, vector<3x3x16xf32>
    %cst_31 = arith.constant 0.000000e+00 : f32
    %26 = vector.broadcast %cst_31 : f32 to vector<1x16x16x16xf32>
    %c0_32 = arith.constant 0 : index
    %c0_33 = arith.constant 0 : index
    %c7 = arith.constant 7 : index
    %c0_34 = arith.constant 0 : index
    %27 = vector.load %arg16[%c0_32, %c0_33, %c7, %c0_34] : memref<1x18x32x16xf32, #tpu.memory_space<vmem>>, vector<1x18x16x16xf32>
    %28 = vector.extract_strided_slice %27 {offsets = [0, 0, 0, 0], sizes = [1, 16, 16, 16], strides = [1, 1, 1, 1]} : vector<1x18x16x16xf32> to vector<1x16x16x16xf32>
    %29 = vector.extract_strided_slice %25 {offsets = [0, 0, 0], sizes = [1, 1, 16], strides = [1, 1, 1]} : vector<3x3x16xf32> to vector<1x1x16xf32>
    %30 = vector.shape_cast %29 : vector<1x1x16xf32> to vector<16xf32>
    %31 = vector.shape_cast %30 : vector<16xf32> to vector<1x1x1x16xf32>
    %32 = vector.broadcast %31 : vector<1x1x1x16xf32> to vector<1x16x16x16xf32>
    %33 = arith.mulf %28, %32 : vector<1x16x16x16xf32>
    %34 = arith.addf %26, %33 : vector<1x16x16x16xf32>
    %35 = vector.extract_strided_slice %27 {offsets = [0, 1, 0, 0], sizes = [1, 16, 16, 16], strides = [1, 1, 1, 1]} : vector<1x18x16x16xf32> to vector<1x16x16x16xf32>
    %36 = vector.extract_strided_slice %25 {offsets = [1, 0, 0], sizes = [1, 1, 16], strides = [1, 1, 1]} : vector<3x3x16xf32> to vector<1x1x16xf32>
    %37 = vector.shape_cast %36 : vector<1x1x16xf32> to vector<16xf32>
    %38 = vector.shape_cast %37 : vector<16xf32> to vector<1x1x1x16xf32>
    %39 = vector.broadcast %38 : vector<1x1x1x16xf32> to vector<1x16x16x16xf32>
    %40 = arith.mulf %35, %39 : vector<1x16x16x16xf32>
    %41 = arith.addf %34, %40 : vector<1x16x16x16xf32>
    %42 = vector.extract_strided_slice %27 {offsets = [0, 2, 0, 0], sizes = [1, 16, 16, 16], strides = [1, 1, 1, 1]} : vector<1x18x16x16xf32> to vector<1x16x16x16xf32>
    %43 = vector.extract_strided_slice %25 {offsets = [2, 0, 0], sizes = [1, 1, 16], strides = [1, 1, 1]} : vector<3x3x16xf32> to vector<1x1x16xf32>
    %44 = vector.shape_cast %43 : vector<1x1x16xf32> to vector<16xf32>
    %45 = vector.shape_cast %44 : vector<16xf32> to vector<1x1x1x16xf32>
    %46 = vector.broadcast %45 : vector<1x1x1x16xf32> to vector<1x16x16x16xf32>
    %47 = arith.mulf %42, %46 : vector<1x16x16x16xf32>
    %48 = arith.addf %41, %47 : vector<1x16x16x16xf32>
    %c0_35 = arith.constant 0 : index
    %c0_36 = arith.constant 0 : index
    %c8_37 = arith.constant 8 : index
    %c0_38 = arith.constant 0 : index
    %49 = vector.load %arg16[%c0_35, %c0_36, %c8_37, %c0_38] : memref<1x18x32x16xf32, #tpu.memory_space<vmem>>, vector<1x18x16x16xf32>
    %50 = vector.extract_strided_slice %49 {offsets = [0, 0, 0, 0], sizes = [1, 16, 16, 16], strides = [1, 1, 1, 1]} : vector<1x18x16x16xf32> to vector<1x16x16x16xf32>
    %51 = vector.extract_strided_slice %25 {offsets = [0, 1, 0], sizes = [1, 1, 16], strides = [1, 1, 1]} : vector<3x3x16xf32> to vector<1x1x16xf32>
    %52 = vector.shape_cast %51 : vector<1x1x16xf32> to vector<16xf32>
    %53 = vector.shape_cast %52 : vector<16xf32> to vector<1x1x1x16xf32>
    %54 = vector.broadcast %53 : vector<1x1x1x16xf32> to vector<1x16x16x16xf32>
    %55 = arith.mulf %50, %54 : vector<1x16x16x16xf32>
    %56 = arith.addf %48, %55 : vector<1x16x16x16xf32>
    %57 = vector.extract_strided_slice %49 {offsets = [0, 1, 0, 0], sizes = [1, 16, 16, 16], strides = [1, 1, 1, 1]} : vector<1x18x16x16xf32> to vector<1x16x16x16xf32>
    %58 = vector.extract_strided_slice %25 {offsets = [1, 1, 0], sizes = [1, 1, 16], strides = [1, 1, 1]} : vector<3x3x16xf32> to vector<1x1x16xf32>
    %59 = vector.shape_cast %58 : vector<1x1x16xf32> to vector<16xf32>
    %60 = vector.shape_cast %59 : vector<16xf32> to vector<1x1x1x16xf32>
    %61 = vector.broadcast %60 : vector<1x1x1x16xf32> to vector<1x16x16x16xf32>
    %62 = arith.mulf %57, %61 : vector<1x16x16x16xf32>
    %63 = arith.addf %56, %62 : vector<1x16x16x16xf32>
    %64 = vector.extract_strided_slice %49 {offsets = [0, 2, 0, 0], sizes = [1, 16, 16, 16], strides = [1, 1, 1, 1]} : vector<1x18x16x16xf32> to vector<1x16x16x16xf32>
    %65 = vector.extract_strided_slice %25 {offsets = [2, 1, 0], sizes = [1, 1, 16], strides = [1, 1, 1]} : vector<3x3x16xf32> to vector<1x1x16xf32>
    %66 = vector.shape_cast %65 : vector<1x1x16xf32> to vector<16xf32>
    %67 = vector.shape_cast %66 : vector<16xf32> to vector<1x1x1x16xf32>
    %68 = vector.broadcast %67 : vector<1x1x1x16xf32> to vector<1x16x16x16xf32>
    %69 = arith.mulf %64, %68 : vector<1x16x16x16xf32>
    %70 = arith.addf %63, %69 : vector<1x16x16x16xf32>
    %c0_39 = arith.constant 0 : index
    %c0_40 = arith.constant 0 : index
    %c9 = arith.constant 9 : index
    %c0_41 = arith.constant 0 : index
    %71 = vector.load %arg16[%c0_39, %c0_40, %c9, %c0_41] : memref<1x18x32x16xf32, #tpu.memory_space<vmem>>, vector<1x18x16x16xf32>
    %72 = vector.extract_strided_slice %71 {offsets = [0, 0, 0, 0], sizes = [1, 16, 16, 16], strides = [1, 1, 1, 1]} : vector<1x18x16x16xf32> to vector<1x16x16x16xf32>
    %73 = vector.extract_strided_slice %25 {offsets = [0, 2, 0], sizes = [1, 1, 16], strides = [1, 1, 1]} : vector<3x3x16xf32> to vector<1x1x16xf32>
    %74 = vector.shape_cast %73 : vector<1x1x16xf32> to vector<16xf32>
    %75 = vector.shape_cast %74 : vector<16xf32> to vector<1x1x1x16xf32>
    %76 = vector.broadcast %75 : vector<1x1x1x16xf32> to vector<1x16x16x16xf32>
    %77 = arith.mulf %72, %76 : vector<1x16x16x16xf32>
    %78 = arith.addf %70, %77 : vector<1x16x16x16xf32>
    %79 = vector.extract_strided_slice %71 {offsets = [0, 1, 0, 0], sizes = [1, 16, 16, 16], strides = [1, 1, 1, 1]} : vector<1x18x16x16xf32> to vector<1x16x16x16xf32>
    %80 = vector.extract_strided_slice %25 {offsets = [1, 2, 0], sizes = [1, 1, 16], strides = [1, 1, 1]} : vector<3x3x16xf32> to vector<1x1x16xf32>
    %81 = vector.shape_cast %80 : vector<1x1x16xf32> to vector<16xf32>
    %82 = vector.shape_cast %81 : vector<16xf32> to vector<1x1x1x16xf32>
    %83 = vector.broadcast %82 : vector<1x1x1x16xf32> to vector<1x16x16x16xf32>
    %84 = arith.mulf %79, %83 : vector<1x16x16x16xf32>
    %85 = arith.addf %78, %84 : vector<1x16x16x16xf32>
    %86 = vector.extract_strided_slice %71 {offsets = [0, 2, 0, 0], sizes = [1, 16, 16, 16], strides = [1, 1, 1, 1]} : vector<1x18x16x16xf32> to vector<1x16x16x16xf32>
    %87 = vector.extract_strided_slice %25 {offsets = [2, 2, 0], sizes = [1, 1, 16], strides = [1, 1, 1]} : vector<3x3x16xf32> to vector<1x1x16xf32>
    %88 = vector.shape_cast %87 : vector<1x1x16xf32> to vector<16xf32>
    %89 = vector.shape_cast %88 : vector<16xf32> to vector<1x1x1x16xf32>
    %90 = vector.broadcast %89 : vector<1x1x1x16xf32> to vector<1x16x16x16xf32>
    %91 = arith.mulf %86, %90 : vector<1x16x16x16xf32>
    %92 = arith.addf %85, %91 : vector<1x16x16x16xf32>
    %93 = vector.shape_cast %92 : vector<1x16x16x16xf32> to vector<256x16xf32>
    %c0_42 = arith.constant 0 : index
    %c0_43 = arith.constant 0 : index
    %94 = vector.load %arg6[%c0_42, %c0_43] : memref<1x16xf32, #tpu.memory_space<vmem>>, vector<1x16xf32>
    %95 = vector.broadcast %94 : vector<1x16xf32> to vector<256x16xf32>
    %96 = arith.mulf %93, %95 : vector<256x16xf32>
    %c0_44 = arith.constant 0 : index
    %c0_45 = arith.constant 0 : index
    %97 = vector.load %arg7[%c0_44, %c0_45] : memref<1x16xf32, #tpu.memory_space<vmem>>, vector<1x16xf32>
    %98 = vector.broadcast %97 : vector<1x16xf32> to vector<256x16xf32>
    %99 = arith.addf %96, %98 : vector<256x16xf32>
    %100 = arith.negf %99 : vector<256x16xf32>
    %101 = math.exp %100 : vector<256x16xf32>
    %cst_46 = arith.constant 1.000000e+00 : f32
    %102 = vector.broadcast %cst_46 : f32 to vector<256x16xf32>
    %103 = arith.addf %102, %101 : vector<256x16xf32>
    %104 = arith.divf %102, %103 : vector<256x16xf32>
    %105 = arith.mulf %99, %104 : vector<256x16xf32>
    %106 = vector.shape_cast %105 : vector<256x16xf32> to vector<1x256x16xf32>
    %cst_47 = arith.constant dense<0.000000e+00> : vector<1x16xf32>
    %107 = vector.multi_reduction <add>, %106, %cst_47 [1] : vector<1x256x16xf32> to vector<1x16xf32>
    %cst_48 = arith.constant 3.906250e-03 : f32
    %108 = vector.broadcast %cst_48 : f32 to vector<1x16xf32>
    %109 = arith.mulf %107, %108 : vector<1x16xf32>
    %c0_49 = arith.constant 0 : index
    %c0_50 = arith.constant 0 : index
    %110 = vector.load %arg8[%c0_49, %c0_50] : memref<16x2xf32, #tpu.memory_space<vmem>>, vector<16x2xf32>
    %cst_51 = arith.constant dense<0.000000e+00> : vector<1x2xf32>
    %111 = tpu.matmul %109, %110, %cst_51 {dimension_numbers = #tpu.dot_dimension_numbers<[1], [0], [0], [1], [0, 0, 1, 1], [], []>} : vector<1x16xf32>, vector<16x2xf32>, vector<1x2xf32> -> vector<1x2xf32>
    %c0_52 = arith.constant 0 : index
    %c0_53 = arith.constant 0 : index
    %112 = vector.load %arg9[%c0_52, %c0_53] : memref<1x2xf32, #tpu.memory_space<vmem>>, vector<1x2xf32>
    %113 = arith.addf %111, %112 : vector<1x2xf32>
    %114 = arith.negf %113 : vector<1x2xf32>
    %115 = math.exp %114 : vector<1x2xf32>
    %cst_54 = arith.constant 1.000000e+00 : f32
    %116 = vector.broadcast %cst_54 : f32 to vector<1x2xf32>
    %117 = arith.addf %116, %115 : vector<1x2xf32>
    %118 = arith.divf %116, %117 : vector<1x2xf32>
    %119 = arith.mulf %113, %118 : vector<1x2xf32>
    %c0_55 = arith.constant 0 : index
    %c0_56 = arith.constant 0 : index
    %120 = vector.load %arg10[%c0_55, %c0_56] : memref<2x16xf32, #tpu.memory_space<vmem>>, vector<2x16xf32>
    %cst_57 = arith.constant dense<0.000000e+00> : vector<1x16xf32>
    %121 = tpu.matmul %119, %120, %cst_57 {dimension_numbers = #tpu.dot_dimension_numbers<[1], [0], [0], [1], [0, 0, 1, 1], [], []>} : vector<1x2xf32>, vector<2x16xf32>, vector<1x16xf32> -> vector<1x16xf32>
    %c0_58 = arith.constant 0 : index
    %c0_59 = arith.constant 0 : index
    %122 = vector.load %arg11[%c0_58, %c0_59] : memref<1x16xf32, #tpu.memory_space<vmem>>, vector<1x16xf32>
    %123 = arith.addf %121, %122 : vector<1x16xf32>
    %124 = arith.negf %123 : vector<1x16xf32>
    %125 = math.exp %124 : vector<1x16xf32>
    %cst_60 = arith.constant 1.000000e+00 : f32
    %126 = vector.broadcast %cst_60 : f32 to vector<1x16xf32>
    %127 = arith.addf %126, %125 : vector<1x16xf32>
    %128 = arith.divf %126, %127 : vector<1x16xf32>
    %129 = vector.shape_cast %128 : vector<1x16xf32> to vector<1x1x16xf32>
    %130 = vector.broadcast %129 : vector<1x1x16xf32> to vector<1x256x16xf32>
    %131 = arith.mulf %106, %130 : vector<1x256x16xf32>
    %132 = vector.shape_cast %131 : vector<1x256x16xf32> to vector<256x16xf32>
    %133 = arith.truncf %132 : vector<256x16xf32> to vector<256x16xbf16>
    %c0_61 = arith.constant 0 : index
    %c0_62 = arith.constant 0 : index
    %134 = vector.load %arg12[%c0_61, %c0_62] : memref<16x8xbf16, #tpu.memory_space<vmem>>, vector<16x8xbf16>
    %cst_63 = arith.constant dense<0.000000e+00> : vector<256x8xf32>
    %135 = tpu.matmul %133, %134, %cst_63 {dimension_numbers = #tpu.dot_dimension_numbers<[1], [0], [0], [1], [0, 0, 1, 1], [], []>} : vector<256x16xbf16>, vector<16x8xbf16>, vector<256x8xf32> -> vector<256x8xf32>
    %c0_64 = arith.constant 0 : index
    %c0_65 = arith.constant 0 : index
    %136 = vector.load %arg13[%c0_64, %c0_65] : memref<1x8xf32, #tpu.memory_space<vmem>>, vector<1x8xf32>
    %137 = vector.broadcast %136 : vector<1x8xf32> to vector<256x8xf32>
    %138 = arith.mulf %135, %137 : vector<256x8xf32>
    %c0_66 = arith.constant 0 : index
    %c0_67 = arith.constant 0 : index
    %139 = vector.load %arg14[%c0_66, %c0_67] : memref<1x8xf32, #tpu.memory_space<vmem>>, vector<1x8xf32>
    %140 = vector.broadcast %139 : vector<1x8xf32> to vector<256x8xf32>
    %141 = arith.addf %138, %140 : vector<256x8xf32>
    %142 = arith.extf %0 : vector<256x8xbf16> to vector<256x8xf32>
    %143 = arith.addf %141, %142 : vector<256x8xf32>
    %c0_68 = arith.constant 0 : index
    %c0_69 = arith.constant 0 : index
    %144 = vector.load %arg15[%c0_68, %c0_69] : memref<256x8xf32, #tpu.memory_space<vmem>>, vector<256x8xf32>
    tpu.vector_store %arg15[%c0_68, %c0_69], %143 {strides = array<i32>} : memref<256x8xf32, #tpu.memory_space<vmem>>, vector<256x8xf32>,
    return
  }
  func.func @transform_0(%arg0: i32) -> (i32, i32) {
    %c0_i32 = arith.constant 0 : i32
    %c0_i32_0 = arith.constant 0 : i32
    return %arg0, %c0_i32 : i32, i32
  }
  func.func @transform_1(%arg0: i32) -> (i32, i32) {
    %c0_i32 = arith.constant 0 : i32
    %c0_i32_0 = arith.constant 0 : i32
    %c0_i32_1 = arith.constant 0 : i32
    return %c0_i32, %c0_i32_0 : i32, i32
  }
  func.func @transform_2(%arg0: i32) -> (i32, i32) {
    %c0_i32 = arith.constant 0 : i32
    %c0_i32_0 = arith.constant 0 : i32
    %c0_i32_1 = arith.constant 0 : i32
    return %c0_i32, %c0_i32_0 : i32, i32
  }
  func.func @transform_3(%arg0: i32) -> (i32, i32) {
    %c0_i32 = arith.constant 0 : i32
    %c0_i32_0 = arith.constant 0 : i32
    %c0_i32_1 = arith.constant 0 : i32
    return %c0_i32, %c0_i32_0 : i32, i32
  }
  func.func @transform_4(%arg0: i32) -> (i32, i32, i32) {
    %c0_i32 = arith.constant 0 : i32
    %c0_i32_0 = arith.constant 0 : i32
    %c0_i32_1 = arith.constant 0 : i32
    %c0_i32_2 = arith.constant 0 : i32
    return %c0_i32, %c0_i32_0, %c0_i32_1 : i32, i32, i32
  }
  func.func @transform_5(%arg0: i32) -> (i32, i32) {
    %c0_i32 = arith.constant 0 : i32
    %c0_i32_0 = arith.constant 0 : i32
    %c0_i32_1 = arith.constant 0 : i32
    return %c0_i32, %c0_i32_0 : i32, i32
  }
  func.func @transform_6(%arg0: i32) -> (i32, i32) {
    %c0_i32 = arith.constant 0 : i32
    %c0_i32_0 = arith.constant 0 : i32
    %c0_i32_1 = arith.constant 0 : i32
    return %c0_i32, %c0_i32_0 : i32, i32
  }
  func.func @transform_7(%arg0: i32) -> (i32, i32) {
    %c0_i32 = arith.constant 0 : i32
    %c0_i32_0 = arith.constant 0 : i32
    %c0_i32_1 = arith.constant 0 : i32
    return %c0_i32, %c0_i32_0 : i32, i32
  }
  func.func @transform_8(%arg0: i32) -> (i32, i32) {
    %c0_i32 = arith.constant 0 : i32
    %c0_i32_0 = arith.constant 0 : i32
    %c0_i32_1 = arith.constant 0 : i32
    return %c0_i32, %c0_i32_0 : i32, i32
  }
  func.func @transform_9(%arg0: i32) -> (i32, i32) {
    %c0_i32 = arith.constant 0 : i32
    %c0_i32_0 = arith.constant 0 : i32
    %c0_i32_1 = arith.constant 0 : i32
    return %c0_i32, %c0_i32_0 : i32, i32
  }
  func.func @transform_10(%arg0: i32) -> (i32, i32) {
    %c0_i32 = arith.constant 0 : i32
    %c0_i32_0 = arith.constant 0 : i32
    %c0_i32_1 = arith.constant 0 : i32
    return %c0_i32, %c0_i32_0 : i32, i32
  }
  func.func @transform_11(%arg0: i32) -> (i32, i32) {
    %c0_i32 = arith.constant 0 : i32
    %c0_i32_0 = arith.constant 0 : i32
    %c0_i32_1 = arith.constant 0 : i32
    return %c0_i32, %c0_i32_0 : i32, i32
  }
  func.func @transform_12(%arg0: i32) -> (i32, i32) {
    %c0_i32 = arith.constant 0 : i32
    %c0_i32_0 = arith.constant 0 : i32
    %c0_i32_1 = arith.constant 0 : i32
    return %c0_i32, %c0_i32_0 : i32, i32
  }
  func.func @transform_13(%arg0: i32) -> (i32, i32) {
    %c0_i32 = arith.constant 0 : i32
    %c0_i32_0 = arith.constant 0 : i32
    %c0_i32_1 = arith.constant 0 : i32
    return %c0_i32, %c0_i32_0 : i32, i32
  }
  func.func @transform_14(%arg0: i32) -> (i32, i32) {
    %c0_i32 = arith.constant 0 : i32
    %c0_i32_0 = arith.constant 0 : i32
    return %arg0, %c0_i32 : i32, i32
  }
}

</mosaic_0001>

<bundles_post_ra>
// kernel: tpu_custom_call.1
= control target key start
LH: loop header
LB: loop body
LE: loop exit
PB: predicated region body
PF: predicated region fallthrough
CT: control target
= control target key end

     0   :  { %s3615_s29 = smov 0   ;;  %s5493_s0 = inlined_call_operand.vmem [shape: bf16[512,8], index: 0, kind: input, shape index: {}]   ;;  %s5494_s1 = inlined_call_operand.vmem [shape: bf16[8,16], index: 1, kind: input, shape index: {}]   ;;  %s5495_s2 = inlined_call_operand.vmem [shape: f32[1,16], index: 2, kind: input, shape index: {}]   ;;  %s5496_s3 = inlined_call_operand.vmem [shape: f32[1,16], index: 3, kind: input, shape index: {}]   ;;  %s5497_s4 = inlined_call_operand.vmem [shape: f32[3,3,16], index: 4, kind: input, shape index: {}]   ;;  %s5498_s5 = inlined_call_operand.vmem [shape: f32[1,16], index: 5, kind: input, shape index: {}]   ;;  %s5499_s6 = inlined_call_operand.vmem [shape: f32[1,16], index: 6, kind: input, shape index: {}]   ;;  %s5500_s7 = inlined_call_operand.vmem [shape: f32[16,2], index: 7, kind: input, shape index: {}]   ;;  %s5501_s8 = inlined_call_operand.vmem [shape: f32[1,2], index: 8, kind: input, shape index: {}]   ;;  %s5502_s9 = inlined_call_operand.vmem [shape: f32[2,16], index: 9, kind: input, shape index: {}]   ;;  %s5503_s10 = inlined_call_operand.vmem [shape: f32[1,16], index: 10, kind: input, shape index: {}]   ;;  %s5504_s11 = inlined_call_operand.vmem [shape: bf16[16,8], index: 11, kind: input, shape index: {}]   ;;  %s5505_s12 = inlined_call_operand.vmem [shape: f32[1,8], index: 12, kind: input, shape index: {}]   ;;  %s5506_s13 = inlined_call_operand.vmem [shape: f32[1,8], index: 13, kind: input, shape index: {}]   ;;  %s5507_s14 = inlined_call_operand.vmem [shape: f32[512,8], index: 14, kind: output, shape index: {}]  }
   0x1 LB: > { %s2943_s30 = sadd.s32 4294967295, %s3535_s29   ;;  %p2947_p0 = scmp.ge.s32.totalorder %s3535_s29, 1  ;;  %s3535_s29 = sphi %s3615_s29, %s24_s29  }
   0x2   : > { %p413_p1 = scmp.lt.s32.totalorder %s3535_s29, 3 }
   0x4   : > { %p414_p2 = pnand %p2947_p0, %p413_p1 }
   0x6   : > { %417 = sbr.rel (%p414_p2) target bundleno = 1326 (0x52e), region = 76 }
   0xd   : > { %v504_v0 = vld [vmem:[%s5494_s1] sm:$0xf]  ;;  %vm634_vm0 = vcmask 1043456   ;;  %s2948_s17 = sshll.u32 %s2943_s30, 5  ;;  %vm585_vm1 = vcmask 64512   ;;  %vm1101_vm2 = vcmask 130048  }
   0xe   : > { %3200 = vmatprep.subr.msk.bf16.mxu0 %vm634_vm0, %v504_v0  ;;  %v636_v1 = vsel %vm634_vm0, %v504_v0, 0  ;;  %p460_p3 = scmp.lt.s32.totalorder %s2948_s17, 63  ;;  %v5508_v18 = vmov 0.0   ;;  %v3758_v19 = vld [vmem:[%s5495_s2] ss:$0 sm:$0xff]  ;;  %vm3539_vm3 = vmmov 0  }
   0xf   : > { %3118 = vmatpush3.bf16.msra.mxu0 %v636_v1  ;;  %1113 = vst.msk [vmem:[#allocation2 + $0x40] sm:$0xff] %vm1101_vm2, %v5508_v18  ;;  %1102 = vst.msk [vmem:[#allocation2] sm:$0xff] %vm1101_vm2, %v5508_v18  ;;  %3158 = vmatprep.subr.mxu1 %v5508_v18  ;;  %v3763_v21 = vld [vmem:[%s5496_s3] ss:$0 sm:$0xff]  ;;  %vm2364_vm4 = vcmask 1041408   ;;  %vm2360_vm5 = vcmask 15360  }
  0x10   : > { %s5621_s17 = smov (!%p460_p3, %s2948_s17), 63  ;;  %1103 = vst.msk [vmem:[#allocation2 + $0x8] sm:$0xff] %vm1101_vm2, %v5508_v18  ;;  %1104 = vst.msk [vmem:[#allocation2 + $0x10] sm:$0xff] %vm1101_vm2, %v5508_v18 }
  0x11   : > { %s2949_s18 = sshll.u32 %s5621_s17, 2  ;;  %1105 = vst.msk [vmem:[#allocation2 + $0x18] sm:$0xff] %vm1101_vm2, %v5508_v18  ;;  %1107 = vst.msk [vmem:[#allocation2 + $0x220] sm:$0xff] %vm1101_vm2, %v5508_v18  ;;  %s2951_s20 = sshll.u32 %s5621_s17, 3 }
  0x12   : > { %s3632_s21 = scalar_lea.vmem %s5493_s0, %s2949_s18  ;;  %1108 = vst.msk [vmem:[#allocation2 + $0x228] sm:$0xff] %vm1101_vm2, %v5508_v18  ;;  %1109 = vst.msk [vmem:[#allocation2 + $0x230] sm:$0xff] %vm1101_vm2, %v5508_v18  ;;  %s5350_s17 = scalar_lea.vmem %s5507_s14, %s2951_s20 }
  0x13   : > { %v472_v2 = vld [vmem:[%s3632_s21] sm:$0xff]   ;;  %v474_v3 = vld [vmem:[%s3632_s21 + $0x8] sm:$0xff]   ;;  %v476_v4 = vld [vmem:[%s3632_s21 + $0x10] sm:$0xff]   ;;  %1110 = vst.msk [vmem:[#allocation2 + $0x238] sm:$0xff] %vm1101_vm2, %v5508_v18 }
  0x14   : > { %3119 = vmatprep.mubr.msk.bf16.mxu0 %vm585_vm1, %v472_v2  ;;  %v478_v5 = vld [vmem:[%s3632_s21 + $0x18] sm:$0xff]   ;;  %v480_v6 = vld [vmem:[%s3632_s21 + $0x20] sm:$0xff]   ;;  %v482_v7 = vld [vmem:[%s3632_s21 + $0x28] sm:$0xff]   ;;  %1112 = vst.msk [vmem:[#allocation2 + $0x20] sm:$0xff] %vm1101_vm2, %v5508_v18 }
  0x15   : > { %3120 = vmatmul.mubr.msk.bf16.vlgmr.msra.gmra.mrb[0].mxu0 %vm585_vm1, %v474_v3  ;;  %v484_v8 = vld [vmem:[%s3632_s21 + $0x30] sm:$0xff]   ;;  %v486_v9 = vld [vmem:[%s3632_s21 + $0x38] sm:$0xff]   ;;  %v488_v10 = vld [vmem:[%s3632_s21 + $0x40] sm:$0xff]   ;;  %1114 = vst.msk [vmem:[#allocation2 + $0x60] sm:$0xff] %vm1101_vm2, %v5508_v18 }
  0x16   : > { %3123 = vmatprep.mubr.msk.bf16.mxu0 %vm585_vm1, %v476_v4  ;;  %v490_v11 = vld [vmem:[%s3632_s21 + $0x48] sm:$0xff]   ;;  %v492_v12 = vld [vmem:[%s3632_s21 + $0x50] sm:$0xff]   ;;  %v494_v13 = vld [vmem:[%s3632_s21 + $0x58] sm:$0xff]   ;;  %1115 = vst.msk [vmem:[#allocation2 + $0x80] sm:$0xff] %vm1101_vm2, %v5508_v18 }
  0x17   : > { %v496_v14 = vld [vmem:[%s3632_s21 + $0x60] sm:$0xff]   ;;  %v498_v15 = vld [vmem:[%s3632_s21 + $0x68] sm:$0xff]   ;;  %v500_v16 = vld [vmem:[%s3632_s21 + $0x70] sm:$0xff]   ;;  %1116 = vst.msk [vmem:[#allocation2 + $0xa0] sm:$0xff] %vm1101_vm2, %v5508_v18 }
  0x18   : > { %v502_v17 = vld [vmem:[%s3632_s21 + $0x78] sm:$0xff]   ;;  %1117 = vst.msk [vmem:[#allocation2 + $0xc0] sm:$0xff] %vm1101_vm2, %v5508_v18  ;;  %1118 = vst.msk [vmem:[#allocation2 + $0xe0] sm:$0xff] %vm1101_vm2, %v5508_v18 }
  0x19   : > { %1119 = vst.msk [vmem:[#allocation2 + $0x100] sm:$0xff] %vm1101_vm2, %v5508_v18  ;;  %1120 = vst.msk [vmem:[#allocation2 + $0x120] sm:$0xff] %vm1101_vm2, %v5508_v18 }
  0x1a   : > { %1121 = vst.msk [vmem:[#allocation2 + $0x140] sm:$0xff] %vm1101_vm2, %v5508_v18  ;;  %1122 = vst.msk [vmem:[#allocation2 + $0x160] sm:$0xff] %vm1101_vm2, %v5508_v18 }
  0x1b   : > { %1123 = vst.msk [vmem:[#allocation2 + $0x180] sm:$0xff] %vm1101_vm2, %v5508_v18  ;;  %1124 = vst.msk [vmem:[#allocation2 + $0x1a0] sm:$0xff] %vm1101_vm2, %v5508_v18 }
  0x1c   : > { %1125 = vst.msk [vmem:[#allocation2 + $0x1c0] sm:$0xff] %vm1101_vm2, %v5508_v18  ;;  %1126 = vst.msk [vmem:[#allocation2 + $0x1e0] sm:$0xff] %vm1101_vm2, %v5508_v18 }
  0x1d   : > { %3124 = vmatmul.mubr.msk.bf16.gmra.mrb[4].mxu0 %vm585_vm1, %v478_v5  ;;  %1127 = vst.msk [vmem:[#allocation2 + $0x200] sm:$0xff] %vm1101_vm2, %v5508_v18  ;;  %1130 = vst.msk [vmem:[#allocation2 + $0x38] sm:$0xff] %vm1101_vm2, %v5508_v18 }
  0x1e   : > { %3127 = vmatprep.mubr.msk.bf16.mxu0 %vm585_vm1, %v480_v6  ;;  %1131 = vst.msk [vmem:[#allocation2 + $0x58] sm:$0xff] %vm1101_vm2, %v5508_v18  ;;  %1132 = vst.msk [vmem:[#allocation2 + $0x78] sm:$0xff] %vm1101_vm2, %v5508_v18 }
  0x1f   : > { %1133 = vst.msk [vmem:[#allocation2 + $0x98] sm:$0xff] %vm1101_vm2, %v5508_v18  ;;  %1134 = vst.msk [vmem:[#allocation2 + $0xb8] sm:$0xff] %vm1101_vm2, %v5508_v18 }
  0x20   : > { %1135 = vst.msk [vmem:[#allocation2 + $0xd8] sm:$0xff] %vm1101_vm2, %v5508_v18  ;;  %1136 = vst.msk [vmem:[#allocation2 + $0xf8] sm:$0xff] %vm1101_vm2, %v5508_v18 }
  0x21   : > { %1137 = vst.msk [vmem:[#allocation2 + $0x118] sm:$0xff] %vm1101_vm2, %v5508_v18  ;;  %1138 = vst.msk [vmem:[#allocation2 + $0x138] sm:$0xff] %vm1101_vm2, %v5508_v18 }
  0x22   : > { %1139 = vst.msk [vmem:[#allocation2 + $0x158] sm:$0xff] %vm1101_vm2, %v5508_v18  ;;  %1140 = vst.msk [vmem:[#allocation2 + $0x178] sm:$0xff] %vm1101_vm2, %v5508_v18 }
  0x23   : > { %1141 = vst.msk [vmem:[#allocation2 + $0x198] sm:$0xff] %vm1101_vm2, %v5508_v18  ;;  %1142 = vst.msk [vmem:[#allocation2 + $0x1b8] sm:$0xff] %vm1101_vm2, %v5508_v18 }
  0x24   : > { %1143 = vst.msk [vmem:[#allocation2 + $0x1d8] sm:$0xff] %vm1101_vm2, %v5508_v18  ;;  %1144 = vst.msk [vmem:[#allocation2 + $0x1f8] sm:$0xff] %vm1101_vm2, %v5508_v18 }
  0x25   : > { %3128 = vmatmul.mubr.msk.bf16.gmra.mrb[8].mxu0 %vm585_vm1, %v482_v7  ;;  %1145 = vst.msk [vmem:[#allocation2 + $0x218] sm:$0xff] %vm1101_vm2, %v5508_v18  ;;  %1111 = vst.msk [vmem:[#allocation2] sm:$0xff] %vm1101_vm2, %v5508_v18 }
  0x26   : > { %3131 = vmatprep.mubr.msk.bf16.mxu0 %vm585_vm1, %v484_v8  ;;  %1128 = vst.msk [vmem:[#allocation2 + $0x220] sm:$0xff] %vm1101_vm2, %v5508_v18  ;;  %1129 = vst.msk [vmem:[#allocation2 + $0x18] sm:$0xff] %vm1101_vm2, %v5508_v18 }
  0x27   : > { %1146 = vst.msk [vmem:[#allocation2 + $0x238] sm:$0xff] %vm1101_vm2, %v5508_v18 }
  0x2d   : > { %3132 = vmatmul.mubr.msk.bf16.gmra.mrb[12].mxu0 %vm585_vm1, %v486_v9 }
  0x2e   : > { %3135 = vmatprep.mubr.msk.bf16.mxu0 %vm585_vm1, %v488_v10 }
  0x35   : > { %3136 = vmatmul.mubr.msk.bf16.gmra.mrb[16].mxu0 %vm585_vm1, %v490_v11 }
  0x36   : > { %3139 = vmatprep.mubr.msk.bf16.mxu0 %vm585_vm1, %v492_v12  ;;  %v1219_v12 = vlaneseq }
  0x3d   : > { %3140 = vmatmul.mubr.msk.bf16.gmra.mrb[20].mxu0 %vm585_vm1, %v494_v13 }
  0x3e   : > { %3143 = vmatprep.mubr.msk.bf16.mxu0 %vm585_vm1, %v496_v14 }
  0x45   : > { %3144 = vmatmul.mubr.msk.bf16.gmra.mrb[24].mxu0 %vm585_vm1, %v498_v15 }
  0x46   : > { %3147 = vmatprep.mubr.msk.bf16.mxu0 %vm585_vm1, %v500_v16 }
  0x4d   : > { %3148 = vmatmul.mubr.msk.bf16.gmra.mrb[28].mxu0 %vm585_vm1, %v502_v17 }
  0xe8   : > { %v3121_v20 = vpop.f32.mrb[0].mxu0 }
  0xe9   : > { %v808_v22 = vmul.f32 %v3121_v20, %v3758_v19  ;;  %v672_v23 = vpop.f32.mrb[1].mxu0 }
  0xea   : > { %v806_v24 = vmul.f32 %v3758_v19, %v672_v23  ;;  %v3122_v25 = vpop.f32.mrb[2].mxu0 }
  0xeb   : > { %v3768_v26 = vadd.f32 %v3763_v21, %v808_v22  ;;  %v809_v27 = vmul.f32 %v3122_v25, %v3758_v19  ;;  %v675_v28 = vpop.f32.mrb[3].mxu0 }
  0xec   : > { %v3772_v29 = vadd.f32 %v3763_v21, %v806_v24  ;;  %v807_v30 = vmul.f32 %v3758_v19, %v675_v28 }
  0xed   : > { %v2988_v31 = vmul.f32 -1.442695, %v3768_v26  ;;  %v3777_v32 = vadd.f32 %v3763_v21, %v809_v27  ;;  %v3831_v27 = vshrl.u32 %v1219_v12, 7 }
  0xee   : > { %v2986_v33 = vmul.f32 -1.442695, %v3772_v29  ;;  %v3781_v34 = vadd.f32 %v3763_v21, %v807_v30 }
  0xef   : > { %3245 = vpow2.f32 %v2988_v31  ;;  %v2989_v35 = vmul.f32 -1.442695, %v3777_v32 }
  0xf0   : > { %3247 = vpow2.f32 %v2986_v33  ;;  %v2987_v36 = vmul.f32 -1.442695, %v3781_v34  ;;  %v3125_v37 = vpop.f32.mrb[4].mxu0 }
  0xf1   : > { %3249 = vpow2.f32 %v2989_v35  ;;  %v812_v38 = vmul.f32 %v3125_v37, %v3758_v19  ;;  %v688_v39 = vpop.f32.mrb[5].mxu0 }
  0xf2   : > { %3251 = vpow2.f32 %v2987_v36  ;;  %v810_v40 = vmul.f32 %v3758_v19, %v688_v39  ;;  %v3126_v41 = vpop.f32.mrb[6].mxu0  ;;  %v3835_v36 = vsub.s32 0, %v3831_v27 }
  0xf3   : > { %v3788_v42 = vadd.f32 %v3763_v21, %v812_v38  ;;  %v813_v43 = vmul.f32 %v3126_v41, %v3758_v19  ;;  %v691_v44 = vpop.f32.mrb[7].mxu0 }
  0xf4   : > { %v3792_v45 = vadd.f32 %v3763_v21, %v810_v40  ;;  %v811_v46 = vmul.f32 %v3758_v19, %v691_v44  ;;  %5535 = vst [vmem:[#allocation3_spill] sm:$0xff] %v3835_v36  ;;  %v3844_v40 = vld [vmem:[%s5497_s4] sm:$0x7] }
  0xf5   : > { %v2992_v47 = vmul.f32 -1.442695, %v3788_v42  ;;  %v3797_v48 = vadd.f32 %v3763_v21, %v813_v43 }
  0xf6   : > { %v2990_v49 = vmul.f32 -1.442695, %v3792_v45  ;;  %v3801_v50 = vadd.f32 %v3763_v21, %v811_v46 }
  0xf7   : > { %3253 = vpow2.f32 %v2992_v47  ;;  %v2993_v51 = vmul.f32 -1.442695, %v3797_v48  ;;  %v3856_v47 = vld [vmem:[%s5497_s4 + $0x4] sm:$0x7] }
  0xf8   : > { %3255 = vpow2.f32 %v2990_v49  ;;  %v2991_v52 = vmul.f32 -1.442695, %v3801_v50  ;;  %v3129_v53 = vpop.f32.mrb[8].mxu0  ;;  %v3861_v49 = vld [vmem:[%s5497_s4 + $0x8] sm:$0x7] }
  0xf9   : > { %v3246_v54 = vpop.eup %3245  ;;  %v816_v55 = vmul.f32 %v3129_v53, %v3758_v19  ;;  %v704_v56 = vpop.f32.mrb[9].mxu0  ;;  %3257 = vpow2.f32 %v2993_v51 }
  0xfa   : > { %v3248_v57 = vpop.eup %3247  ;;  %v975_v58 = vadd.f32 1.0, %v3246_v54  ;;  %v814_v59 = vmul.f32 %v3758_v19, %v704_v56  ;;  %v3130_v60 = vpop.f32.mrb[10].mxu0  ;;  %3259 = vpow2.f32 %v2991_v52 }
  0xfb   : > { %v3250_v61 = vpop.eup %3249  ;;  %v973_v62 = vadd.f32 1.0, %v3248_v57  ;;  %v3808_v63 = vadd.f32 %v3763_v21, %v816_v55  ;;  %v817_v0 = vmul.f32 %v3130_v60, %v3758_v19  ;;  %v707_v1 = vpop.f32.mrb[11].mxu0  ;;  %v1183_v55 = vld [vmem:[#allocation2 + $0x7] sm:$0xff]  ;;  %v1461_v60 = vsub.s32 1, %v3831_v27 }
  0xfc   : > { %v3252_v2 = vpop.eup %3251  ;;  %3261 = vrcp.f32 %v975_v58  ;;  %v976_v3 = vadd.f32 1.0, %v3250_v61  ;;  %v3812_v4 = vadd.f32 %v3763_v21, %v814_v59  ;;  %v815_v5 = vmul.f32 %v3758_v19, %v707_v1 }
  0xfd   : > { %3263 = vrcp.f32 %v973_v62  ;;  %v974_v6 = vadd.f32 1.0, %v3252_v2  ;;  %v2996_v7 = vmul.f32 -1.442695, %v3808_v63  ;;  %v3817_v8 = vadd.f32 %v3763_v21, %v817_v0 }
  0xfe   : > { %3265 = vrcp.f32 %v976_v3  ;;  %v2994_v9 = vmul.f32 -1.442695, %v3812_v4  ;;  %v3821_v10 = vadd.f32 %v3763_v21, %v815_v5  ;;  %v3873_v58 = vrot.slane %v3856_v47, %v3835_v36 }
  0xff   : > { %3267 = vrcp.f32 %v974_v6  ;;  %v2997_v11 = vmul.f32 -1.442695, %v3817_v8  ;;  %v3877_v59 = vrot.slane %v3861_v49, %v3835_v36 }
 0x100   : > { %3269 = vpow2.f32 %v2996_v7  ;;  %v2995_v13 = vmul.f32 -1.442695, %v3821_v10  ;;  %v3133_v14 = vpop.f32.mrb[12].mxu0 }
 0x101   : > { %v3254_v15 = vpop.eup %3253  ;;  %3271 = vpow2.f32 %v2994_v9  ;;  %v3825_v16 = vpop.f32.mrb[13].mxu0  ;;  %v820_v2 = vmul.f32 %v3133_v14, %v3758_v19 }
 0x102   : > { %v3256_v17 = vpop.eup %3255  ;;  %v979_v20 = vadd.f32 1.0, %v3254_v15  ;;  %3273 = vpow2.f32 %v2997_v11  ;;  %v3827_v22 = vpop.f32.mrb[14].mxu0  ;;  %v3898_v15 = vrot.slane %v3844_v40, %v1461_v60 }
 0x103   : > { %v977_v23 = vadd.f32 1.0, %v3256_v17  ;;  %3275 = vpow2.f32 %v2995_v13  ;;  %v3829_v24 = vpop.f32.mrb[15].mxu0  ;;  %v3258_v25 = vpop.eup %3257  ;;  %v1184_v13 = vld [vmem:[#allocation2 + $0xf] sm:$0xff] }
 0x104   : > { %3277 = vrcp.f32 %v979_v20  ;;  %v3260_v28 = vpop.eup %3259  ;;  %v1423_v17 = vld [vmem:[#allocation2 + $0x8] sm:$0xff]  ;;  %v3901_v20 = vadd.f32 %v3763_v21, %v820_v2 }
 0x105   : > { %3279 = vrcp.f32 %v977_v23  ;;  %v978_v53 = vadd.f32 1.0, %v3260_v28  ;;  %v821_v23 = vmul.f32 %v3827_v22, %v3758_v19  ;;  %v1424_v22 = vld [vmem:[#allocation2 + $0x10] sm:$0xff] }
 0x106   : > { %v3262_v30 = vpop.eup %3261 }
 0x107   : > { %v3264_v31 = vpop.eup %3263  ;;  %v1071_v33 = vmul.f32 %v3262_v30, %v3768_v26 }
 0x108   : > { %v3266_v35 = vpop.eup %3265  ;;  %v1069_v37 = vmul.f32 %v3264_v31, %v3772_v29  ;;  %v3838_v38 = vpop.f32.mrb[16].mxu0 }
 0x109   : > { %v3268_v39 = vpop.eup %3267  ;;  %1150 = vst.msk [vmem:[#allocation2 + $0x48] sm:$0xff] %vm1101_vm2, %v1071_v33  ;;  %v1072_v41 = vmul.f32 %v3266_v35, %v3777_v32  ;;  %v3847_v43 = vpop.f32.mrb[17].mxu0  ;;  %v980_v32 = vadd.f32 1.0, %v3258_v25 }
 0x10a   : > { %v3270_v26 = vpop.eup %3269  ;;  %1148 = vst.msk [vmem:[#allocation2 + $0x28] sm:$0xff] %vm1101_vm2, %v1069_v37  ;;  %v1070_v44 = vmul.f32 %v3268_v39, %v3781_v34  ;;  %v3851_v29 = vpop.f32.mrb[18].mxu0  ;;  %v3868_v34 = vrot.slane %v3844_v40, %v3835_v36  ;;  %v1463_v37 = vmul.f32 %v3898_v15, %v1423_v17 }
 0x10b   : > { %v3272_v46 = vpop.eup %3271  ;;  %1151 = vst.msk [vmem:[#allocation2 + $0x50] sm:$0xff] %vm1101_vm2, %v1072_v41  ;;  %v3864_v51 = vpop.f32.mrb[19].mxu0  ;;  %v983_v56 = vadd.f32 1.0, %v3270_v26  ;;  %3281 = vrcp.f32 %v980_v32  ;;  %v819_v26 = vmul.f32 %v3758_v19, %v3829_v24  ;;  %v3927_v32 = vadd.f32 %v3763_v21, %v821_v23 }
 0x10c   : > { %v3274_v52 = vpop.eup %3273  ;;  %1149 = vst.msk [vmem:[#allocation2 + $0x30] sm:$0xff] %vm1101_vm2, %v1070_v44  ;;  %v981_v61 = vadd.f32 1.0, %v3272_v46  ;;  %v1223_v3 = vmul.f32 %v3868_v34, %v1183_v55  ;;  %3283 = vrcp.f32 %v978_v53  ;;  %v1224_v33 = vmul.f32 %v3868_v34, %v1184_v13  ;;  %v1663_v44 = vld [vmem:[#allocation2 + $0x9] sm:$0xff] }
 0x10d   : > { %v3276_v54 = vpop.eup %3275  ;;  %v984_v1 = vadd.f32 1.0, %v3274_v52  ;;  %3285 = vrcp.f32 %v983_v56  ;;  %v3000_v46 = vmul.f32 -1.442695, %v3901_v20  ;;  %v3932_v53 = vrot.slane %v3856_v47, %v1461_v60 }
 0x10e   : > { %v3278_v57 = vpop.eup %3277  ;;  %v982_v6 = vadd.f32 1.0, %v3276_v54  ;;  %3287 = vrcp.f32 %v981_v61  ;;  %v3001_v23 = vmul.f32 -1.442695, %v3927_v32 }
 0x10f   : > { %v3280_v62 = vpop.eup %3279  ;;  %v1075_v0 = vmul.f32 %v3278_v57, %v3788_v42  ;;  %3289 = vrcp.f32 %v984_v1  ;;  %v3942_v57 = vrot.slane %v3861_v49, %v1461_v60  ;;  %v1464_v1 = vmul.f32 %v3898_v15, %v1424_v22 }
 0x110   : > { %v1073_v5 = vmul.f32 %v3280_v62, %v3792_v45  ;;  %v3884_v7 = vpop.f32.mrb[20].mxu0  ;;  %v3886_v9 = vld [vmem:[#allocation2 + $0x47] sm:$0xff]  ;;  %v818_v45 = vmul.f32 %v3758_v19, %v3825_v16  ;;  %v3910_v16 = vsub.s32 2, %v3831_v27  ;;  %3291 = vrcp.f32 %v982_v6 }
 0x111   : > { %v1185_v11 = vld [vmem:[#allocation2 + $0x27] sm:$0xff]  ;;  %1154 = vst.msk [vmem:[#allocation2 + $0x88] sm:$0xff] %vm1101_vm2, %v1075_v0  ;;  %v3889_v12 = vpop.f32.mrb[21].mxu0  ;;  %v1359_v28 = vmul.f32 %v3877_v59, %v3886_v9  ;;  %v1293_v52 = vmul.f32 %v3873_v58, %v3886_v9  ;;  %3293 = vpow2.f32 %v3000_v46 }
 0x112   : > { %5536 = vst [vmem:[#allocation4_spill] sm:$0xff] %v3889_v12  ;;  %v1291_v42 = vmul.f32 %v3873_v58, %v1185_v11  ;;  %1152 = vst.msk [vmem:[#allocation2 + $0x68] sm:$0xff] %vm1101_vm2, %v1073_v5  ;;  %v3895_v14 = vpop.f32.mrb[22].mxu0  ;;  %v3916_v39 = vld [vmem:[#allocation2 + $0x4f] sm:$0xff]  ;;  %v3919_v41 = vadd.f32 %v3763_v21, %v818_v45  ;;  %v1225_v54 = vmul.f32 %v3868_v34, %v1185_v11 }
 0x113   : > { %5537 = vst [vmem:[#allocation5_spill] sm:$0xff] %v3895_v14  ;;  %v3905_v25 = vpop.f32.mrb[23].mxu0  ;;  %v3912_v31 = vld [vmem:[#allocation2 + $0x2f] sm:$0xff]  ;;  %v3937_v24 = vrot.slane %v3844_v40, %v3910_v16  ;;  %v1360_v62 = vmul.f32 %v3877_v59, %v3916_v39 }
 0x114   : > { %5538 = vst [vmem:[#allocation6_spill] sm:$0xff] %v3905_v25  ;;  %v1323_v30 = vadd.f32 %v1291_v42, %v1223_v3  ;;  %v1292_v27 = vmul.f32 %v3873_v58, %v3912_v31  ;;  %v1425_v61 = vld [vmem:[#allocation2 + $0x28] sm:$0xff]  ;;  %v2998_v60 = vmul.f32 -1.442695, %v3919_v41  ;;  %v3958_v42 = vadd.f32 %v3763_v21, %v819_v26  ;;  %v3960_v17 = vld [vmem:[#allocation2 + $0x30] sm:$0xff] }
 0x115   : > { %v3282_v56 = vpop.eup %3281  ;;  %v3951_v40 = vld [vmem:[#allocation2 + $0x48] sm:$0xff]  ;;  %v3954_v11 = vmul.f32 %v3937_v24, %v1663_v44  ;;  %v1227_v44 = vmul.f32 %v3868_v34, %v3886_v9  ;;  %v1532_v18 = vmul.f32 %v3932_v53, %v3960_v17  ;;  %v1664_v25 = vld [vmem:[#allocation2 + $0x11] sm:$0xff] }
 0x116   : > { %v1391_v35 = vadd.f32 %v1359_v28, %v1323_v30  ;;  %v1324_v0 = vadd.f32 %v1292_v27, %v1224_v33  ;;  %v3284_v5 = vpop.eup %3283  ;;  %v824_v28 = vmul.f32 %v3838_v38, %v3758_v19  ;;  %v1325_v33 = vadd.f32 %v1293_v52, %v1225_v54 }
 0x117   : > { %v3286_v13 = vpop.eup %3285  ;;  %v1533_v46 = vmul.f32 %v3932_v53, %v3951_v40  ;;  %v822_v52 = vmul.f32 %v3758_v19, %v3847_v43  ;;  %3295 = vpow2.f32 %v2998_v60  ;;  %v1467_v60 = vmul.f32 %v3898_v15, %v3951_v40 }
 0x118   : > { %v3939_v55 = vpop.f32.mrb[24].mxu0  ;;  %v1495_v6 = vadd.f32 %v1463_v37, %v1391_v35  ;;  %v1392_v45 = vadd.f32 %v1360_v62, %v1324_v0  ;;  %v3288_v30 = vpop.eup %3287  ;;  %v1531_v35 = vmul.f32 %v3932_v53, %v1425_v61  ;;  %v1465_v62 = vmul.f32 %v3898_v15, %v1425_v61  ;;  %v3983_v9 = vld [vmem:[#allocation2 + $0x87] sm:$0xff] }
 0x119   : > { %5539 = vst [vmem:[#allocation7_spill] sm:$0xff] %v3939_v55  ;;  %v3947_v2 = vld [vmem:[#allocation2 + $0x67] sm:$0xff]  ;;  %v3949_v3 = vpop.f32.mrb[25].mxu0  ;;  %v3290_v27 = vpop.eup %3289  ;;  %v1076_v55 = vmul.f32 %v3282_v56, %v3797_v48  ;;  %v1079_v43 = vmul.f32 %v3286_v13, %v3808_v63  ;;  %v2999_v63 = vmul.f32 -1.442695, %v3958_v42  ;;  %v4014_v13 = vadd.f32 %v3763_v21, %v822_v52 }
 0x11a   : > { %5540 = vst [vmem:[#allocation8_spill] sm:$0xff] %v3949_v3  ;;  %v1295_v37 = vmul.f32 %v3873_v58, %v3947_v2  ;;  %v1361_v22 = vmul.f32 %v3877_v59, %v3947_v2  ;;  %v3970_v26 = vpop.f32.mrb[26].mxu0  ;;  %v1496_v38 = vadd.f32 %v1464_v1, %v1392_v45  ;;  %v3292_v54 = vpop.eup %3291  ;;  %v1563_v0 = vadd.f32 %v1531_v35, %v1495_v6  ;;  %v1428_v3 = vld [vmem:[#allocation2 + $0x50] sm:$0xff]  ;;  %v3989_v14 = vld [vmem:[#allocation2 + $0x68] sm:$0xff] }
 0x11b   : > { %5541 = vst [vmem:[#allocation9_spill] sm:$0xff] %v3970_v26  ;;  %v1599_v26 = vmul.f32 %v3942_v57, %v3951_v40  ;;  %v1074_v1 = vmul.f32 %v3284_v5, %v3801_v50  ;;  %v1077_v35 = vmul.f32 %v3288_v30, %v3812_v4  ;;  %1155 = vst.msk [vmem:[#allocation2 + $0x90] sm:$0xff] %vm1101_vm2, %v1076_v55  ;;  %3297 = vpow2.f32 %v3001_v23  ;;  %v4041_v40 = vld [vmem:[#allocation2 + $0x51] sm:$0xff] }
 0x11c   : > { %v1393_v36 = vadd.f32 %v1361_v22, %v1325_v33  ;;  %v1564_v45 = vadd.f32 %v1532_v18, %v1496_v38  ;;  %v1327_v61 = vadd.f32 %v1295_v37, %v1227_v44  ;;  %1158 = vst.msk [vmem:[#allocation2 + $0xc8] sm:$0xff] %vm1101_vm2, %v1079_v43  ;;  %v1080_v48 = vmul.f32 %v3290_v27, %v3817_v8  ;;  %v3294_v37 = vpop.eup %3293 }
 0x11d   : > { %1153 = vst.msk [vmem:[#allocation2 + $0x70] sm:$0xff] %vm1101_vm2, %v1074_v1  ;;  %v1078_v50 = vmul.f32 %v3292_v54, %v3821_v10  ;;  %v3998_v18 = vadd.f32 %v3763_v21, %v824_v28  ;;  %v1631_v4 = vadd.f32 %v1599_v26, %v1563_v0  ;;  %v1600_v56 = vmul.f32 %v3942_v57, %v1428_v3  ;;  %v1667_v26 = vld [vmem:[#allocation2 + $0x49] sm:$0xff] }
 0x11e   : > { %v1497_v6 = vadd.f32 %v1465_v62, %v1393_v36  ;;  %v4000_v36 = vpop.f32.mrb[27].mxu0  ;;  %v1363_v55 = vmul.f32 %v3877_v59, %v3983_v9  ;;  %1156 = vst.msk [vmem:[#allocation2 + $0xa8] sm:$0xff] %vm1101_vm2, %v1077_v35  ;;  %v4008_v8 = vrot.slane %v3856_v47, %v3910_v16  ;;  %v1704_v10 = vmul.f32 %v3937_v24, %v1664_v25  ;;  %v1665_v25 = vld [vmem:[#allocation2 + $0x29] sm:$0xff] }
 0x11f   : > { %5542 = vst [vmem:[#allocation10_spill] sm:$0xff] %v3998_v18  ;;  %5543 = vst [vmem:[#allocation11_spill] sm:$0xff] %v4000_v36  ;;  %v1632_v28 = vadd.f32 %v1600_v56, %v1564_v45  ;;  %v1601_v33 = vmul.f32 %v3942_v57, %v3989_v14  ;;  %v4020_v47 = vrot.slane %v3861_v49, %v3910_v16  ;;  %3299 = vpow2.f32 %v2999_v63 }
 0x120   : > { %v1565_v5 = vadd.f32 %v1533_v46, %v1497_v6  ;;  %1159 = vst.msk [vmem:[#allocation2 + $0xd0] sm:$0xff] %vm1101_vm2, %v1080_v48  ;;  %1157 = vst.msk [vmem:[#allocation2 + $0xb0] sm:$0xff] %vm1101_vm2, %v1078_v50  ;;  %v1395_v30 = vadd.f32 %v1363_v55, %v1327_v61  ;;  %v4024_v22 = vmul.f32 %v3851_v29, %v3758_v19  ;;  %v4030_v23 = vmul.f32 -1.442695, %v3998_v18  ;;  %v1666_v46 = vld [vmem:[#allocation2 + $0x31] sm:$0xff]  ;;  %v4065_v56 = vpop.f32.mrb[28].mxu0 }
 0x121   : > { %5544 = vst [vmem:[#allocation12_spill] sm:$0xff] %v4014_v13  ;;  %v1735_v27 = vadd.f32 %v3954_v11, %v1631_v4  ;;  %v1228_v49 = vmul.f32 %v3868_v34, %v3916_v39  ;;  %v1294_v16 = vmul.f32 %v3873_v58, %v3916_v39  ;;  %v1226_v29 = vmul.f32 %v3868_v34, %v3912_v31  ;;  %v4063_v4 = vld [vmem:[#allocation2 + $0x88] sm:$0xff] }
 0x122   : > { %v1633_v44 = vadd.f32 %v1601_v33, %v1565_v5  ;;  %v4039_v38 = vmul.f32 -1.442695, %v4014_v13  ;;  %v1705_v11 = vmul.f32 %v3937_v24, %v1665_v25  ;;  %v1736_v52 = vadd.f32 %v1704_v10, %v1632_v28  ;;  %5545 = vst [vmem:[#allocation13_spill] sm:$0xff] %v4065_v56  ;;  %v4070_v33 = vpop.f32.mrb[29].mxu0 }
 0x123   : > { %v1771_v54 = vmul.f32 %v4008_v8, %v1665_v25  ;;  %v1499_v62 = vadd.f32 %v1467_v60, %v1395_v30  ;;  %v1468_v0 = vmul.f32 %v3898_v15, %v1428_v3  ;;  %v1534_v1 = vmul.f32 %v3932_v53, %v1428_v3  ;;  %v4068_v30 = vld [vmem:[#allocation2 + $0x8f] sm:$0xff]  ;;  %5546 = vst [vmem:[#allocation14_spill] sm:$0xff] %v4070_v33  ;;  %v3296_v25 = vpop.eup %3295 }
 0x124   : > { %v1707_v39 = vmul.f32 %v3937_v24, %v1667_v26  ;;  %v1773_v31 = vmul.f32 %v4008_v8, %v1667_v26  ;;  %v1772_v43 = vmul.f32 %v4008_v8, %v1666_v46  ;;  %v1535_v61 = vmul.f32 %v3932_v53, %v3989_v14  ;;  %v4052_v35 = vld [vmem:[#allocation2 + $0x6f] sm:$0xff] }
 0x125   : > { %v1803_v45 = vadd.f32 %v1771_v54, %v1735_v27  ;;  %v1737_v6 = vadd.f32 %v1705_v11, %v1633_v44  ;;  %v4056_v48 = vmul.f32 %v4008_v8, %v4041_v40  ;;  %v1839_v50 = vmul.f32 %v4020_v47, %v1667_v26  ;;  %v4080_v44 = vld [vmem:[#allocation2 + $0x69] sm:$0xff] }
 0x126   : > { %v1840_v3 = vmul.f32 %v4020_v47, %v4041_v40  ;;  %v1466_v63 = vmul.f32 %v3898_v15, %v3960_v17  ;;  %v1326_v55 = vadd.f32 %v1294_v16, %v1226_v29  ;;  %v1706_v5 = vmul.f32 %v3937_v24, %v1666_v46  ;;  %v3298_v16 = vpop.eup %3297  ;;  %v4099_v18 = vld [vmem:[#allocation2 + $0xa7] sm:$0xff] }
 0x127   : > { %v1804_v10 = vadd.f32 %v1772_v43, %v1736_v52  ;;  %v1567_v28 = vadd.f32 %v1535_v61, %v1499_v62  ;;  %v1297_v60 = vmul.f32 %v3873_v58, %v3983_v9  ;;  %v1229_v17 = vmul.f32 %v3868_v34, %v3947_v2  ;;  %v4087_v2 = vld [vmem:[%s5498_s5] ss:$0 sm:$0xff] }
 0x128   : > { %v1296_v26 = vmul.f32 %v3873_v58, %v4052_v35  ;;  %v1362_v27 = vmul.f32 %v3877_v59, %v4052_v35  ;;  %v1871_v29 = vadd.f32 %v1839_v50, %v1803_v45  ;;  %v1603_v46 = vmul.f32 %v3942_v57, %v4063_v4 }
 0x129   : > { %v1805_v11 = vadd.f32 %v1773_v31, %v1737_v6  ;;  %v987_v52 = vadd.f32 1.0, %v3294_v37  ;;  %v3300_v54 = vpop.eup %3299  ;;  %v1231_v62 = vmul.f32 %v3868_v34, %v3983_v9  ;;  %v1364_v43 = vmul.f32 %v3877_v59, %v4068_v30  ;;  %v4095_v37 = vld [vmem:[#allocation2 + $0x70] sm:$0xff] }
 0x12a   : > { %v1328_v61 = vadd.f32 %v1296_v26, %v1228_v49  ;;  %v1394_v33 = vadd.f32 %v1362_v27, %v1326_v55  ;;  %v1872_v45 = vadd.f32 %v1840_v3, %v1804_v10  ;;  %v1469_v50 = vmul.f32 %v3898_v15, %v3989_v14  ;;  %v4102_v49 = vld [vmem:[#allocation2 + $0x90] sm:$0xff]  ;;  %v4107_v14 = vld [vmem:[%s5499_s6] ss:$0 sm:$0xff] }
 0x12b   : > { %v1635_v31 = vadd.f32 %v1603_v46, %v1567_v28  ;;  %v1841_v6 = vmul.f32 %v4020_v47, %v4080_v44  ;;  %v1329_v56 = vadd.f32 %v1297_v60, %v1229_v17  ;;  %v985_v9 = vadd.f32 1.0, %v3296_v25  ;;  %v4128_v46 = vld [vmem:[#allocation2 + $0xc7] sm:$0xff] }
 0x12c   : > { %v1396_v36 = vadd.f32 %v1364_v43, %v1328_v61  ;;  %v1498_v13 = vadd.f32 %v1466_v63, %v1394_v33  ;;  %v1910_v12 = vmul.f32 %v4087_v2, %v1871_v29  ;;  %3301 = vrcp.f32 %v987_v52 }
 0x12d   : > { %v1873_v3 = vadd.f32 %v1841_v6, %v1805_v11  ;;  %v988_v55 = vadd.f32 1.0, %v3298_v16  ;;  %v1536_v28 = vmul.f32 %v3932_v53, %v4095_v37  ;;  %v1602_v33 = vmul.f32 %v3942_v57, %v4095_v37  ;;  %v4130_v11 = vpop.f32.mrb[30].mxu0 }
 0x12e   : > { %v1500_v10 = vadd.f32 %v1468_v0, %v1396_v36  ;;  %v1566_v63 = vadd.f32 %v1534_v1, %v1498_v13  ;;  %v1911_v25 = vmul.f32 %v4087_v2, %v1872_v45  ;;  %v1739_v60 = vadd.f32 %v1707_v39, %v1635_v31  ;;  %v4118_v36 = vld [vmem:[#allocation2 + $0x71] sm:$0xff]  ;;  %5547 = vst [vmem:[#allocation15_spill] sm:$0xff] %v4130_v11  ;;  %v4137_v31 = vld [vmem:[#allocation2 + $0x89] sm:$0xff] }
 0x12f   : > { %v1299_v17 = vmul.f32 %v3873_v58, %v4099_v18  ;;  %v986_v26 = vadd.f32 1.0, %v3300_v54  ;;  %v1604_v27 = vmul.f32 %v3942_v57, %v4102_v49  ;;  %v1365_v13 = vmul.f32 %v3877_v59, %v4099_v18 }
 0x130   : > { %v1568_v16 = vadd.f32 %v1536_v28, %v1500_v10  ;;  %v1634_v29 = vadd.f32 %v1602_v33, %v1566_v63  ;;  %v4123_v0 = vadd.f32 %v4107_v14, %v1910_v12  ;;  %v1775_v1 = vmul.f32 %v4008_v8, %v4080_v44  ;;  %v4152_v33 = vld [vmem:[#allocation2 + $0xa8] sm:$0xff] }
 0x131   : > { %v1912_v39 = vmul.f32 %v4087_v2, %v1873_v3  ;;  %3303 = vrcp.f32 %v985_v9  ;;  %v1331_v43 = vadd.f32 %v1299_v17, %v1231_v62  ;;  %v1397_v61 = vadd.f32 %v1365_v13, %v1329_v56 }
 0x132   : > { %v1636_v52 = vadd.f32 %v1604_v27, %v1568_v16  ;;  %v1738_v54 = vadd.f32 %v1706_v5, %v1634_v29  ;;  %v1708_v45 = vmul.f32 %v3937_v24, %v4041_v40  ;;  %v4135_v12 = vadd.f32 %v4107_v14, %v1911_v25  ;;  %v1672_v29 = vld [vmem:[#allocation2 + $0x91] sm:$0xff] }
 0x133   : > { %v1842_v6 = vmul.f32 %v4020_v47, %v4118_v36  ;;  %3305 = vrcp.f32 %v988_v55  ;;  %v1807_v3 = vadd.f32 %v1775_v1, %v1739_v60  ;;  %v1367_v5 = vmul.f32 %v3877_v59, %v4128_v46 }
 0x134   : > { %5548 = vst [vmem:[#allocation16_spill] sm:$0xff] %v4135_v12  ;;  %v1806_v9 = vadd.f32 %v4056_v48, %v1738_v54  ;;  %v1501_v62 = vadd.f32 %v1469_v50, %v1397_v61  ;;  %v3020_v56 = vmul.f32 -1.442695, %v4123_v0  ;;  %v1537_v40 = vmul.f32 %v3932_v53, %v4063_v4 }
 0x135   : > { %v1740_v10 = vadd.f32 %v1708_v45, %v1636_v52  ;;  %3307 = vrcp.f32 %v986_v26  ;;  %v1843_v28 = vmul.f32 %v4020_v47, %v4137_v31  ;;  %v4150_v55 = vadd.f32 %v4107_v14, %v1912_v39 }
 0x136   : > { %v1874_v63 = vadd.f32 %v1842_v6, %v1806_v9  ;;  %v1399_v48 = vadd.f32 %v1367_v5, %v1331_v43  ;;  %v4154_v25 = vpop.eup %3301  ;;  %v1298_v50 = vmul.f32 %v3873_v58, %v4068_v30  ;;  %v1230_v60 = vmul.f32 %v3868_v34, %v4052_v35  ;;  %v4183_v5 = vld [vmem:[#allocation2 + $0xcf] sm:$0xff] }
 0x137   : > { %5549 = vst [vmem:[#allocation17_spill] sm:$0xff] %v4150_v55  ;;  %v1776_v17 = vmul.f32 %v4008_v8, %v4118_v36  ;;  %v1569_v26 = vadd.f32 %v1537_v40, %v1501_v62  ;;  %v3021_v27 = vmul.f32 -1.442695, %v4135_v12  ;;  %v1471_v16 = vmul.f32 %v3898_v15, %v4063_v4  ;;  %v4173_v4 = vld [vmem:[#allocation2 + $0xaf] sm:$0xff] }
 0x138   : > { %v1875_v13 = vadd.f32 %v1843_v28, %v1807_v3  ;;  %3309 = vpow2.f32 %v4030_v23  ;;  %v1913_v39 = vmul.f32 %v4087_v2, %v1874_v63  ;;  %v1605_v52 = vmul.f32 %v3942_v57, %v4152_v33 }
 0x139   : > { %v1808_v1 = vadd.f32 %v1776_v17, %v1740_v10  ;;  %3311 = vpow2.f32 %v4039_v38  ;;  %v1232_v35 = vmul.f32 %v3868_v34, %v4068_v30  ;;  %v3022_v54 = vmul.f32 -1.442695, %v4150_v55  ;;  %v4188_v10 = vld [vmem:[#allocation2 + $0xc8] sm:$0xff] }
 0x13a   : > { %3313 = vpow2.f32 %v3020_v56  ;;  %v1503_v43 = vadd.f32 %v1471_v16, %v1399_v48  ;;  %v1472_v23 = vmul.f32 %v3898_v15, %v4102_v49  ;;  %v1844_v45 = vmul.f32 %v4020_v47, %v1672_v29 }
 0x13b   : > { %v3304_v61 = vpop.eup %3303  ;;  %v1330_v6 = vadd.f32 %v1298_v50, %v1230_v60  ;;  %v1637_v9 = vadd.f32 %v1605_v52, %v1569_v26  ;;  %3315 = vpow2.f32 %v3021_v27  ;;  %v1709_v38 = vmul.f32 %v3937_v24, %v4080_v44  ;;  %v4198_v60 = vpop.f32.mrb[31].mxu0 }
 0x13c   : > { %v1914_v3 = vmul.f32 %v4087_v2, %v1875_v13  ;;  %v1539_v30 = vmul.f32 %v3932_v53, %v4152_v33  ;;  %v1876_v56 = vadd.f32 %v1844_v45, %v1808_v1  ;;  %v4186_v40 = vadd.f32 %v4107_v14, %v1913_v39  ;;  %5551 = vst [vmem:[#allocation19_spill] sm:$0xff] %v4198_v60  ;;  %v4202_v1 = vld [vmem:[#allocation2 + $0xb0] sm:$0xff] }
 0x13d   : > { %v3306_v62 = vpop.eup %3305  ;;  %v1300_v28 = vmul.f32 %v3873_v58, %v4173_v4  ;;  %v1366_v44 = vmul.f32 %v3877_v59, %v4173_v4  ;;  %v1538_v63 = vmul.f32 %v3932_v53, %v4102_v49  ;;  %v1470_v48 = vmul.f32 %v3898_v15, %v4095_v37  ;;  %5552 = vst [vmem:[#allocation20_spill] sm:$0xff] %v4202_v1 }
 0x13e   : > { %5550 = vst [vmem:[#allocation18_spill] sm:$0xff] %v4186_v40  ;;  %3317 = vpow2.f32 %v3022_v54  ;;  %v1571_v50 = vadd.f32 %v1539_v30, %v1503_v43  ;;  %v1741_v26 = vadd.f32 %v1709_v38, %v1637_v9  ;;  %v1368_v27 = vmul.f32 %v3877_v59, %v4183_v5  ;;  %v4217_v9 = vld [vmem:[#allocation2 + $0xa9] sm:$0xff] }
 0x13f   : > { %v3308_v17 = vpop.eup %3307  ;;  %v1332_v16 = vadd.f32 %v1300_v28, %v1232_v35  ;;  %v1398_v13 = vadd.f32 %v1366_v44, %v1330_v6  ;;  %v1711_v39 = vmul.f32 %v3937_v24, %v4137_v31  ;;  %v1777_v49 = vmul.f32 %v4008_v8, %v4137_v31  ;;  %v4215_v35 = vld [vmem:[#allocation2 + $0xd0] sm:$0xff] }
 0x140   : > { %v4209_v37 = vadd.f32 %v4107_v14, %v1914_v3  ;;  %v1607_v52 = vmul.f32 %v3942_v57, %v4188_v10  ;;  %v1915_v54 = vmul.f32 %v4087_v2, %v1876_v56  ;;  %v3023_v43 = vmul.f32 -1.442695, %v4186_v40 }
 0x141   : > { %v1400_v45 = vadd.f32 %v1368_v27, %v1332_v16  ;;  %v1502_v6 = vadd.f32 %v1470_v48, %v1398_v13  ;;  %v1712_v31 = vmul.f32 %v3937_v24, %v1672_v29  ;;  %v1778_v3 = vmul.f32 %v4008_v8, %v1672_v29 }
 0x142   : > { %5553 = vst [vmem:[#allocation21_spill] sm:$0xff] %v4209_v37  ;;  %v4219_v38 = vpop.eup %3309  ;;  %v1639_v30 = vadd.f32 %v1607_v52, %v1571_v50  ;;  %v1540_v28 = vmul.f32 %v3932_v53, %v4202_v1  ;;  %v1606_v27 = vmul.f32 %v3942_v57, %v4202_v1  ;;  %v1809_v48 = vadd.f32 %v1777_v49, %v1741_v26  ;;  %v4239_v26 = vld [vmem:[#allocation2 + $0xb1] sm:$0xff] }
 0x143   : > { %v4225_v44 = vpop.eup %3311  ;;  %v1504_v56 = vadd.f32 %v1472_v23, %v1400_v45  ;;  %v1570_v60 = vadd.f32 %v1538_v63, %v1502_v6  ;;  %v1710_v13 = vmul.f32 %v3937_v24, %v4118_v36  ;;  %v3024_v11 = vmul.f32 -1.442695, %v4209_v37 }
 0x144   : > { %v3314_v16 = vpop.eup %3313  ;;  %v1608_v29 = vmul.f32 %v3942_v57, %v4215_v35  ;;  %v1845_v50 = vmul.f32 %v4020_v47, %v4217_v9  ;;  %v4237_v52 = vadd.f32 %v4107_v14, %v1915_v54  ;;  %3319 = vpow2.f32 %v3023_v43 }
 0x145   : > { %v1572_v23 = vadd.f32 %v1540_v28, %v1504_v56  ;;  %v1638_v63 = vadd.f32 %v1606_v27, %v1570_v60  ;;  %v3316_v45 = vpop.eup %3315  ;;  %v1743_v49 = vadd.f32 %v1711_v39, %v1639_v30  ;;  %v1083_v36 = vmul.f32 %v4154_v25, %v3901_v20  ;;  %v4255_v25 = vld [vmem:[#allocation2 + $0xc9] sm:$0xff] }
 0x146   : > { %v1877_v6 = vadd.f32 %v1845_v50, %v1809_v48  ;;  %v1081_v37 = vmul.f32 %v3304_v61, %v3919_v41  ;;  %v1084_v55 = vmul.f32 %v3306_v62, %v3927_v32  ;;  %v1082_v54 = vmul.f32 %v3308_v17, %v3958_v42 }
 0x147   : > { %v1640_v40 = vadd.f32 %v1608_v29, %v1572_v23  ;;  %v1742_v1 = vadd.f32 %v1710_v13, %v1638_v63  ;;  %v1779_v60 = vmul.f32 %v4008_v8, %v4217_v9  ;;  %1162 = vst.msk [vmem:[#allocation2 + $0x108] sm:$0xff] %vm1101_vm2, %v1083_v36  ;;  %v4253_v20 = vadd.f32 %v3763_v21, %v4024_v22  ;;  %v5554_v63 = vld [vmem:[#allocation4_spill] sm:$0xff] }
 0x148   : > { %v3318_v12 = vpop.eup %3317  ;;  %v1916_v43 = vmul.f32 %v4087_v2, %v1877_v6  ;;  %1160 = vst.msk [vmem:[#allocation2 + $0xe8] sm:$0xff] %vm1101_vm2, %v1081_v37  ;;  %v2077_v41 = vadd.f32 1.0, %v3314_v16  ;;  %v1846_v42 = vmul.f32 %v4020_v47, %v4239_v26  ;;  %1163 = vst.msk [vmem:[#allocation2 + $0x110] sm:$0xff] %vm1101_vm2, %v1084_v55  ;;  %v2078_v62 = vadd.f32 1.0, %v3316_v45 }
 0x149   : > { %v1744_v32 = vadd.f32 %v1712_v31, %v1640_v40  ;;  %v1810_v61 = vadd.f32 %v1778_v3, %v1742_v1  ;;  %1161 = vst.msk [vmem:[#allocation2 + $0xf0] sm:$0xff] %vm1101_vm2, %v1082_v54  ;;  %v1811_v17 = vadd.f32 %v1779_v60, %v1743_v49  ;;  %3321 = vpow2.f32 %v3024_v11  ;;  %v4267_v31 = vld [vmem:[#allocation2 + $0xd1] sm:$0xff] }
 0x14a   : > { %v4262_v39 = vadd.f32 %v4107_v14, %v1916_v43  ;;  %v3025_v22 = vmul.f32 -1.442695, %v4237_v52  ;;  %v1780_v37 = vmul.f32 %v4008_v8, %v4239_v26  ;;  %v2079_v1 = vadd.f32 1.0, %v3318_v12 }
 0x14b   : > { %v1878_v40 = vadd.f32 %v1846_v42, %v1810_v61  ;;  %v1847_v55 = vmul.f32 %v4020_v47, %v4255_v25  ;;  %v3005_v3 = vmul.f32 -1.442695, %v4253_v20  ;;  %v823_v30 = vmul.f32 %v3758_v19, %v3864_v51 }
 0x14c   : > { %3323 = vrcp.f32 %v2077_v41  ;;  %v1812_v28 = vadd.f32 %v1780_v37, %v1744_v32  ;;  %v3026_v56 = vmul.f32 -1.442695, %v4262_v39  ;;  %v1301_v12 = vmul.f32 %v3873_v58, %v4128_v46 }
 0x14d   : > { %v1917_v11 = vmul.f32 %v4087_v2, %v1878_v40  ;;  %3325 = vrcp.f32 %v2078_v62  ;;  %v1233_v27 = vmul.f32 %v3868_v34, %v4099_v18  ;;  %v1879_v48 = vadd.f32 %v1847_v55, %v1811_v17 }
 0x14e   : > { %v3320_v16 = vpop.eup %3319  ;;  %3327 = vpow2.f32 %v3025_v22  ;;  %v1848_v13 = vmul.f32 %v4020_v47, %v4267_v31  ;;  %v991_v29 = vadd.f32 1.0, %v4219_v38  ;;  %v4289_v23 = vadd.f32 %v3763_v21, %v823_v30  ;;  %v4299_v43 = vld [vmem:[#allocation2 + $0x107] sm:$0xff] }
 0x14f   : > { %v4283_v51 = vadd.f32 %v4107_v14, %v1917_v11  ;;  %3329 = vrcp.f32 %v2079_v1  ;;  %v4286_v50 = vld [vmem:[#allocation2 + $0xe7] sm:$0xff]  ;;  %v828_v18 = vmul.f32 %v3884_v7, %v3758_v19  ;;  %v826_v45 = vmul.f32 %v3758_v19, %v5554_v63 }
 0x150   : > { %v1235_v49 = vmul.f32 %v3868_v34, %v4128_v46  ;;  %v1880_v6 = vadd.f32 %v1848_v13, %v1812_v28  ;;  %3331 = vpow2.f32 %v3026_v56  ;;  %v2080_v38 = vadd.f32 1.0, %v3320_v16  ;;  %v4322_v40 = vld [vmem:[#allocation2 + $0xe8] sm:$0xff] }
 0x151   : > { %v3027_v36 = vmul.f32 -1.442695, %v4283_v51  ;;  %v1333_v54 = vadd.f32 %v1301_v12, %v1233_v27  ;;  %v1918_v60 = vmul.f32 %v4087_v2, %v1879_v48  ;;  %3333 = vpow2.f32 %v3005_v3  ;;  %v4338_v13 = vld [vmem:[#allocation2 + $0x108] sm:$0xff] }
 0x152   : > { %v1303_v7 = vmul.f32 %v3873_v58, %v4286_v50  ;;  %v1369_v19 = vmul.f32 %v3877_v59, %v4286_v50  ;;  %3335 = vrcp.f32 %v991_v29  ;;  %v989_v46 = vadd.f32 1.0, %v4225_v44 }
 0x153   : > { %v1473_v41 = vmul.f32 %v3898_v15, %v4152_v33  ;;  %3337 = vpow2.f32 %v3027_v36  ;;  %v4309_v32 = vmul.f32 -1.442695, %v4289_v23  ;;  %v4312_v61 = vadd.f32 %v3763_v21, %v828_v18  ;;  %v3322_v42 = vpop.eup %3321 }
 0x154   : > { %v1919_v62 = vmul.f32 %v4087_v2, %v1880_v6  ;;  %v1371_v17 = vmul.f32 %v3877_v59, %v4299_v43  ;;  %v1335_v22 = vadd.f32 %v1303_v7, %v1235_v49  ;;  %v1401_v37 = vadd.f32 %v1369_v19, %v1333_v54  ;;  %v4349_v6 = vld [vmem:[#allocation2 + $0xef] sm:$0xff] }
 0x155   : > { %3339 = vrcp.f32 %v2080_v38  ;;  %v1475_v44 = vmul.f32 %v3898_v15, %v4188_v10  ;;  %v4320_v33 = vadd.f32 %v4107_v14, %v1918_v60  ;;  %v4325_v1 = vadd.f32 %v3763_v21, %v826_v45  ;;  %v5556_v54 = vld [vmem:[#allocation16_spill] sm:$0xff] }
 0x156   : > { %v3324_v55 = vpop.eup %3323  ;;  %v1541_v3 = vmul.f32 %v3932_v53, %v4188_v10  ;;  %v1403_v30 = vadd.f32 %v1371_v17, %v1335_v22  ;;  %v1505_v28 = vadd.f32 %v1473_v41, %v1401_v37  ;;  %3341 = vrcp.f32 %v989_v46  ;;  %v4361_v17 = vld [vmem:[#allocation2 + $0x10f] sm:$0xff] }
 0x157   : > { %v3326_v11 = vpop.eup %3325  ;;  %v2081_v56 = vadd.f32 1.0, %v3322_v42  ;;  %v1236_v12 = vmul.f32 %v3868_v34, %v4183_v5  ;;  %v1302_v27 = vmul.f32 %v3873_v58, %v4183_v5  ;;  %v1234_v48 = vmul.f32 %v3868_v34, %v4173_v4 }
 0x158   : > { %v3328_v21 = vpop.eup %3327  ;;  %v4336_v16 = vadd.f32 %v4107_v14, %v1919_v62  ;;  %v1507_v10 = vadd.f32 %v1475_v44, %v1403_v30  ;;  %v1543_v29 = vmul.f32 %v3932_v53, %v4322_v40  ;;  %v1573_v18 = vadd.f32 %v1541_v3, %v1505_v28 }
 0x159   : > { %v3330_v63 = vpop.eup %3329  ;;  %v1476_v45 = vmul.f32 %v3898_v15, %v4215_v35  ;;  %v1715_v5 = vmul.f32 %v3937_v24, %v4255_v25  ;;  %v3028_v4 = vmul.f32 -1.442695, %v4320_v33  ;;  %v1609_v49 = vmul.f32 %v3942_v57, %v4322_v40 }
 0x15a   : > { %v3332_v36 = vpop.eup %3331  ;;  %v4352_v38 = vmul.f32 %v3324_v55, %v4123_v0  ;;  %v4355_v60 = vmul.f32 %v3326_v11, %v5556_v54  ;;  %v1781_v7 = vmul.f32 %v4008_v8, %v4255_v25  ;;  %v1575_v19 = vadd.f32 %v1543_v29, %v1507_v10  ;;  %v5560_v10 = vld [vmem:[#allocation20_spill] sm:$0xff] }
 0x15b   : > { %v3334_v46 = vpop.eup %3333  ;;  %v2082_v41 = vadd.f32 1.0, %v3328_v21  ;;  %3343 = vrcp.f32 %v2081_v56  ;;  %v1611_v42 = vmul.f32 %v3942_v57, %v4338_v13  ;;  %v1641_v62 = vadd.f32 %v1609_v49, %v1573_v18  ;;  %v5558_v56 = vld [vmem:[#allocation17_spill] sm:$0xff] }
 0x15c   : > { %5555 = vst [vmem:[#allocation4_spill] sm:$0xff] %v4352_v38  ;;  %5557 = vst [vmem:[#allocation16_spill] sm:$0xff] %v4355_v60  ;;  %v3336_v22 = vpop.eup %3335  ;;  %v1334_v37 = vadd.f32 %v1302_v27, %v1234_v48  ;;  %v1713_v0 = vmul.f32 %v3937_v24, %v4217_v9  ;;  %v3029_v44 = vmul.f32 -1.442695, %v4336_v16  ;;  %v1304_v25 = vmul.f32 %v3873_v58, %v4349_v6 }
 0x15d   : > { %v3338_v55 = vpop.eup %3337  ;;  %3345 = vpow2.f32 %v3028_v4  ;;  %v2083_v3 = vadd.f32 1.0, %v3332_v36  ;;  %v1643_v30 = vadd.f32 %v1611_v42, %v1575_v19  ;;  %v1370_v28 = vmul.f32 %v3877_v59, %v4349_v6 }
 0x15e   : > { %v2206_v11 = vsel %vm1101_vm2, %v4355_v60, 0.0  ;;  %v4373_v27 = vmul.f32 %v3330_v63, %v5558_v56  ;;  %v1372_v9 = vmul.f32 %v3877_v59, %v4361_v17  ;;  %v1336_v48 = vadd.f32 %v1304_v25, %v1236_v12  ;;  %v4381_v63 = vld [vmem:[#allocation2 + $0xe9] sm:$0xff] }
 0x15f   : > { %v3340_v21 = vpop.eup %3339  ;;  %3347 = vrcp.f32 %v2082_v41  ;;  %v1474_v29 = vmul.f32 %v3898_v15, %v5560_v10  ;;  %v1745_v18 = vadd.f32 %v1713_v0, %v1641_v62  ;;  %v1402_v4 = vadd.f32 %v1370_v28, %v1334_v37  ;;  %v5561_v41 = vld [vmem:[#allocation18_spill] sm:$0xff]  ;;  %v4390_v10 = vld [vmem:[#allocation2 + $0xf0] sm:$0xff] }
 0x160   : > { %5559 = vst [vmem:[#allocation17_spill] sm:$0xff] %v4373_v27  ;;  %v3342_v49 = vpop.eup %3341  ;;  %v2205_v36 = vsel %vm1101_vm2, %v4352_v38, 0.0  ;;  %3349 = vpow2.f32 %v3029_v44  ;;  %v2084_v54 = vadd.f32 1.0, %v3338_v55  ;;  %v1404_v19 = vadd.f32 %v1372_v9, %v1336_v48  ;;  %v5563_v0 = vld [vmem:[#allocation10_spill] sm:$0xff]  ;;  %v4397_v9 = vld [vmem:[#allocation2 + $0x109] sm:$0xff] }
 0x161   : > { %v2207_v42 = vadd.f32 %v2206_v11, %v2205_v36  ;;  %3351 = vrcp.f32 %v2083_v3  ;;  %v1747_v56 = vadd.f32 %v1715_v5, %v1643_v30  ;;  %v3008_v12 = vmul.f32 -1.442695, %v4312_v61  ;;  %v5564_v11 = vld [vmem:[#allocation12_spill] sm:$0xff] }
 0x162   : > { %v4385_v25 = vmul.f32 %v3340_v21, %v5561_v41  ;;  %v2208_v62 = vsel %vm1101_vm2, %v4373_v27, 0.0  ;;  %v1506_v37 = vadd.f32 %v1474_v29, %v1402_v4  ;;  %v1087_v28 = vmul.f32 %v3336_v22, %v5563_v0 }
 0x163   : > { %v1783_v44 = vmul.f32 %v4008_v8, %v4381_v63  ;;  %v1813_v55 = vadd.f32 %v1781_v7, %v1745_v18  ;;  %v1085_v3 = vmul.f32 %v3342_v49, %v5564_v11  ;;  %v992_v5 = vadd.f32 1.0, %v3334_v46  ;;  %v4409_v49 = vld [vmem:[#allocation2 + $0x110] sm:$0xff] }
 0x164   : > { %5562 = vst [vmem:[#allocation20_spill] sm:$0xff] %v4385_v25  ;;  %v1542_v30 = vmul.f32 %v3932_v53, %v4215_v35  ;;  %3353 = vrcp.f32 %v2084_v54  ;;  %v1508_v48 = vadd.f32 %v1476_v45, %v1404_v19  ;;  %1166 = vst.msk [vmem:[#allocation2 + $0x148] sm:$0xff] %vm1101_vm2, %v1087_v28  ;;  %v3006_v22 = vmul.f32 -1.442695, %v4325_v1  ;;  %v5565_v19 = vld [vmem:[#allocation21_spill] sm:$0xff] }
 0x165   : > { %v3344_v21 = vpop.eup %3343  ;;  %v2209_v29 = vadd.f32 %v2208_v62, %v2207_v42  ;;  %v1815_v4 = vadd.f32 %v1783_v44, %v1747_v56  ;;  %v1849_v7 = vmul.f32 %v4020_v47, %v4381_v63  ;;  %1164 = vst.msk [vmem:[#allocation2 + $0x128] sm:$0xff] %vm1101_vm2, %v1085_v3  ;;  %3355 = vpow2.f32 %v4309_v32 }
 0x166   : > { %v2210_v35 = vsel %vm1101_vm2, %v4385_v25, 0.0  ;;  %v1544_v45 = vmul.f32 %v3932_v53, %v4390_v10  ;;  %v1574_v46 = vadd.f32 %v1542_v30, %v1506_v37  ;;  %3357 = vrcp.f32 %v992_v5 }
 0x167   : > { %v3346_v18 = vpop.eup %3345  ;;  %v1851_v36 = vmul.f32 %v4020_v47, %v4397_v9  ;;  %v1881_v54 = vadd.f32 %v1849_v7, %v1813_v55  ;;  %3359 = vpow2.f32 %v3008_v12  ;;  %v4414_v42 = vmul.f32 %v3344_v21, %v5565_v19 }
 0x168   : > { %v1576_v32 = vadd.f32 %v1544_v45, %v1508_v48  ;;  %v1610_v56 = vmul.f32 %v3942_v57, %v4390_v10  ;;  %3361 = vpow2.f32 %v3006_v22  ;;  %v2211_v62 = vadd.f32 %v2210_v35, %v2209_v29  ;;  %v5569_v35 = vld [vmem:[#allocation6_spill] sm:$0xff] }
 0x169   : > { %5566 = vst [vmem:[#allocation18_spill] sm:$0xff] %v4414_v42  ;;  %v3348_v41 = vpop.eup %3347  ;;  %v1716_v37 = vmul.f32 %v3937_v24, %v4267_v31  ;;  %v1782_v0 = vmul.f32 %v4008_v8, %v4267_v31  ;;  %v1883_v28 = vadd.f32 %v1851_v36, %v1815_v4  ;;  %v1714_v12 = vmul.f32 %v3937_v24, %v4239_v26  ;;  %v4434_v31 = vld [vmem:[%s5495_s2] ss:$0 sm:$0xff]  ;;  %v5567_v26 = vld [vmem:[#allocation5_spill] sm:$0xff] }
 0x16a   : > { %v3350_v44 = vpop.eup %3349  ;;  %v2085_v55 = vadd.f32 1.0, %v3346_v18  ;;  %v1612_v11 = vmul.f32 %v3942_v57, %v4409_v49  ;;  %v1642_v3 = vadd.f32 %v1610_v56, %v1574_v46  ;;  %v1305_v30 = vmul.f32 %v3873_v58, %v4299_v43  ;;  %v5570_v36 = vld [vmem:[#allocation7_spill] sm:$0xff] }
 0x16b   : > { %v3352_v5 = vpop.eup %3351  ;;  %v1237_v48 = vmul.f32 %v3868_v34, %v4286_v50  ;;  %v1920_v22 = vmul.f32 %v4087_v2, %v1881_v54  ;;  %v829_v21 = vmul.f32 %v4434_v31, %v5567_v26  ;;  %v4439_v29 = vmul.f32 %v3348_v41, %v4237_v52 }
 0x16c   : > { %v2212_v4 = vsel %vm1101_vm2, %v4414_v42, 0.0  ;;  %v1644_v7 = vadd.f32 %v1612_v11, %v1576_v32  ;;  %v827_v50 = vmul.f32 %v4434_v31, %v5569_v35  ;;  %v2086_v46 = vadd.f32 1.0, %v3350_v44  ;;  %v4455_v32 = vld [vmem:[#allocation2 + $0xf1] sm:$0xff] }
 0x16d   : > { %5568 = vst [vmem:[#allocation10_spill] sm:$0xff] %v4439_v29  ;;  %v2213_v45 = vadd.f32 %v2212_v4, %v2211_v62  ;;  %v1922_v18 = vmul.f32 %v4087_v2, %v1883_v28  ;;  %v832_v54 = vmul.f32 %v4434_v31, %v5570_v36  ;;  %3363 = vrcp.f32 %v2085_v55  ;;  %v4487_v36 = vld [vmem:[#allocation2 + $0x127] sm:$0xff] }
 0x16e   : > { %v3354_v19 = vpop.eup %3353  ;;  %v4449_v56 = vmul.f32 %v3352_v5, %v4262_v39  ;;  %v4453_v52 = vmul.f32 %v3868_v34, %v4299_v43  ;;  %v1746_v41 = vadd.f32 %v1714_v12, %v1642_v3  ;;  %v4459_v62 = vmul.f32 %v3898_v15, %v4338_v13 }
 0x16f   : > { %v3356_v11 = vpop.eup %3355  ;;  %v4463_v28 = vmul.f32 %v3932_v53, %v4338_v13  ;;  %v1337_v44 = vadd.f32 %v1305_v30, %v1237_v48  ;;  %v4466_v39 = vadd.f32 %v4107_v14, %v1920_v22  ;;  %v2214_v43 = vsel %vm1101_vm2, %v4439_v29, 0.0 }
 0x170   : > { %5571 = vst [vmem:[#allocation12_spill] sm:$0xff] %v4449_v56  ;;  %v3358_v55 = vpop.eup %3357  ;;  %v4472_v12 = vmul.f32 %v3898_v15, %v4322_v40  ;;  %v4476_v3 = vmul.f32 %v3868_v34, %v4361_v17  ;;  %v1748_v5 = vadd.f32 %v1716_v37, %v1644_v7  ;;  %3365 = vrcp.f32 %v2086_v46  ;;  %v4492_v37 = vld [vmem:[%s5496_s3] ss:$0 sm:$0xff] }
 0x171   : > { %v3360_v26 = vpop.eup %3359  ;;  %v2215_v13 = vadd.f32 %v2214_v43, %v2213_v45  ;;  %v1784_v30 = vmul.f32 %v4008_v8, %v4455_v32  ;;  %v4481_v48 = vadd.f32 %v4107_v14, %v1922_v18  ;;  %v2216_v4 = vsel %vm1101_vm2, %v4449_v56, 0.0  ;;  %v1680_v45 = vld [vmem:[#allocation2 + $0x111] sm:$0xff] }
 0x172   : > { %v3362_v22 = vpop.eup %3361  ;;  %v1814_v40 = vadd.f32 %v1782_v0, %v1746_v41  ;;  %v1850_v35 = vmul.f32 %v4020_v47, %v4455_v32  ;;  %v4495_v7 = vadd.f32 %v4492_v37, %v829_v21  ;;  %v3030_v46 = vmul.f32 -1.442695, %v4466_v39 }
 0x173   : > { %v1088_v18 = vmul.f32 %v3358_v55, %v4253_v20  ;;  %v990_v43 = vadd.f32 1.0, %v3356_v11  ;;  %v4500_v0 = vadd.f32 %v4492_v37, %v827_v50  ;;  %v4503_v41 = vmul.f32 %v3354_v19, %v4283_v51 }
 0x174   : > { %v1816_v56 = vadd.f32 %v1784_v30, %v1748_v5  ;;  %v995_v29 = vadd.f32 1.0, %v3360_v26  ;;  %v4506_v42 = vadd.f32 %v4492_v37, %v832_v54  ;;  %v3032_v21 = vmul.f32 -1.442695, %v4481_v48 }
 0x175   : > { %5572 = vst [vmem:[#allocation21_spill] sm:$0xff] %v4503_v41  ;;  %v1373_v25 = vmul.f32 %v3877_v59, %v4487_v36  ;;  %1167 = vst.msk [vmem:[#allocation2 + $0x150] sm:$0xff] %vm1101_vm2, %v1088_v18  ;;  %3367 = vrcp.f32 %v990_v43  ;;  %v993_v20 = vadd.f32 1.0, %v3362_v22  ;;  %v1852_v50 = vmul.f32 %v4020_v47, %v1680_v45 }
 0x176   : > { %v1882_v11 = vadd.f32 %v1850_v35, %v1814_v40  ;;  %3369 = vrcp.f32 %v995_v29  ;;  %v3009_v51 = vmul.f32 -1.442695, %v4495_v7  ;;  %v1306_v19 = vmul.f32 %v3873_v58, %v4361_v17 }
 0x177   : > { %v1307_v54 = vmul.f32 %v3873_v58, %v4487_v36  ;;  %3371 = vrcp.f32 %v993_v20  ;;  %v3007_v55 = vmul.f32 -1.442695, %v4500_v0  ;;  %v3364_v5 = vpop.eup %3363  ;;  %v2217_v26 = vadd.f32 %v2216_v4, %v2215_v13  ;;  %v1203_v4 = vld [vmem:[#allocation2 + $0x147] sm:$0xff] }
 0x178   : > { %v1884_v30 = vadd.f32 %v1852_v50, %v1816_v56  ;;  %3373 = vpow2.f32 %v3030_v46  ;;  %v3012_v22 = vmul.f32 -1.442695, %v4506_v42  ;;  %v2218_v29 = vsel %vm1101_vm2, %v4503_v41, 0.0 }
 0x179   : > { %v4524_v40 = vmul.f32 %v3898_v15, %v4409_v49  ;;  %3375 = vpow2.f32 %v3032_v21  ;;  %v1405_v17 = vadd.f32 %v1373_v25, %v1337_v44  ;;  %v4528_v35 = vmul.f32 %v3932_v53, %v4409_v49 }
 0x17a   : > { %v1238_v13 = vmul.f32 %v3868_v34, %v4349_v6  ;;  %v1921_v56 = vmul.f32 %v4087_v2, %v1882_v11  ;;  %3377 = vpow2.f32 %v3009_v51  ;;  %v3366_v46 = vpop.eup %3365  ;;  %v4534_v18 = vmul.f32 %v3364_v5, %v4320_v33  ;;  %v1443_v5 = vld [vmem:[#allocation2 + $0x148] sm:$0xff] }
 0x17b   : > { %v4538_v43 = vmul.f32 %v3937_v24, %v4397_v9  ;;  %v1339_v25 = vadd.f32 %v1307_v54, %v4453_v52  ;;  %3379 = vpow2.f32 %v3007_v55  ;;  %v2219_v49 = vadd.f32 %v2218_v29, %v2217_v26  ;;  %v1441_v26 = vld [vmem:[#allocation2 + $0x128] sm:$0xff] }
 0x17c   : > { %5573 = vst [vmem:[#allocation5_spill] sm:$0xff] %v4534_v18  ;;  %v4542_v44 = vmul.f32 %v3937_v24, %v1680_v45  ;;  %v1923_v6 = vmul.f32 %v4087_v2, %v1884_v30  ;;  %3381 = vpow2.f32 %v3012_v22  ;;  %v4547_v21 = vmul.f32 %v4008_v8, %v4397_v9  ;;  %v5575_v22 = vld [vmem:[#allocation8_spill] sm:$0xff] }
 0x17d   : > { %v4550_v33 = vmul.f32 %v4008_v8, %v1680_v45  ;;  %v1375_v20 = vmul.f32 %v3877_v59, %v1203_v4  ;;  %v1509_v50 = vadd.f32 %v4472_v12, %v1405_v17  ;;  %v4555_v52 = vmul.f32 %v3366_v46, %v4336_v16 }
 0x17e   : > { %v4557_v11 = vadd.f32 %v1306_v19, %v1238_v13  ;;  %v4561_v2 = vmul.f32 %v3898_v15, %v4390_v10  ;;  %v4564_v51 = vadd.f32 %v4107_v14, %v1921_v56  ;;  %v2220_v45 = vsel %vm1101_vm2, %v4534_v18, 0.0 }
 0x17f   : > { %5574 = vst [vmem:[#allocation6_spill] sm:$0xff] %v4555_v52  ;;  %v3368_v9 = vpop.eup %3367  ;;  %v1717_v54 = vmul.f32 %v3937_v24, %v4381_v63  ;;  %v4572_v16 = vmul.f32 %v3937_v24, %v4455_v32  ;;  %v1407_v12 = vadd.f32 %v1375_v20, %v1339_v25  ;;  %v2221_v55 = vadd.f32 %v2220_v45, %v2219_v49 }
 0x180   : > { %v3370_v19 = vpop.eup %3369  ;;  %v4575_v10 = vadd.f32 %v4107_v14, %v1923_v6  ;;  %v1086_v30 = vmul.f32 %v3368_v9, %v4289_v23  ;;  %v830_v29 = vmul.f32 %v4434_v31, %v5575_v22  ;;  %v4581_v63 = vmul.f32 %v3868_v34, %v1203_v4 }
 0x181   : > { %v3372_v17 = vpop.eup %3371  ;;  %v1309_v32 = vmul.f32 %v3873_v58, %v1203_v4  ;;  %v1577_v13 = vadd.f32 %v4463_v28, %v1509_v50  ;;  %v1091_v56 = vmul.f32 %v3370_v19, %v4312_v61  ;;  %v2222_v14 = vsel %vm1101_vm2, %v4555_v52, 0.0  ;;  %v5578_v52 = vld [vmem:[#allocation13_spill] sm:$0xff] }
 0x182   : > { %v3374_v46 = vpop.eup %3373  ;;  %v3031_v25 = vmul.f32 -1.442695, %v4564_v51  ;;  %v1241_v23 = vmul.f32 %v3868_v34, %v4487_v36  ;;  %1165 = vst.msk [vmem:[#allocation2 + $0x130] sm:$0xff] %vm1101_vm2, %v1086_v30  ;;  %v1089_v49 = vmul.f32 %v3372_v17, %v4325_v1  ;;  %v4594_v4 = vmul.f32 %v3898_v15, %v1443_v5 }
 0x183   : > { %v3376_v6 = vpop.eup %3375  ;;  %v4597_v28 = vmul.f32 %v3932_v53, %v1443_v5  ;;  %v1511_v61 = vadd.f32 %v4459_v62, %v1407_v12  ;;  %v1613_v20 = vmul.f32 %v3942_v57, %v1441_v26  ;;  %1170 = vst.msk [vmem:[#allocation2 + $0x188] sm:$0xff] %vm1101_vm2, %v1091_v56  ;;  %v3033_v36 = vmul.f32 -1.442695, %v4575_v10  ;;  %v5576_v12 = vld [vmem:[#allocation9_spill] sm:$0xff] }
 0x184   : > { %v3378_v50 = vpop.eup %3377  ;;  %v4603_v9 = vadd.f32 %v2222_v14, %v2221_v55  ;;  %v1615_v1 = vmul.f32 %v3942_v57, %v1443_v5  ;;  %1168 = vst.msk [vmem:[#allocation2 + $0x168] sm:$0xff] %vm1101_vm2, %v1089_v49  ;;  %v4608_v19 = vmul.f32 %v3898_v15, %v1441_v26  ;;  %v1547_v30 = vmul.f32 %v3932_v53, %v1441_v26  ;;  %v2275_v55 = vld [vmem:[%s5500_s7] sm:$0xff]  ;;  %v2276_v5 = vld [vmem:[%s5500_s7 + $0x8] sm:$0xff] }
 0x185   : > { %v3380_v45 = vpop.eup %3379  ;;  %v1645_v62 = vadd.f32 %v1613_v20, %v1577_v13  ;;  %v833_v22 = vmul.f32 %v4434_v31, %v5576_v12  ;;  %v3538_v17 = vmov 0.0|0.0   ;;  %3383 = vpow2.f32 %v3031_v25  ;;  %v5577_v26 = vld [vmem:[#allocation11_spill] sm:$0xff] }
 0x186   : > { %3197 = vmatprep.subr.bf16.mxu0 %v3538_v17  ;;  %v3382_v56 = vpop.eup %3381  ;;  %v4619_v14 = vadd.f32 %v1309_v32, %v1241_v23  ;;  %v996_v49 = vadd.f32 1.0, %v3378_v50  ;;  %v831_v13 = vmul.f32 %v4434_v31, %v5577_v26  ;;  %v1579_v20 = vadd.f32 %v1547_v30, %v1511_v61  ;;  %v1204_v32 = vld [vmem:[#allocation2 + $0x14f] sm:$0xff] }
 0x187   : > { %v994_v12 = vadd.f32 1.0, %v3380_v45  ;;  %v4624_v17 = vadd.f32 %v4492_v37, %v830_v29  ;;  %v836_v18 = vmul.f32 %v4434_v31, %v5578_v52  ;;  %3385 = vpow2.f32 %v3033_v36 }
 0x188   : > { %v999_v41 = vadd.f32 1.0, %v3382_v56  ;;  %v3198_v27 = vpack.c.bf16 %v2276_v5, %v2275_v55  ;;  %v2087_v60 = vadd.f32 1.0, %v3374_v46  ;;  %v2089_v38 = vadd.f32 1.0, %v3376_v6  ;;  %v5582_v5 = vld [vmem:[#allocation14_spill] sm:$0xff] }
 0x189   : > { %v1749_v25 = vadd.f32 %v1717_v54, %v1645_v62  ;;  %v4628_v23 = vld [vmem:[#allocation2 + $0x12f] sm:$0xff]  ;;  %v4631_v50 = vadd.f32 %v4492_v37, %v833_v22  ;;  %v5579_v61 = vmov 0.0   ;;  %3387 = vrcp.f32 %v996_v49 }
 0x18a   : > { %3155 = vmatprep.mubr.msk.f32.mxu0 %vm3539_vm3, %v5579_v61  ;;  %3160 = vmatprep.mubr.msk.f32.mxu1 %vm3539_vm3, %v5579_v61  ;;  %v1308_v52 = vmul.f32 %v3873_v58, %v4628_v23  ;;  %v1374_v29 = vmul.f32 %v3877_v59, %v4628_v23  ;;  %v4640_v54 = vadd.f32 %v4492_v37, %v831_v13  ;;  %3389 = vrcp.f32 %v994_v12  ;;  %v4649_v22 = vld [vmem:[#allocation2 + $0x129] sm:$0xff] }
 0x18b   : > { %3199 = vmatpush3.bf16.msra.mxu0 %v3198_v27  ;;  %v1647_v46 = vadd.f32 %v1615_v1, %v1579_v20  ;;  %v3010_v6 = vmul.f32 -1.442695, %v4624_v17  ;;  %v4644_v36 = vadd.f32 %v4492_v37, %v836_v18  ;;  %v1376_v45 = vmul.f32 %v3877_v59, %v1204_v32  ;;  %v4651_v55 = vld [vmem:[#allocation2 + $0x130] sm:$0xff] }
 0x18c   : > { %5580 = vst [vmem:[#allocation7_spill] sm:$0xff] %v4640_v54  ;;  %v1340_v30 = vadd.f32 %v1308_v52, %v4476_v3  ;;  %v1406_v62 = vadd.f32 %v1374_v29, %v4557_v11  ;;  %3391 = vrcp.f32 %v999_v41  ;;  %v1817_v27 = vadd.f32 %v4547_v21, %v1749_v25  ;;  %v1444_v11 = vld [vmem:[#allocation2 + $0x150] sm:$0xff]  ;;  %v4671_v25 = vld [vmem:[#allocation2 + $0x167] sm:$0xff] }
 0x18d   : > { %5581 = vst [vmem:[#allocation8_spill] sm:$0xff] %v4644_v36  ;;  %3393 = vrcp.f32 %v2087_v60  ;;  %v3013_v1 = vmul.f32 -1.442695, %v4631_v50  ;;  %v834_v18 = vmul.f32 %v4434_v31, %v5582_v5  ;;  %v3011_v3 = vmul.f32 -1.442695, %v4640_v54  ;;  %v1683_v29 = vld [vmem:[#allocation2 + $0x149] sm:$0xff] }
 0x18e   : > { %3395 = vrcp.f32 %v2089_v38  ;;  %v1408_v56 = vadd.f32 %v1376_v45, %v1340_v30  ;;  %v1510_v49 = vadd.f32 %v4561_v2, %v1406_v62  ;;  %v1751_v26 = vadd.f32 %v4538_v43, %v1647_v46 }
 0x18f   : > { %v1853_v60 = vmul.f32 %v4020_v47, %v4649_v22  ;;  %3397 = vpow2.f32 %v3010_v6  ;;  %v3016_v41 = vmul.f32 -1.442695, %v4644_v36  ;;  %v3384_v21 = vpop.eup %3383  ;;  %v1548_v38 = vmul.f32 %v3932_v53, %v4651_v55 }
 0x190   : > { %v1512_v13 = vadd.f32 %v4524_v40, %v1408_v56  ;;  %v1578_v20 = vadd.f32 %v4528_v35, %v1510_v49  ;;  %v1614_v2 = vmul.f32 %v3942_v57, %v4651_v55  ;;  %v1787_v43 = vmul.f32 %v4008_v8, %v4649_v22  ;;  %v4677_v35 = vld [vmem:[#allocation2 + $0x131] sm:$0xff] }
 0x191   : > { %v1885_v12 = vadd.f32 %v1853_v60, %v1817_v27  ;;  %3399 = vpow2.f32 %v3013_v1  ;;  %v4674_v61 = vadd.f32 %v4492_v37, %v834_v18  ;;  %v3386_v52 = vpop.eup %3385  ;;  %v1616_v40 = vmul.f32 %v3942_v57, %v1444_v11  ;;  %v4686_v18 = vld [vmem:[%s5498_s5] ss:$0 sm:$0xff] }
 0x192   : > { %v1580_v46 = vadd.f32 %v1548_v38, %v1512_v13  ;;  %v1646_v6 = vadd.f32 %v1614_v2, %v1578_v20  ;;  %3401 = vpow2.f32 %v3011_v3  ;;  %v2088_v45 = vadd.f32 1.0, %v3384_v21 }
 0x193   : > { %v4680_v30 = vmul.f32 %v3868_v34, %v1204_v32  ;;  %v1819_v62 = vadd.f32 %v1787_v43, %v1751_v26  ;;  %3403 = vpow2.f32 %v3016_v41  ;;  %v3388_v27 = vpop.eup %3387  ;;  %v1924_v56 = vmul.f32 %v4686_v18, %v1885_v12  ;;  %v1684_v41 = vld [vmem:[#allocation2 + $0x151] sm:$0xff] }
 0x194   : > { %v1648_v1 = vadd.f32 %v1616_v40, %v1580_v46  ;;  %v1750_v5 = vadd.f32 %v4572_v16, %v1646_v6  ;;  %v1377_v49 = vmul.f32 %v3877_v59, %v4671_v25  ;;  %v3390_v3 = vpop.eup %3389  ;;  %v4692_v60 = vmul.f32 %v3873_v58, %v1204_v32 }
 0x195   : > { %v4695_v26 = vmul.f32 %v3898_v15, %v1444_v11  ;;  %v1855_v16 = vmul.f32 %v4020_v47, %v1683_v29  ;;  %v1788_v21 = vmul.f32 %v4008_v8, %v4677_v35  ;;  %v1311_v2 = vmul.f32 %v3873_v58, %v4671_v25 }
 0x196   : > { %v3392_v13 = vpop.eup %3391  ;;  %v1752_v38 = vadd.f32 %v4542_v44, %v1648_v1  ;;  %v1818_v20 = vadd.f32 %v4550_v33, %v1750_v5  ;;  %v1409_v32 = vadd.f32 %v1377_v49, %v4619_v14  ;;  %v2090_v12 = vadd.f32 1.0, %v3386_v52  ;;  %v4711_v44 = vld [vmem:[%s5499_s6] ss:$0 sm:$0xff]  ;;  %v4717_v1 = vld [vmem:[#allocation2 + $0x187] sm:$0xff] }
 0x197   : > { %v3394_v43 = vpop.eup %3393  ;;  %3405 = vrcp.f32 %v2088_v45  ;;  %v1854_v40 = vmul.f32 %v4020_v47, %v4677_v35  ;;  %v1887_v46 = vadd.f32 %v1855_v16, %v1819_v62  ;;  %v1856_v36 = vmul.f32 %v4020_v47, %v1684_v41 }
 0x198   : > { %v3396_v6 = vpop.eup %3395  ;;  %v1820_v54 = vadd.f32 %v1788_v21, %v1752_v38  ;;  %v4714_v33 = vadd.f32 %v4711_v44, %v1924_v56  ;;  %v1513_v14 = vadd.f32 %v4608_v19, %v1409_v32  ;;  %v1092_v62 = vmul.f32 %v3388_v27, %v4495_v7  ;;  %v1217_v27 = vld [vmem:[#allocation2 + $0x227] sm:$0xff] }
 0x199   : > { %v3398_v52 = vpop.eup %3397  ;;  %v1886_v45 = vadd.f32 %v1854_v40, %v1818_v20  ;;  %v1090_v5 = vmul.f32 %v3390_v3, %v4500_v0  ;;  %v1095_v49 = vmul.f32 %v3392_v13, %v4506_v42  ;;  %v4723_v16 = vmul.f32 %v3932_v53, %v1444_v11  ;;  %v4739_v11 = vld [vmem:[#allocation2 + $0x168] sm:$0xff] }
 0x19a   : > { %v4726_v21 = vmul.f32 %v3937_v24, %v1683_v29  ;;  %v4729_v56 = vmul.f32 %v3937_v24, %v1684_v41  ;;  %v1343_v19 = vadd.f32 %v1311_v2, %v4581_v63  ;;  %v4733_v20 = vmul.f32 %v4008_v8, %v1683_v29  ;;  %1171 = vst.msk [vmem:[#allocation2 + $0x190] sm:$0xff] %vm1101_vm2, %v1092_v62 }
 0x19b   : > { %v3400_v38 = vpop.eup %3399  ;;  %v4736_v7 = vmul.f32 %v4008_v8, %v1684_v41  ;;  %v1888_v0 = vadd.f32 %v1856_v36, %v1820_v54  ;;  %v1926_v42 = vmul.f32 %v4686_v18, %v1887_v46  ;;  %1169 = vst.msk [vmem:[#allocation2 + $0x170] sm:$0xff] %vm1101_vm2, %v1090_v5  ;;  %1174 = vst.msk [vmem:[#allocation2 + $0x1c8] sm:$0xff] %vm1101_vm2, %v1095_v49  ;;  %3407 = vrcp.f32 %v2090_v12  ;;  %v5586_v49 = vld [vmem:[#allocation19_spill] sm:$0xff] }
 0x19c   : > { %v3402_v63 = vpop.eup %3401  ;;  %v3034_v29 = vmul.f32 -1.442695, %v4714_v33  ;;  %v1379_v3 = vmul.f32 %v3877_v59, %v4717_v1  ;;  %v1581_v54 = vadd.f32 %v4597_v28, %v1513_v14  ;;  %v4749_v41 = vmul.f32 %v3394_v43, %v4466_v39  ;;  %v5585_v43 = vld [vmem:[#allocation15_spill] sm:$0xff] }
 0x19d   : > { %v3404_v36 = vpop.eup %3403  ;;  %v1925_v13 = vmul.f32 %v4686_v18, %v1886_v45  ;;  %v997_v2 = vadd.f32 1.0, %v3398_v52  ;;  %v3014_v32 = vmul.f32 -1.442695, %v4674_v61  ;;  %v1617_v12 = vmul.f32 %v3942_v57, %v4739_v11 }
 0x19e   : > { %5583 = vst [vmem:[#allocation9_spill] sm:$0xff] %v4749_v41  ;;  %v1411_v40 = vadd.f32 %v1379_v3, %v1343_v19  ;;  %v1000_v46 = vadd.f32 1.0, %v3400_v38  ;;  %v4756_v62 = vmul.f32 %v3877_v59, %v1217_v27  ;;  %v1927_v5 = vmul.f32 %v4686_v18, %v1888_v0  ;;  %v1218_v3 = vld [vmem:[#allocation2 + $0x22f] sm:$0xff] }
 0x19f   : > { %v4760_v28 = vadd.f32 %v4711_v44, %v1926_v42  ;;  %v998_v39 = vadd.f32 1.0, %v3402_v63  ;;  %v837_v14 = vmul.f32 %v4434_v31, %v5585_v43  ;;  %3409 = vpow2.f32 %v3034_v29 }
 0x1a0   : > { %5584 = vst [vmem:[#allocation11_spill] sm:$0xff] %v4756_v62  ;;  %v1649_v52 = vadd.f32 %v1617_v12, %v1581_v54  ;;  %v1003_v45 = vadd.f32 1.0, %v3404_v36  ;;  %v835_v19 = vmul.f32 %v4434_v31, %v5586_v49  ;;  %v4767_v27 = vmul.f32 %v3396_v6, %v4481_v48  ;;  %v4799_v12 = vld [vmem:[#allocation2 + $0x188] sm:$0xff] }
 0x1a1   : > { %v3406_v38 = vpop.eup %3405  ;;  %v2224_v0 = vsel %vm1101_vm2, %v4749_v41, 0.0  ;;  %v4772_v42 = vadd.f32 %v4711_v44, %v1925_v13  ;;  %3411 = vrcp.f32 %v997_v2  ;;  %v1242_v63 = vmul.f32 %v3868_v34, %v4628_v23 }
 0x1a2   : > { %5587 = vst [vmem:[#allocation13_spill] sm:$0xff] %v4767_v27  ;;  %v1721_v29 = vmul.f32 %v3937_v24, %v4649_v22  ;;  %v1515_v31 = vadd.f32 %v4594_v4, %v1411_v40  ;;  %3413 = vrcp.f32 %v1000_v46  ;;  %v4780_v54 = vadd.f32 %v4711_v44, %v1927_v5  ;;  %v4788_v23 = vld [vmem:[#allocation2 + $0x16f] sm:$0xff] }
 0x1a3   : > { %v3036_v48 = vmul.f32 -1.442695, %v4760_v28  ;;  %3415 = vrcp.f32 %v998_v39  ;;  %v4784_v6 = vmul.f32 %v3877_v59, %v1218_v3  ;;  %v1551_v36 = vmul.f32 %v3932_v53, %v4739_v11  ;;  %v4815_v49 = vld [vmem:[#allocation2 + $0x169] sm:$0xff] }
 0x1a4   : > { %v1753_v13 = vadd.f32 %v1721_v29, %v1649_v52  ;;  %3417 = vrcp.f32 %v1003_v45  ;;  %v4791_v22 = vadd.f32 %v4492_v37, %v837_v14  ;;  %v2225_v4 = vadd.f32 %v2224_v0, %v4603_v9  ;;  %v4808_v52 = vld [vmem:[#allocation2 + $0x18f] sm:$0xff] }
 0x1a5   : > { %5588 = vst [vmem:[#allocation14_spill] sm:$0xff] %v4784_v6  ;;  %v4796_v2 = vsel %vm1101_vm2, %v4767_v27, 0.0  ;;  %v3035_v40 = vmul.f32 -1.442695, %v4772_v42  ;;  %v4802_v46 = vadd.f32 %v4492_v37, %v835_v19  ;;  %v3408_v5 = vpop.eup %3407  ;;  %v4805_v39 = vmul.f32 %v3406_v38, %v4564_v51  ;;  %v1457_v19 = vld [vmem:[#allocation2 + $0x228] sm:$0xff]  ;;  %v1458_v29 = vld [vmem:[#allocation2 + $0x230] sm:$0xff] }
 0x1a6   : > { %v1342_v43 = vadd.f32 %v4692_v60, %v1242_v63  ;;  %v1583_v14 = vadd.f32 %v1551_v36, %v1515_v31  ;;  %3419 = vpow2.f32 %v3014_v32  ;;  %v3037_v9 = vmul.f32 -1.442695, %v4780_v54  ;;  %v1697_v31 = vld [vmem:[#allocation2 + $0x229] sm:$0xff] }
 0x1a7   : > { %5589 = vst [vmem:[#allocation15_spill] sm:$0xff] %v4802_v46  ;;  %5590 = vst [vmem:[#allocation19_spill] sm:$0xff] %v4805_v39  ;;  %3421 = vpow2.f32 %v3036_v48  ;;  %v1312_v45 = vmul.f32 %v3873_v58, %v4788_v23  ;;  %v1378_v37 = vmul.f32 %v3877_v59, %v4788_v23  ;;  %v1482_v51 = vmul.f32 %v3898_v15, %v4651_v55  ;;  %v1698_v48 = vld [vmem:[#allocation2 + $0x231] sm:$0xff] }
 0x1a8   : > { %v1619_v60 = vmul.f32 %v3942_v57, %v4799_v12  ;;  %v1821_v32 = vadd.f32 %v4733_v20, %v1753_v13  ;;  %v4823_v3 = vmul.f32 -1.442695, %v4791_v22  ;;  %3423 = vpow2.f32 %v3035_v40  ;;  %v4828_v27 = vld [vmem:[#allocation2 + $0x170] sm:$0xff] }
 0x1a9   : > { %v1380_v38 = vmul.f32 %v3877_v59, %v4808_v52  ;;  %v1344_v0 = vadd.f32 %v1312_v45, %v4680_v30  ;;  %v1410_v63 = vadd.f32 %v1378_v37, %v1342_v43  ;;  %v3410_v36 = vpop.eup %3409  ;;  %v1857_v20 = vmul.f32 %v4020_v47, %v4815_v49  ;;  %v4840_v43 = vld [vmem:[#allocation2 + $0x190] sm:$0xff] }
 0x1aa   : > { %v1651_v55 = vadd.f32 %v1619_v60, %v1583_v14  ;;  %v4833_v13 = vmul.f32 -1.442695, %v4802_v46  ;;  %v4836_v40 = vmul.f32 %v3942_v57, %v1457_v19  ;;  %v2226_v30 = vsel %vm1101_vm2, %v4805_v39, 0.0 }
 0x1ab   : > { %v3412_v41 = vpop.eup %3411  ;;  %3425 = vpow2.f32 %v3037_v9  ;;  %v1412_v45 = vadd.f32 %v1380_v38, %v1344_v0  ;;  %v1514_v14 = vadd.f32 %v1482_v51, %v1410_v63  ;;  %v1889_v60 = vadd.f32 %v1857_v20, %v1821_v32  ;;  %v4862_v20 = vld [vmem:[#allocation2 + $0x171] sm:$0xff] }
 0x1ac   : > { %5591 = vst [vmem:[#allocation22_spill] sm:$0xff] %v4836_v40  ;;  %v3414_v37 = vpop.eup %3413  ;;  %v4843_v6 = vmul.f32 %v3942_v57, %v1458_v29  ;;  %v4846_v46 = vmul.f32 %v4020_v47, %v1697_v31  ;;  %v4849_v19 = vmul.f32 %v4020_v47, %v1698_v48  ;;  %v1552_v9 = vmul.f32 %v3932_v53, %v4828_v27 }
 0x1ad   : > { %v3416_v40 = vpop.eup %3415  ;;  %v1516_v62 = vadd.f32 %v4695_v26, %v1412_v45  ;;  %v1582_v38 = vadd.f32 %v4723_v16, %v1514_v14  ;;  %v1618_v51 = vmul.f32 %v3942_v57, %v4828_v27  ;;  %v2227_v0 = vadd.f32 %v2226_v30, %v2225_v4  ;;  %v5595_v30 = vld [vmem:[#allocation7_spill] sm:$0xff] }
 0x1ae   : > { %5592 = vst [vmem:[#allocation23_spill] sm:$0xff] %v4843_v6  ;;  %5593 = vst [vmem:[#allocation24_spill] sm:$0xff] %v4846_v46  ;;  %v3418_v32 = vpop.eup %3417  ;;  %v1722_v63 = vmul.f32 %v3937_v24, %v4677_v35  ;;  %v1620_v29 = vmul.f32 %v3942_v57, %v4840_v43  ;;  %v1755_v31 = vadd.f32 %v4726_v21, %v1651_v55  ;;  %v2091_v4 = vadd.f32 1.0, %v3410_v36  ;;  %v5596_v55 = vld [vmem:[#allocation8_spill] sm:$0xff] }
 0x1af   : > { %5594 = vst [vmem:[#allocation25_spill] sm:$0xff] %v4849_v19  ;;  %v1584_v48 = vadd.f32 %v1552_v9, %v1516_v62  ;;  %v1650_v26 = vadd.f32 %v1618_v51, %v1582_v38  ;;  %v1928_v45 = vmul.f32 %v4686_v18, %v1889_v60  ;;  %v1093_v16 = vmul.f32 %v3412_v41, %v4624_v17  ;;  %v1687_v41 = vld [vmem:[#allocation2 + $0x189] sm:$0xff] }
 0x1b0   : > { %v3420_v14 = vpop.eup %3419  ;;  %v4867_v39 = vmul.f32 %v3408_v5, %v4575_v10  ;;  %v1096_v35 = vmul.f32 %v3414_v37, %v4631_v50  ;;  %v1094_v19 = vmul.f32 %v3416_v40, %v5595_v30  ;;  %v1791_v62 = vmul.f32 %v4008_v8, %v4815_v49 }
 0x1b1   : > { %v3422_v6 = vpop.eup %3421  ;;  %v1652_v46 = vadd.f32 %v1620_v29, %v1584_v48  ;;  %v1754_v21 = vadd.f32 %v1722_v63, %v1650_v26  ;;  %1172 = vst.msk [vmem:[#allocation2 + $0x1a8] sm:$0xff] %vm1101_vm2, %v1093_v16  ;;  %v1099_v60 = vmul.f32 %v3418_v32, %v5596_v55  ;;  %v2229_v17 = vadd.f32 %v4796_v2, %v2227_v0  ;;  %v4905_v16 = vld [vmem:[#allocation2 + $0x1c7] sm:$0xff] }
 0x1b2   : > { %v1313_v10 = vmul.f32 %v3873_v58, %v4717_v1  ;;  %v1245_v50 = vmul.f32 %v3868_v34, %v4671_v25  ;;  %v1858_v5 = vmul.f32 %v4020_v47, %v4862_v20  ;;  %1175 = vst.msk [vmem:[#allocation2 + $0x1d0] sm:$0xff] %vm1101_vm2, %v1096_v35  ;;  %1173 = vst.msk [vmem:[#allocation2 + $0x1b0] sm:$0xff] %vm1101_vm2, %v1094_v19  ;;  %v3424_v36 = vpop.eup %3423  ;;  %v2230_v25 = vsel %vm1101_vm2, %v4867_v39, 0.0 }
 0x1b3   : > { %v1756_v40 = vadd.f32 %v4729_v56, %v1652_v46  ;;  %v1822_v37 = vadd.f32 %v4736_v7, %v1754_v21  ;;  %v1823_v2 = vadd.f32 %v1791_v62, %v1755_v31  ;;  %v4887_v9 = vadd.f32 %v4711_v44, %v1928_v45  ;;  %1178 = vst.msk [vmem:[#allocation2 + $0x208] sm:$0xff] %vm1101_vm2, %v1099_v60  ;;  %v1688_v31 = vld [vmem:[#allocation2 + $0x191] sm:$0xff] }
 0x1b4   : > { %v2093_v38 = vadd.f32 1.0, %v3422_v6  ;;  %3427 = vrcp.f32 %v2091_v4  ;;  %v1247_v51 = vmul.f32 %v3868_v34, %v4717_v1  ;;  %v1487_v56 = vmul.f32 %v3898_v15, %v4799_v12 }
 0x1b5   : > { %v3426_v19 = vpop.eup %3425  ;;  %v1859_v7 = vmul.f32 %v4020_v47, %v1687_v41  ;;  %v1792_v46 = vmul.f32 %v4008_v8, %v4862_v20  ;;  %v1890_v32 = vadd.f32 %v1858_v5, %v1822_v37  ;;  %v2092_v0 = vadd.f32 1.0, %v3424_v36 }
 0x1b6   : > { %v4899_v63 = vadd.f32 %v2230_v25, %v2229_v17  ;;  %v1553_v6 = vmul.f32 %v3932_v53, %v4799_v12  ;;  %v1345_v29 = vadd.f32 %v1313_v10, %v1245_v50  ;;  %v3038_v45 = vmul.f32 -1.442695, %v4887_v9 }
 0x1b7   : > { %v1824_v48 = vadd.f32 %v1792_v46, %v1756_v40  ;;  %v1891_v1 = vadd.f32 %v1859_v7, %v1823_v2  ;;  %v1929_v26 = vmul.f32 %v4686_v18, %v1890_v32  ;;  %v2094_v4 = vadd.f32 1.0, %v3426_v19 }
 0x1b8   : > { %3429 = vrcp.f32 %v2093_v38  ;;  %v1485_v35 = vmul.f32 %v3898_v15, %v4739_v11  ;;  %v4909_v30 = vld [vmem:[#allocation2 + $0x1a7] sm:$0xff]  ;;  %v1001_v21 = vadd.f32 1.0, %v3420_v14  ;;  %v4913_v12 = vmul.f32 %v3868_v34, %v4808_v52 }
 0x1b9   : > { %v1860_v62 = vmul.f32 %v4020_v47, %v1688_v31  ;;  %v4917_v55 = vadd.f32 %v4711_v44, %v1929_v26  ;;  %v1315_v60 = vmul.f32 %v3873_v58, %v4909_v30  ;;  %3431 = vrcp.f32 %v2092_v0 }
 0x1ba   : > { %v1314_v17 = vmul.f32 %v3873_v58, %v4808_v52  ;;  %v1383_v11 = vmul.f32 %v3877_v59, %v4905_v16  ;;  %v1381_v14 = vmul.f32 %v3877_v59, %v4909_v30  ;;  %v1930_v50 = vmul.f32 %v4686_v18, %v1891_v1 }
 0x1bb   : > { %v1892_v10 = vadd.f32 %v1860_v62, %v1824_v48  ;;  %3433 = vpow2.f32 %v3038_v45  ;;  %v1347_v5 = vadd.f32 %v1315_v60, %v1247_v51  ;;  %v4930_v36 = vmul.f32 %v3898_v15, %v4840_v43  ;;  %v4943_v51 = vld [vmem:[#allocation2 + $0x1a8] sm:$0xff] }
 0x1bc   : > { %3435 = vrcp.f32 %v2094_v4  ;;  %v4934_v40 = vmul.f32 %v3932_v53, %v4840_v43  ;;  %v1413_v52 = vadd.f32 %v1381_v14, %v1345_v29  ;;  %v4937_v37 = vmul.f32 %v3937_v24, %v1687_v41  ;;  %v4968_v45 = vld [vmem:[#allocation2 + $0x1af] sm:$0xff] }
 0x1bd   : > { %v4940_v2 = vmul.f32 %v3937_v24, %v1688_v31  ;;  %v3039_v25 = vmul.f32 -1.442695, %v4917_v55  ;;  %v1415_v38 = vadd.f32 %v1383_v11, %v1347_v5  ;;  %v1793_v7 = vmul.f32 %v4008_v8, %v1687_v41  ;;  %v4982_v60 = vld [vmem:[#allocation2 + $0x1cf] sm:$0xff] }
 0x1be   : > { %v3428_v19 = vpop.eup %3427  ;;  %v1246_v46 = vmul.f32 %v3868_v34, %v4788_v23  ;;  %v1517_v43 = vadd.f32 %v1485_v35, %v1413_v52  ;;  %3437 = vrcp.f32 %v1001_v21  ;;  %v1931_v32 = vmul.f32 %v4686_v18, %v1892_v10 }
 0x1bf   : > { %v4950_v0 = vadd.f32 %v4711_v44, %v1930_v50  ;;  %v1519_v29 = vadd.f32 %v1487_v56, %v1415_v38  ;;  %3439 = vpow2.f32 %v4823_v3  ;;  %v1555_v48 = vmul.f32 %v3932_v53, %v4943_v51  ;;  %v4966_v3 = vld [vmem:[#allocation2 + $0x1c8] sm:$0xff] }
 0x1c0   : > { %v1585_v1 = vadd.f32 %v1553_v6, %v1517_v43  ;;  %v1621_v41 = vmul.f32 %v3942_v57, %v4943_v51  ;;  %3441 = vpow2.f32 %v4833_v13  ;;  %v4959_v23 = vmul.f32 %v3428_v19, %v4714_v33 }
 0x1c1   : > { %v4962_v26 = vmul.f32 %v4008_v8, %v1688_v31  ;;  %v1486_v56 = vmul.f32 %v3898_v15, %v4828_v27  ;;  %3443 = vpow2.f32 %v3039_v25  ;;  %v1346_v4 = vadd.f32 %v1314_v17, %v1246_v46 }
 0x1c2   : > { %v3430_v6 = vpop.eup %3429  ;;  %v1725_v35 = vmul.f32 %v3937_v24, %v4815_v49  ;;  %v1587_v13 = vadd.f32 %v1555_v48, %v1519_v29  ;;  %v1653_v21 = vadd.f32 %v1621_v41, %v1585_v1  ;;  %v1726_v33 = vmul.f32 %v3937_v24, %v4862_v20  ;;  %v5008_v29 = vld [vmem:[#allocation2 + $0x1a9] sm:$0xff] }
 0x1c3   : > { %v4975_v31 = vadd.f32 %v4711_v44, %v1931_v32  ;;  %v3040_v27 = vmul.f32 -1.442695, %v4950_v0  ;;  %v4980_v62 = vmul.f32 %v3868_v34, %v4905_v16  ;;  %v3432_v17 = vpop.eup %3431  ;;  %v1623_v49 = vmul.f32 %v3942_v57, %v4966_v3  ;;  %v5006_v32 = vld [vmem:[#allocation2 + $0x1b0] sm:$0xff] }
 0x1c4   : > { %v1757_v11 = vadd.f32 %v1725_v35, %v1653_v21  ;;  %v1316_v14 = vmul.f32 %v3873_v58, %v4968_v45  ;;  %v1382_v20 = vmul.f32 %v3877_v59, %v4968_v45  ;;  %v4991_v50 = vmul.f32 %v3430_v6, %v4760_v28 }
 0x1c5   : > { %v3434_v10 = vpop.eup %3433  ;;  %v2232_v5 = vsel %vm1101_vm2, %v4959_v23, 0.0  ;;  %v4997_v52 = vmul.f32 %v3873_v58, %v4905_v16  ;;  %v5001_v25 = vmul.f32 %v3898_v15, %v4966_v3  ;;  %v1655_v19 = vadd.f32 %v1623_v49, %v1587_v13  ;;  %v5015_v13 = vld [vmem:[#allocation2 + $0x1d0] sm:$0xff] }
 0x1c6   : > { %v3436_v38 = vpop.eup %3435  ;;  %v1384_v46 = vmul.f32 %v3877_v59, %v4982_v60  ;;  %v1348_v43 = vadd.f32 %v1316_v14, %v4913_v12  ;;  %v1414_v28 = vadd.f32 %v1382_v20, %v1346_v4  ;;  %v5011_v48 = vmul.f32 %v3432_v17, %v4772_v42 }
 0x1c7   : > { %3445 = vpow2.f32 %v3040_v27  ;;  %v3041_v16 = vmul.f32 -1.442695, %v4975_v31  ;;  %v1825_v1 = vadd.f32 %v1793_v7, %v1757_v11  ;;  %v2233_v6 = vadd.f32 %v2232_v5, %v4899_v63  ;;  %v5035_v5 = vld [vmem:[#allocation2 + $0x1c9] sm:$0xff] }
 0x1c8   : > { %v3438_v41 = vpop.eup %3437  ;;  %v2095_v35 = vadd.f32 1.0, %v3434_v10  ;;  %v1416_v21 = vadd.f32 %v1384_v46, %v1348_v43  ;;  %v1518_v12 = vadd.f32 %v1486_v56, %v1414_v28  ;;  %v5018_v49 = vmul.f32 %v3436_v38, %v4780_v54 }
 0x1c9   : > { %v3440_v4 = vpop.eup %3439  ;;  %v1249_v42 = vmul.f32 %v3868_v34, %v4909_v30  ;;  %v1556_v27 = vmul.f32 %v3932_v53, %v5006_v32  ;;  %v1861_v7 = vmul.f32 %v4020_v47, %v5008_v29  ;;  %v1622_v56 = vmul.f32 %v3942_v57, %v5006_v32 }
 0x1ca   : > { %5597 = vst [vmem:[#allocation7_spill] sm:$0xff] %v5018_v49  ;;  %v3442_v17 = vpop.eup %3441  ;;  %v1520_v63 = vadd.f32 %v4930_v36, %v1416_v21  ;;  %v1586_v11 = vadd.f32 %v4934_v40, %v1518_v12  ;;  %v1759_v54 = vadd.f32 %v4937_v37, %v1655_v19  ;;  %v2234_v30 = vsel %vm1101_vm2, %v5011_v48, 0.0  ;;  %v5037_v40 = vld [vmem:[#allocation2 + $0x1b1] sm:$0xff] }
 0x1cb   : > { %v3444_v14 = vpop.eup %3443  ;;  %3447 = vpow2.f32 %v3041_v16  ;;  %v1624_v20 = vmul.f32 %v3942_v57, %v5015_v13  ;;  %v1893_v10 = vadd.f32 %v1861_v7, %v1825_v1  ;;  %v1795_v46 = vmul.f32 %v4008_v8, %v5008_v29  ;;  %v5043_v21 = vld [vmem:[#allocation2 + $0x1d1] sm:$0xff] }
 0x1cc   : > { %3449 = vrcp.f32 %v2095_v35  ;;  %v1588_v36 = vadd.f32 %v1556_v27, %v1520_v63  ;;  %v1654_v38 = vadd.f32 %v1622_v56, %v1586_v11  ;;  %v1097_v19 = vmul.f32 %v3438_v41, %v4674_v61 }
 0x1cd   : > { %v1932_v37 = vmul.f32 %v4686_v18, %v1893_v10  ;;  %v1004_v43 = vadd.f32 1.0, %v3440_v4  ;;  %v1002_v28 = vadd.f32 1.0, %v3442_v17  ;;  %v2096_v16 = vadd.f32 1.0, %v3444_v14  ;;  %v1215_v10 = vld [vmem:[#allocation2 + $0x207] sm:$0xff] }
 0x1ce   : > { %v1656_v1 = vadd.f32 %v1624_v20, %v1588_v36  ;;  %v1758_v35 = vadd.f32 %v1726_v33, %v1654_v38  ;;  %v1827_v12 = vadd.f32 %v1795_v46, %v1759_v54  ;;  %v1863_v27 = vmul.f32 %v4020_v47, %v5035_v5  ;;  %1176 = vst.msk [vmem:[#allocation2 + $0x1e8] sm:$0xff] %vm1101_vm2, %v1097_v19 }
 0x1cf   : > { %v1796_v7 = vmul.f32 %v4008_v8, %v5037_v40  ;;  %v5050_v63 = vadd.f32 %v4711_v44, %v1932_v37  ;;  %3451 = vrcp.f32 %v1004_v43  ;;  %v1862_v33 = vmul.f32 %v4020_v47, %v5037_v40 }
 0x1d0   : > { %v1760_v61 = vadd.f32 %v4940_v2, %v1656_v1  ;;  %v1826_v41 = vadd.f32 %v4962_v26, %v1758_v35  ;;  %3453 = vrcp.f32 %v1002_v28  ;;  %v2235_v17 = vadd.f32 %v2234_v30, %v2233_v6 }
 0x1d1   : > { %v3446_v4 = vpop.eup %3445  ;;  %v1557_v11 = vmul.f32 %v3932_v53, %v4966_v3  ;;  %v1864_v56 = vmul.f32 %v4020_v47, %v5043_v21  ;;  %v3042_v54 = vmul.f32 -1.442695, %v5050_v63  ;;  %3455 = vrcp.f32 %v2096_v16 }
 0x1d2   : > { %v1828_v14 = vadd.f32 %v1796_v7, %v1760_v61  ;;  %v1894_v20 = vadd.f32 %v1862_v33, %v1826_v41  ;;  %v1895_v2 = vadd.f32 %v1863_v27, %v1827_v12  ;;  %v2236_v26 = vsel %vm1101_vm2, %v4991_v50, 0.0 }
 0x1d3   : > { %v2238_v36 = vsel %vm1101_vm2, %v5018_v49, 0.0  ;;  %v1489_v6 = vmul.f32 %v3898_v15, %v4943_v51  ;;  %3457 = vpow2.f32 %v3042_v54  ;;  %v2097_v3 = vadd.f32 1.0, %v3446_v4  ;;  %v5599_v49 = vld [vmem:[#allocation15_spill] sm:$0xff] }
 0x1d4   : > { %v1349_v30 = vadd.f32 %v4997_v52, %v1249_v42  ;;  %v1896_v38 = vadd.f32 %v1864_v56, %v1828_v14  ;;  %v1933_v46 = vmul.f32 %v4686_v18, %v1894_v20  ;;  %v2237_v19 = vadd.f32 %v2236_v26, %v2235_v17 }
 0x1d5   : > { %v3448_v37 = vpop.eup %3447  ;;  %v5072_v43 = vmul.f32 %v3868_v34, %v4982_v60  ;;  %v5076_v28 = vmul.f32 %v3873_v58, %v4982_v60  ;;  %v1321_v16 = vmul.f32 %v3873_v58, %v1215_v10  ;;  %v5081_v1 = vmul.f32 %v3898_v15, %v5015_v13  ;;  %v1213_v42 = vld [vmem:[#allocation2 + $0x1e7] sm:$0xff] }
 0x1d6   : > { %v3450_v51 = vpop.eup %3449  ;;  %v5085_v52 = vmul.f32 %v3932_v53, %v5015_v13  ;;  %v1934_v35 = vmul.f32 %v4686_v18, %v1895_v2  ;;  %v1935_v12 = vmul.f32 %v4686_v18, %v1896_v38  ;;  %v5091_v60 = vmul.f32 %v3937_v24, %v5035_v5  ;;  %v1453_v41 = vld [vmem:[#allocation2 + $0x1e8] sm:$0xff] }
 0x1d7   : > { %v1253_v27 = vmul.f32 %v3868_v34, %v1213_v42  ;;  %v1319_v7 = vmul.f32 %v3873_v58, %v1213_v42  ;;  %v1385_v61 = vmul.f32 %v3877_v59, %v1213_v42  ;;  %3459 = vrcp.f32 %v2097_v3  ;;  %v1455_v38 = vld [vmem:[#allocation2 + $0x208] sm:$0xff]  ;;  %v5598_v42 = vld [vmem:[#allocation11_spill] sm:$0xff] }
 0x1d8   : > { %v1250_v13 = vmul.f32 %v3868_v34, %v4968_v45  ;;  %v1387_v33 = vmul.f32 %v3877_v59, %v1215_v10  ;;  %v5100_v4 = vadd.f32 %v4711_v44, %v1933_v46  ;;  %v5103_v56 = vmul.f32 %v3450_v51, %v4887_v9 }
 0x1d9   : > { %v3452_v17 = vpop.eup %3451  ;;  %v1351_v54 = vadd.f32 %v1319_v7, %v4980_v62  ;;  %v1353_v14 = vadd.f32 %v1321_v16, %v1253_v27  ;;  %v1417_v20 = vadd.f32 %v1385_v61, %v1349_v30  ;;  %v1493_v26 = vmul.f32 %v3898_v15, %v1453_v41 }
 0x1da   : > { %v3454_v2 = vpop.eup %3453  ;;  %v1100_v3 = vmul.f32 %v3452_v17, %v4791_v22  ;;  %v5109_v45 = vadd.f32 %v4711_v44, %v1934_v35  ;;  %v5112_v10 = vadd.f32 %v4711_v44, %v1935_v12  ;;  %v2098_v30 = vadd.f32 1.0, %v3448_v37 }
 0x1db   : > { %v1419_v46 = vadd.f32 %v1387_v33, %v1351_v54  ;;  %v1421_v9 = vadd.f32 %v5598_v42, %v1353_v14  ;;  %v1521_v51 = vadd.f32 %v1489_v6, %v1417_v20  ;;  %v1098_v62 = vmul.f32 %v3454_v2, %v5599_v49  ;;  %v3456_v16 = vpop.eup %3455 }
 0x1dc   : > { %v1729_v27 = vmul.f32 %v3937_v24, %v5008_v29  ;;  %v1559_v22 = vmul.f32 %v3932_v53, %v1453_v41  ;;  %1179 = vst.msk [vmem:[#allocation2 + $0x210] sm:$0xff] %vm1101_vm2, %v1100_v3  ;;  %v3043_v35 = vmul.f32 -1.442695, %v5100_v4  ;;  %v1625_v6 = vmul.f32 %v3942_v57, %v1453_v41 }
 0x1dd   : > { %v3458_v12 = vpop.eup %3457  ;;  %v1523_v7 = vadd.f32 %v5001_v25, %v1419_v46  ;;  %v1525_v61 = vadd.f32 %v1493_v26, %v1421_v9  ;;  %v1589_v33 = vadd.f32 %v1557_v11, %v1521_v51  ;;  %1177 = vst.msk [vmem:[#allocation2 + $0x1f0] sm:$0xff] %vm1101_vm2, %v1098_v62  ;;  %v2240_v49 = vsel %vm1101_vm2, %v5103_v56, 0.0 }
 0x1de   : > { %v1561_v29 = vmul.f32 %v3932_v53, %v1455_v38  ;;  %v1627_v37 = vmul.f32 %v3942_v57, %v1455_v38  ;;  %v3044_v17 = vmul.f32 -1.442695, %v5109_v45  ;;  %v3045_v20 = vmul.f32 -1.442695, %v5112_v10 }
 0x1df   : > { %v1591_v54 = vadd.f32 %v1559_v22, %v1523_v7  ;;  %v1657_v14 = vadd.f32 %v1625_v6, %v1589_v33  ;;  %v2239_v25 = vadd.f32 %v2238_v36, %v2237_v19  ;;  %v5131_v11 = vmul.f32 %v3456_v16, %v4917_v55 }
 0x1e0   : > { %v2099_v41 = vadd.f32 1.0, %v3458_v12  ;;  %v1593_v2 = vadd.f32 %v1561_v29, %v1525_v61  ;;  %3461 = vpow2.f32 %v3043_v35  ;;  %v5135_v26 = vmul.f32 %v3937_v24, %v5043_v21 }
 0x1e1   : > { %3463 = vrcp.f32 %v2098_v30  ;;  %v1797_v3 = vmul.f32 %v4008_v8, %v5035_v5  ;;  %v1761_v38 = vadd.f32 %v1729_v27, %v1657_v14  ;;  %v5139_v46 = vpop.eup %3459  ;;  %v5143_v36 = vmul.f32 %v4008_v8, %v5043_v21  ;;  %v5600_v27 = vld [vmem:[#allocation22_spill] sm:$0xff] }
 0x1e2   : > { %v1490_v55 = vmul.f32 %v3898_v15, %v5006_v32  ;;  %v1659_v19 = vadd.f32 %v1627_v37, %v1591_v54  ;;  %3465 = vpow2.f32 %v3044_v17  ;;  %v1350_v42 = vadd.f32 %v5076_v28, %v1250_v13 }
 0x1e3   : > { %v1730_v9 = vmul.f32 %v3937_v24, %v5037_v40  ;;  %v1216_v51 = vld [vmem:[#allocation2 + $0x20f] sm:$0xff]  ;;  %3467 = vpow2.f32 %v3045_v20  ;;  %v5150_v5 = vadd.f32 %v2240_v49, %v2239_v25  ;;  %v1661_v22 = vadd.f32 %v5600_v27, %v1593_v2  ;;  %v5601_v25 = vld [vmem:[#allocation14_spill] sm:$0xff] }
 0x1e4   : > { %v1456_v62 = vld [vmem:[#allocation2 + $0x210] sm:$0xff]  ;;  %3469 = vrcp.f32 %v2099_v41  ;;  %v1322_v16 = vmul.f32 %v3873_v58, %v1216_v51  ;;  %v5156_v32 = vsel %vm1101_vm2, %v5131_v11, 0.0  ;;  %v1829_v7 = vadd.f32 %v1797_v3, %v1761_v38 }
 0x1e5   : > { %v1214_v21 = vld [vmem:[#allocation2 + $0x1ef] sm:$0xff]  ;;  %v1388_v61 = vmul.f32 %v3877_v59, %v1216_v51  ;;  %v1562_v33 = vmul.f32 %v3932_v53, %v1456_v62  ;;  %v1628_v6 = vmul.f32 %v3942_v57, %v1456_v62  ;;  %v1763_v49 = vadd.f32 %v5091_v60, %v1659_v19 }
 0x1e6   : > { %v1693_v30 = vld [vmem:[#allocation2 + $0x1e9] sm:$0xff]  ;;  %v1254_v13 = vmul.f32 %v3868_v34, %v1214_v21  ;;  %v1320_v40 = vmul.f32 %v3873_v58, %v1214_v21  ;;  %v1386_v35 = vmul.f32 %v3877_v59, %v1214_v21  ;;  %v1694_v3 = vld [vmem:[#allocation2 + $0x1f1] sm:$0xff] }
 0x1e7   : > { %v1695_v28 = vld [vmem:[#allocation2 + $0x209] sm:$0xff]  ;;  %v1733_v34 = vmul.f32 %v3937_v24, %v1693_v30  ;;  %v1799_v14 = vmul.f32 %v4008_v8, %v1693_v30  ;;  %v1865_v59 = vmul.f32 %v4020_v47, %v1693_v30 }
 0x1e8   : > { %v1454_v12 = vld [vmem:[#allocation2 + $0x1f0] sm:$0xff]  ;;  %v1352_v29 = vadd.f32 %v1320_v40, %v5072_v43  ;;  %v1354_v37 = vadd.f32 %v1322_v16, %v1254_v13  ;;  %v1418_v17 = vadd.f32 %v1386_v35, %v1350_v42  ;;  %v1867_v58 = vmul.f32 %v4020_v47, %v1695_v28 }
 0x1e9   : > { %v1494_v54 = vmul.f32 %v3898_v15, %v1454_v12  ;;  %v1765_v60 = vadd.f32 %v1733_v34, %v1661_v22  ;;  %v1560_v43 = vmul.f32 %v3932_v53, %v1454_v12  ;;  %v1897_v19 = vadd.f32 %v1865_v59, %v1829_v7 }
 0x1ea   : > { %v1420_v20 = vadd.f32 %v1388_v61, %v1352_v29  ;;  %v1422_v41 = vadd.f32 %v5601_v25, %v1354_v37  ;;  %v1522_v2 = vadd.f32 %v1490_v55, %v1418_v17  ;;  %v3462_v38 = vpop.eup %3461  ;;  %v1801_v42 = vmul.f32 %v4008_v8, %v1695_v28  ;;  %v1696_v61 = vld [vmem:[#allocation2 + $0x211] sm:$0xff]  ;;  %v5602_v37 = vld [vmem:[#allocation24_spill] sm:$0xff] }
 0x1eb   : > { %v1831_v51 = vadd.f32 %v1799_v14, %v1763_v49  ;;  %v3464_v62 = vpop.eup %3463  ;;  %v1626_v30 = vmul.f32 %v3942_v57, %v1454_v12  ;;  %v1800_v55 = vmul.f32 %v4008_v8, %v1694_v3  ;;  %v1936_v40 = vmul.f32 %v4686_v18, %v1897_v19 }
 0x1ec   : > { %v1524_v15 = vadd.f32 %v5081_v1, %v1420_v20  ;;  %v1526_v16 = vadd.f32 %v1494_v54, %v1422_v41  ;;  %v1590_v21 = vadd.f32 %v5085_v52, %v1522_v2  ;;  %v3466_v27 = vpop.eup %3465  ;;  %v1833_v13 = vadd.f32 %v1801_v42, %v1765_v60  ;;  %v5604_v42 = vld [vmem:[#allocation25_spill] sm:$0xff] }
 0x1ed   : > { %v1899_v22 = vadd.f32 %v1867_v58, %v1831_v51  ;;  %v3468_v53 = vpop.eup %3467  ;;  %v2100_v49 = vadd.f32 1.0, %v3462_v38  ;;  %v1866_v1 = vmul.f32 %v4020_v47, %v1694_v3  ;;  %v5183_v12 = vadd.f32 %v4711_v44, %v1936_v40  ;;  %v5603_v58 = vld [vmem:[#allocation23_spill] sm:$0xff] }
 0x1ee   : > { %v1592_v35 = vadd.f32 %v1560_v43, %v1524_v15  ;;  %v1658_v7 = vadd.f32 %v1626_v30, %v1590_v21  ;;  %v1594_v28 = vadd.f32 %v1562_v33, %v1526_v16  ;;  %v3470_v29 = vpop.eup %3469  ;;  %v1901_v52 = vadd.f32 %v5602_v37, %v1833_v13 }
 0x1ef   : > { %v1938_v57 = vmul.f32 %v4686_v18, %v1899_v22  ;;  %v1734_v14 = vmul.f32 %v3937_v24, %v1694_v3  ;;  %v1802_v33 = vmul.f32 %v4008_v8, %v1696_v61  ;;  %v3046_v25 = vmul.f32 -1.442695, %v5183_v12 }
 0x1f0   : > { %v1762_v17 = vadd.f32 %v1730_v9, %v1658_v7  ;;  %v1660_v34 = vadd.f32 %v1628_v6, %v1592_v35  ;;  %v1662_v54 = vadd.f32 %v5603_v58, %v1594_v28  ;;  %v1940_v59 = vmul.f32 %v4686_v18, %v1901_v52 }
 0x1f1   : > { %v5190_v20 = vadd.f32 %v4711_v44, %v1938_v57  ;;  %3471 = vrcp.f32 %v2100_v49  ;;  %v2101_v8 = vadd.f32 1.0, %v3466_v27  ;;  %v1868_v38 = vmul.f32 %v4020_v47, %v1696_v61 }
 0x1f2   : > { %v1764_v41 = vadd.f32 %v5135_v26, %v1660_v34  ;;  %v1766_v2 = vadd.f32 %v1734_v14, %v1662_v54  ;;  %v1830_v60 = vadd.f32 %v5143_v36, %v1762_v17  ;;  %v5196_v9 = vadd.f32 %v4711_v44, %v1940_v59 }
 0x1f3   : > { %3473 = vpow2.f32 %v3046_v25  ;;  %v3048_v24 = vmul.f32 -1.442695, %v5190_v20  ;;  %v5203_v26 = vmul.f32 %v5139_v46, %v4950_v0  ;;  %v2243_v16 = vadd.f32 %v5156_v32, %v5150_v5 }
 0x1f4   : > { %v1832_v6 = vadd.f32 %v1800_v55, %v1764_v41  ;;  %v1834_v3 = vadd.f32 %v1802_v33, %v1766_v2  ;;  %v1898_v43 = vadd.f32 %v1866_v1, %v1830_v60  ;;  %v3050_v19 = vmul.f32 -1.442695, %v5196_v9 }
 0x1f5   : > { %3475 = vpow2.f32 %v3048_v24  ;;  %v2102_v27 = vadd.f32 1.0, %v3468_v53  ;;  %v2244_v0 = vsel %vm1101_vm2, %v5203_v26, 0.0  ;;  %v5217_v22 = vmul.f32 %v3464_v62, %v4975_v31 }
 0x1f6   : > { %v1900_v36 = vadd.f32 %v1868_v38, %v1832_v6  ;;  %v1902_v51 = vadd.f32 %v5604_v42, %v1834_v3  ;;  %v1937_v15 = vmul.f32 %v4686_v18, %v1898_v43  ;;  %3477 = vrcp.f32 %v2101_v8 }
 0x1f7   : > { %3479 = vpow2.f32 %v3050_v19  ;;  %v2245_v5 = vadd.f32 %v2244_v0, %v2243_v16  ;;  %v5220_v35 = vmul.f32 %v3470_v29, %v5050_v63  ;;  %v2246_v28 = vsel %vm1101_vm2, %v5217_v22, 0.0 }
 0x1f8   : > { %v1939_v21 = vmul.f32 %v4686_v18, %v1900_v36  ;;  %v1941_v47 = vmul.f32 %v4686_v18, %v1902_v51  ;;  %v1976_v30 = vadd.f32 %v4711_v44, %v1937_v15 }
 0x1f9   : > { %v2248_v62 = vsel %vm1101_vm2, %v5220_v35, 0.0 }
 0x1fa   : > { %v1978_v46 = vadd.f32 %v4711_v44, %v1939_v21  ;;  %v1980_v55 = vadd.f32 %v4711_v44, %v1941_v47  ;;  %v3047_v13 = vmul.f32 -1.442695, %v1976_v30  ;;  %v2247_v44 = vadd.f32 %v2246_v28, %v2245_v5 }
 0x1fb   : > { %v3472_v32 = vpop.eup %3471 }
 0x1fc   : > { %3481 = vpow2.f32 %v3047_v13  ;;  %v3049_v18 = vmul.f32 -1.442695, %v1978_v46  ;;  %v3051_v40 = vmul.f32 -1.442695, %v1980_v55  ;;  %v5225_v31 = vmul.f32 %v3472_v32, %v5100_v4 }
 0x1fd   : > { %v3474_v53 = vpop.eup %3473  ;;  %3483 = vrcp.f32 %v2102_v27  ;;  %v2249_v1 = vadd.f32 %v2248_v62, %v2247_v44  ;;  %v2358_v44 = vld [vmem:[%s5502_s9] sm:$0x3] }
 0x1fe   : > { %3485 = vpow2.f32 %v3049_v18  ;;  %v2103_v7 = vadd.f32 1.0, %v3474_v53  ;;  %v2250_v37 = vsel %vm1101_vm2, %v5225_v31, 0.0  ;;  %3159 = vmatpush3.msk.msra.mxu1 %vm2364_vm4, %v2358_v44  ;;  %v5616_v44 = vld [vmem:[#allocation9_spill] sm:$0xff] }
 0x1ff   : > { %3487 = vpow2.f32 %v3051_v40  ;;  %v3476_v61 = vpop.eup %3475  ;;  %v2251_v4 = vadd.f32 %v2250_v37, %v2249_v1 }
 0x200   : > { %3489 = vrcp.f32 %v2103_v7  ;;  %v3478_v49 = vpop.eup %3477  ;;  %v2105_v29 = vadd.f32 1.0, %v3476_v61  ;;  %v2277_v61 = vld [vmem:[%s5501_s8] sm:$0x1] }
 0x201   : > { %v3480_v63 = vpop.eup %3479  ;;  %v5232_v17 = vmul.f32 %v3478_v49, %v5109_v45 }
 0x202   : > { %v2107_v57 = vadd.f32 1.0, %v3480_v63  ;;  %3491 = vrcp.f32 %v2105_v29 }
 0x203   : > { %v2252_v2 = vsel %vm1101_vm2, %v5232_v17, 0.0 }
 0x204   : > { %v2253_v45 = vadd.f32 %v2252_v2, %v2251_v4 }
 0x206   : > { %v3482_v52 = vpop.eup %3481 }
 0x207   : > { %v3484_v34 = vpop.eup %3483  ;;  %v2104_v58 = vadd.f32 1.0, %v3482_v52 }
 0x208   : > { %v3486_v54 = vpop.eup %3485  ;;  %v5235_v41 = vmul.f32 %v3484_v34, %v5112_v10  ;;  %v3228_v34 = vld [vmem:[%s5504_s11] sm:$0xff]  }
 0x209   : > { %v3488_v14 = vpop.eup %3487  ;;  %v2106_v33 = vadd.f32 1.0, %v3486_v54  ;;  %3493 = vrcp.f32 %v2104_v58  ;;  %3163 = vmatprep.subr.bf16.mxu1 %v3228_v34  ;;  %v2359_v58 = vld [vmem:[%s5503_s10] sm:$0x1] }
 0x20a   : > { %v3490_v59 = vpop.eup %3489  ;;  %v2108_v25 = vadd.f32 1.0, %v3488_v14  ;;  %3495 = vrcp.f32 %v2107_v57  ;;  %v2254_v24 = vsel %vm1101_vm2, %v5235_v41, 0.0 }
 0x20b   : > { %3497 = vrcp.f32 %v2106_v33  ;;  %v5240_v60 = vmul.f32 %v3490_v59, %v5183_v12  ;;  %v2255_v8 = vadd.f32 %v2254_v24, %v2253_v45  ;;  %v5605_v45 = vld [vmem:[#allocation3_spill] sm:$0xff] }
 0x20c   : > { %3499 = vrcp.f32 %v2108_v25  ;;  %v3492_v3 = vpop.eup %3491 }
 0x20d   : > { %v2256_v6 = vsel %vm1101_vm2, %v5240_v60, 0.0  ;;  %v5249_v36 = vmul.f32 %v3492_v3, %v5190_v20  ;;  %v5607_v3 = vld [vmem:[#allocation16_spill] sm:$0xff] }
 0x20e   : > { %v2257_v10 = vadd.f32 %v2256_v6, %v2255_v8  ;;  %v5606_v8 = vld [vmem:[#allocation4_spill] sm:$0xff] }
 0x20f   : > { %v2260_v47 = vsel %vm1101_vm2, %v5249_v36, 0.0 }
 0x213   : > { %v3494_v38 = vpop.eup %3493 }
 0x214   : > { %v3496_v43 = vpop.eup %3495  ;;  %v5246_v19 = vmul.f32 %v3494_v38, %v1976_v30 }
 0x215   : > { %v3498_v42 = vpop.eup %3497  ;;  %v5256_v21 = vmul.f32 %v3496_v43, %v5196_v9 }
 0x216   : > { %v5251_v12 = vmul.f32 %v3498_v42, %v1978_v46  ;;  %v2258_v51 = vsel %vm1101_vm2, %v5246_v19, 0.0  ;;  %v3500_v15 = vpop.eup %3499  ;;  %v5609_v42 = vld [vmem:[#allocation20_spill] sm:$0xff] }
 0x217   : > { %v2259_v16 = vadd.f32 %v2258_v51, %v2257_v10  ;;  %v5260_v30 = vmul.f32 %v3500_v15, %v1980_v55  ;;  %v2264_v46 = vsel %vm1101_vm2, %v5256_v21, 0.0  ;;  %v5608_v10 = vld [vmem:[#allocation17_spill] sm:$0xff]  ;;  %v5610_v15 = vld [vmem:[#allocation18_spill] sm:$0xff] }
 0x218   : > { %v2262_v20 = vsel %vm1101_vm2, %v5251_v12, 0.0 }
 0x219   : > { %v2261_v27 = vadd.f32 %v2260_v47, %v2259_v16  ;;  %v2266_v5 = vsel %vm1101_vm2, %v5260_v30, 0.0  ;;  %v5611_v47 = vld [vmem:[#allocation10_spill] sm:$0xff] }
 0x21b   : > { %v2263_v0 = vadd.f32 %v2262_v20, %v2261_v27 }
 0x21d   : > { %v2265_v13 = vadd.f32 %v2264_v46, %v2263_v0 }
 0x21f   : > { %v2267_v32 = vadd.f32 %v2266_v5, %v2265_v13  ;;  %v5612_v13 = vld [vmem:[#allocation12_spill] sm:$0xff] }
 0x221   : > { %v2268_v9 = vrot.slane %v2267_v32, 4 }
 0x223   : > { %v2269_v18 = vadd.f32 %v2268_v9, %v2267_v32  ;;  %v5613_v32 = vld [vmem:[#allocation21_spill] sm:$0xff] }
 0x225   : > { %v2270_v40 = vrot.slane %v2269_v18, 2 }
 0x227   : > { %v2271_v53 = vadd.f32 %v2270_v40, %v2269_v18  ;;  %v5614_v18 = vld [vmem:[#allocation5_spill] sm:$0xff] }
 0x229   : > { %v2272_v7 = vrot.slane %v2271_v53, 1 }
 0x22b   : > { %v2273_v28 = vadd.f32 %v2272_v7, %v2271_v53  ;;  %v5615_v53 = vld [vmem:[#allocation6_spill] sm:$0xff] }
 0x22d   : > { %v2274_v55 = vmul.f32 0.00390625, %v2273_v28 }
 0x22f   : > { %3156 = vmatmul.mubr.msk.f32.vlgmr.msra.gmra.mrb[32].mxu0 %vm1101_vm2, %v2274_v55 }
 0x302   : > { %v2347_v62 = vpop.f32.mrb[32].mxu0 }
 0x303   : > { %v2348_v49 = vadd.f32 %v2347_v62, %v2277_v61  ;;  %v3157_v63 = vpop.f32.mrb[33].mxu0  ;;  %v5617_v62 = vld [vmem:[#allocation19_spill] sm:$0xff] }
 0x304   : > { %v5618_v63 = vld [vmem:[#allocation13_spill] sm:$0xff] }
 0x305   : > { %v3053_v29 = vmul.f32 -1.442695, %v2348_v49 }
 0x307   : > { %3501 = vpow2.f32 %v3053_v29 }
 0x311   : > { %v3502_v1 = vpop.eup %3501 }
 0x312   : > { %v2354_v37 = vadd.f32 1.0, %v3502_v1 }
 0x314   : > { %3503 = vrcp.f32 %v2354_v37 }
 0x31e   : > { %v3504_v52 = vpop.eup %3503 }
 0x31f   : > { %v2357_v57 = vmul.f32 %v3504_v52, %v2348_v49 }
 0x321   : > { %3161 = vmatmul.mubr.msk.f32.vlgmr.msra.gmra.mrb[0].mxu1 %vm2360_vm5, %v2357_v57 }
 0x322   : > { %3164 = vmatpush3.bf16.msra.mxu1 %v3228_v34 }
 0x3f4   : > { %v2434_v4 = vpop.f32.mrb[0].mxu1 }
 0x3f5   : > { %v2435_v54 = vadd.f32 %v2434_v4, %v2359_v58  ;;  %v3162_v14 = vpop.f32.mrb[1].mxu1  ;;  %v5619_v4 = vld [vmem:[#allocation7_spill] sm:$0xff] }
 0x3f7   : > { %v3056_v33 = vmul.f32 -1.442695, %v2435_v54 }
 0x3f9   : > { %3505 = vpow2.f32 %v3056_v33 }
 0x403   : > { %v3506_v59 = vpop.eup %3505 }
 0x404   : > { %v2441_v25 = vadd.f32 1.0, %v3506_v59 }
 0x406   : > { %3507 = vrcp.f32 %v2441_v25 }
 0x410   : > { %v3508_v2 = vpop.eup %3507 }
 0x411   : > { %v2447_v24 = vrot.slane %v3508_v2, %v5605_v45 }
 0x413   : > { %v2448_v6 = vmul.f32 %v2447_v24, %v5606_v8  ;;  %v2449_v38 = vmul.f32 %v2447_v24, %v5607_v3  ;;  %v2450_v43 = vmul.f32 %v2447_v24, %v5608_v10  ;;  %v2451_v51 = vmul.f32 %v2447_v24, %v5609_v42 }
 0x414   : > { %v2452_v16 = vmul.f32 %v2447_v24, %v5610_v15  ;;  %v2453_v27 = vmul.f32 %v2447_v24, %v5611_v47  ;;  %v2454_v5 = vmul.f32 %v2447_v24, %v5612_v13  ;;  %v2455_v9 = vmul.f32 %v2447_v24, %v5613_v32 }
 0x415   : > { %v2480_v20 = vpack.c.bf16 %v2449_v38, %v2448_v6  ;;  %v2481_v0 = vpack.c.bf16 %v2451_v51, %v2450_v43  ;;  %v2456_v40 = vmul.f32 %v2447_v24, %v5614_v18  ;;  %v2457_v7 = vmul.f32 %v2447_v24, %v5615_v53 }
 0x416   : > { %v2482_v46 = vpack.c.bf16 %v2453_v27, %v2452_v16  ;;  %v2483_v28 = vpack.c.bf16 %v2455_v9, %v2454_v5  ;;  %v2458_v61 = vmul.f32 %v2447_v24, %v5616_v44  ;;  %v2459_v49 = vmul.f32 %v2447_v24, %v5617_v62 }
 0x417   : > { %3165 = vmatprep.mubr.msk.bf16.mxu1 %vm1101_vm2, %v2480_v20  ;;  %v2484_v55 = vpack.c.bf16 %v2457_v7, %v2456_v40  ;;  %v2460_v29 = vmul.f32 %v2447_v24, %v5618_v63  ;;  %v2461_v1 = vmul.f32 %v2447_v24, %v4867_v39  ;;  %v2462_v57 = vmul.f32 %v2447_v24, %v4959_v23 }
 0x418   : > { %3166 = vmatmul.mubr.msk.bf16.vlgmr.msra.gmra.mrb[4].mxu1 %vm1101_vm2, %v2481_v0  ;;  %v2485_v37 = vpack.c.bf16 %v2459_v49, %v2458_v61  ;;  %v2463_v34 = vmul.f32 %v2447_v24, %v5011_v48  ;;  %v2464_v58 = vmul.f32 %v2447_v24, %v4991_v50  ;;  %v2465_v54 = vmul.f32 %v2447_v24, %v5619_v4  ;;  %v3516_v49 = vld [vmem:[%s3632_s21 + $0x10] sm:$0xff]  }
 0x419   : > { %3169 = vmatprep.mubr.msk.bf16.mxu1 %vm1101_vm2, %v2482_v46  ;;  %v2486_v52 = vpack.c.bf16 %v2461_v1, %v2460_v29  ;;  %v2466_v39 = vmul.f32 %v2447_v24, %v5103_v56  ;;  %v2467_v59 = vmul.f32 %v2447_v24, %v5131_v11  ;;  %v2468_v25 = vmul.f32 %v2447_v24, %v5203_v26 }
 0x41a   : > { %v2487_v14 = vpack.c.bf16 %v2463_v34, %v2462_v57  ;;  %v2488_v33 = vpack.c.bf16 %v2465_v54, %v2464_v58  ;;  %v2469_v23 = vmul.f32 %v2447_v24, %v5217_v22  ;;  %v2470_v50 = vmul.f32 %v2447_v24, %v5220_v35 }
 0x41b   : > { %v2489_v2 = vpack.c.bf16 %v2467_v59, %v2466_v39  ;;  %v2471_v45 = vmul.f32 %v2447_v24, %v5225_v31  ;;  %v2472_v8 = vmul.f32 %v2447_v24, %v5232_v17  ;;  %v2473_v56 = vmul.f32 %v2447_v24, %v5235_v41 }
 0x41c   : > { %v2490_v48 = vpack.c.bf16 %v2469_v23, %v2468_v25  ;;  %v2474_v26 = vmul.f32 %v2447_v24, %v5240_v60  ;;  %v2475_v22 = vmul.f32 %v2447_v24, %v5246_v19  ;;  %v2476_v35 = vmul.f32 %v2447_v24, %v5249_v36  ;;  %v5333_v60 = vld [vmem:[%s5505_s12] ss:$0 sm:$0xff] }
 0x41d   : > { %v2491_v6 = vpack.c.bf16 %v2471_v45, %v2470_v50  ;;  %v2492_v11 = vpack.c.bf16 %v2473_v56, %v2472_v8  ;;  %v2477_v31 = vmul.f32 %v2447_v24, %v5251_v12  ;;  %v2478_v41 = vmul.f32 %v2447_v24, %v5256_v21  ;;  %v5338_v36 = vld [vmem:[%s5506_s13] ss:$0 sm:$0xff]  ;;  %v3513_v21 = vld [vmem:[%s3632_s21 + $0x8] sm:$0xff]  }
 0x41e   : > { %v2493_v3 = vpack.c.bf16 %v2475_v22, %v2474_v26  ;;  %v2479_v38 = vmul.f32 %v2447_v24, %v5260_v30  ;;  %v2793_v43 = vunpack.c.l.bf16 %v3513_v21  ;;  %v3514_v24 = vld [vmem:[%s3632_s21] sm:$0xff]   ;;  %v2794_v27 = vunpack.c.h.bf16 %v3513_v21 }
 0x41f   : > { %v2494_v17 = vpack.c.bf16 %v2477_v31, %v2476_v35  ;;  %v2791_v42 = vunpack.c.l.bf16 %v3514_v24  ;;  %v2792_v0 = vunpack.c.h.bf16 %v3514_v24  ;;  %v2795_v63 = vunpack.c.l.bf16 %v3516_v49  ;;  %v3518_v56 = vld [vmem:[%s3632_s21 + $0x20] sm:$0xff]  }
 0x420   : > { %3170 = vmatmul.mubr.msk.bf16.gmra.mrb[8].mxu1 %vm1101_vm2, %v2483_v28  ;;  %v2495_v10 = vpack.c.bf16 %v2479_v38, %v2478_v41  ;;  %v2796_v4 = vunpack.c.h.bf16 %v3516_v49  ;;  %v2800_v41 = vunpack.c.h.bf16 %v3518_v56  ;;  %v3521_v49 = vld [vmem:[%s3632_s21 + $0x48] sm:$0xff]  }
 0x421   : > { %3173 = vmatprep.mubr.msk.bf16.mxu1 %vm1101_vm2, %v2484_v55  ;;  %v3515_v55 = vld [vmem:[%s3632_s21 + $0x18] sm:$0xff]  }
 0x422   : > { %v2797_v44 = vunpack.c.l.bf16 %v3515_v55 }
 0x428   : > { %3174 = vmatmul.mubr.msk.bf16.gmra.mrb[12].mxu1 %vm1101_vm2, %v2485_v37 }
 0x429   : > { %3177 = vmatprep.mubr.msk.bf16.mxu1 %vm1101_vm2, %v2486_v52  ;;  %v2798_v52 = vunpack.c.h.bf16 %v3515_v55 }
 0x430   : > { %3178 = vmatmul.mubr.msk.bf16.gmra.mrb[16].mxu1 %vm1101_vm2, %v2487_v14 }
 0x431   : > { %3181 = vmatprep.mubr.msk.bf16.mxu1 %vm1101_vm2, %v2488_v33 }
 0x438   : > { %3182 = vmatmul.mubr.msk.bf16.gmra.mrb[20].mxu1 %vm1101_vm2, %v2489_v2 }
 0x439   : > { %3185 = vmatprep.mubr.msk.bf16.mxu1 %vm1101_vm2, %v2490_v48  ;;  %v3517_v48 = vld [vmem:[%s3632_s21 + $0x28] sm:$0xff]  }
 0x43a   : > { %v2801_v50 = vunpack.c.l.bf16 %v3517_v48  ;;  %v2802_v35 = vunpack.c.h.bf16 %v3517_v48 }
 0x440   : > { %3186 = vmatmul.mubr.msk.bf16.gmra.mrb[24].mxu1 %vm1101_vm2, %v2491_v6  ;;  %v2799_v6 = vunpack.c.l.bf16 %v3518_v56  ;;  %v3523_v56 = vld [vmem:[%s3632_s21 + $0x58] sm:$0xff]  }
 0x441   : > { %3189 = vmatprep.mubr.msk.bf16.mxu1 %vm1101_vm2, %v2492_v11 }
 0x448   : > { %3190 = vmatmul.mubr.msk.bf16.gmra.mrb[28].mxu1 %vm1101_vm2, %v2493_v3 }
 0x449   : > { %3193 = vmatprep.mubr.msk.bf16.mxu1 %vm1101_vm2, %v2494_v17 }
 0x450   : > { %3194 = vmatmul.mubr.msk.bf16.gmra.mrb[32].mxu1 %vm1101_vm2, %v2495_v10 }
 0x4eb   : > { %v3167_v19 = vpop.f32.mrb[4].mxu1 }
 0x4ec   : > { %v2722_v12 = vmul.f32 %v3167_v19, %v5333_v60  ;;  %v2586_v30 = vpop.f32.mrb[5].mxu1 }
 0x4ed   : > { %v2720_v51 = vmul.f32 %v5333_v60, %v2586_v30  ;;  %v3168_v15 = vpop.f32.mrb[6].mxu1 }
 0x4ee   : > { %v2761_v16 = vadd.f32 %v5338_v36, %v2722_v12  ;;  %v2723_v47 = vmul.f32 %v3168_v15, %v5333_v60  ;;  %v2589_v20 = vpop.f32.mrb[7].mxu1 }
 0x4ef   : > { %v2759_v46 = vadd.f32 %v5338_v36, %v2720_v51  ;;  %v2721_v13 = vmul.f32 %v5333_v60, %v2589_v20 }
 0x4f0   : > { %v2825_v5 = vadd.f32 %v2793_v43, %v2761_v16  ;;  %v2762_v32 = vadd.f32 %v5338_v36, %v2723_v47  ;;  %v3520_v47 = vld [vmem:[%s3632_s21 + $0x30] sm:$0xff]  }
 0x4f1   : > { %v2823_v9 = vadd.f32 %v2791_v42, %v2759_v46  ;;  %v2760_v18 = vadd.f32 %v5338_v36, %v2721_v13  ;;  %v3519_v42 = vld [vmem:[%s3632_s21 + $0x38] sm:$0xff]  }
 0x4f2   : > { %2857 = vst.msk [vmem:[%s5350_s17 + $0x10] sm:$0xff] %vm585_vm1, %v2825_v5  ;;  %v2826_v40 = vadd.f32 %v2794_v27, %v2762_v32  ;;  %v2805_v51 = vunpack.c.l.bf16 %v3519_v42  ;;  %v2803_v27 = vunpack.c.l.bf16 %v3520_v47  ;;  %v2806_v13 = vunpack.c.h.bf16 %v3519_v42 }
 0x4f3   : > { %2855 = vst.msk [vmem:[%s5350_s17] sm:$0xff] %vm585_vm1, %v2823_v9  ;;  %v2824_v53 = vadd.f32 %v2792_v0, %v2760_v18  ;;  %v3171_v7 = vpop.f32.mrb[8].mxu1  ;;  %v2804_v18 = vunpack.c.h.bf16 %v3520_v47  ;;  %v3525_v47 = vld [vmem:[%s3632_s21 + $0x68] sm:$0xff]  }
 0x4f4   : > { %2858 = vst.msk [vmem:[%s5350_s17 + $0x18] sm:$0xff] %vm585_vm1, %v2826_v40  ;;  %v2726_v28 = vmul.f32 %v3171_v7, %v5333_v60  ;;  %v2602_v61 = vpop.f32.mrb[9].mxu1 }
 0x4f5   : > { %2856 = vst.msk [vmem:[%s5350_s17 + $0x8] sm:$0xff] %vm585_vm1, %v2824_v53  ;;  %v2724_v62 = vmul.f32 %v5333_v60, %v2602_v61  ;;  %v3172_v29 = vpop.f32.mrb[10].mxu1 }
 0x4f6   : > { %v2765_v1 = vadd.f32 %v5338_v36, %v2726_v28  ;;  %v2727_v37 = vmul.f32 %v3172_v29, %v5333_v60  ;;  %v2605_v57 = vpop.f32.mrb[11].mxu1 }
 0x4f7   : > { %v2763_v34 = vadd.f32 %v5338_v36, %v2724_v62  ;;  %v2725_v58 = vmul.f32 %v5333_v60, %v2605_v57 }
 0x4f8   : > { %v2829_v54 = vadd.f32 %v2797_v44, %v2765_v1  ;;  %v2766_v14 = vadd.f32 %v5338_v36, %v2727_v37  ;;  %v3522_v37 = vld [vmem:[%s3632_s21 + $0x40] sm:$0xff]  }
 0x4f9   : > { %v2827_v33 = vadd.f32 %v2795_v63, %v2763_v34  ;;  %v2764_v39 = vadd.f32 %v5338_v36, %v2725_v58  ;;  %v2809_v63 = vunpack.c.l.bf16 %v3521_v49 }
 0x4fa   : > { %2861 = vst.msk [vmem:[%s5350_s17 + $0x30] sm:$0xff] %vm585_vm1, %v2829_v54  ;;  %v2830_v59 = vadd.f32 %v2798_v52, %v2766_v14  ;;  %v2807_v52 = vunpack.c.l.bf16 %v3522_v37 }
 0x4fb   : > { %2859 = vst.msk [vmem:[%s5350_s17 + $0x20] sm:$0xff] %vm585_vm1, %v2827_v33  ;;  %v2828_v25 = vadd.f32 %v2796_v4, %v2764_v39  ;;  %v3175_v23 = vpop.f32.mrb[12].mxu1  ;;  %v2810_v4 = vunpack.c.h.bf16 %v3521_v49  ;;  %v2808_v39 = vunpack.c.h.bf16 %v3522_v37  ;;  %v3527_v37 = vld [vmem:[%s3632_s21 + $0x78] sm:$0xff]  }
 0x4fc   : > { %2862 = vst.msk [vmem:[%s5350_s17 + $0x38] sm:$0xff] %vm585_vm1, %v2830_v59  ;;  %v2730_v2 = vmul.f32 %v3175_v23, %v5333_v60  ;;  %v2618_v45 = vpop.f32.mrb[13].mxu1 }
 0x4fd   : > { %2860 = vst.msk [vmem:[%s5350_s17 + $0x28] sm:$0xff] %vm585_vm1, %v2828_v25  ;;  %v2728_v8 = vmul.f32 %v5333_v60, %v2618_v45  ;;  %v3176_v11 = vpop.f32.mrb[14].mxu1 }
 0x4fe   : > { %v2769_v26 = vadd.f32 %v5338_v36, %v2730_v2  ;;  %v2731_v22 = vmul.f32 %v3176_v11, %v5333_v60  ;;  %v2621_v31 = vpop.f32.mrb[15].mxu1 }
 0x4ff   : > { %v2767_v3 = vadd.f32 %v5338_v36, %v2728_v8  ;;  %v2729_v17 = vmul.f32 %v5333_v60, %v2621_v31 }
 0x500   : > { %v2833_v38 = vadd.f32 %v2801_v50, %v2769_v26  ;;  %v2770_v10 = vadd.f32 %v5338_v36, %v2731_v22  ;;  %v3524_v22 = vld [vmem:[%s3632_s21 + $0x50] sm:$0xff]  }
 0x501   : > { %v2831_v19 = vadd.f32 %v2799_v6, %v2767_v3  ;;  %v2768_v12 = vadd.f32 %v5338_v36, %v2729_v17  ;;  %v2813_v6 = vunpack.c.l.bf16 %v3523_v56 }
 0x502   : > { %2865 = vst.msk [vmem:[%s5350_s17 + $0x50] sm:$0xff] %vm585_vm1, %v2833_v38  ;;  %v2834_v21 = vadd.f32 %v2802_v35, %v2770_v10  ;;  %v2811_v35 = vunpack.c.l.bf16 %v3524_v22 }
 0x503   : > { %2863 = vst.msk [vmem:[%s5350_s17 + $0x40] sm:$0xff] %vm585_vm1, %v2831_v19  ;;  %v2832_v43 = vadd.f32 %v2800_v41, %v2768_v12  ;;  %v3179_v30 = vpop.f32.mrb[16].mxu1  ;;  %v2814_v41 = vunpack.c.h.bf16 %v3523_v56  ;;  %v2812_v12 = vunpack.c.h.bf16 %v3524_v22 }
 0x504   : > { %2866 = vst.msk [vmem:[%s5350_s17 + $0x58] sm:$0xff] %vm585_vm1, %v2834_v21  ;;  %v2734_v24 = vmul.f32 %v3179_v30, %v5333_v60  ;;  %v2634_v15 = vpop.f32.mrb[17].mxu1 }
 0x505   : > { %2864 = vst.msk [vmem:[%s5350_s17 + $0x48] sm:$0xff] %vm585_vm1, %v2832_v43  ;;  %v2732_v16 = vmul.f32 %v5333_v60, %v2634_v15  ;;  %v3180_v20 = vpop.f32.mrb[18].mxu1 }
 0x506   : > { %v2773_v0 = vadd.f32 %v5338_v36, %v2734_v24  ;;  %v2735_v46 = vmul.f32 %v3180_v20, %v5333_v60  ;;  %v2637_v5 = vpop.f32.mrb[19].mxu1 }
 0x507   : > { %v2771_v32 = vadd.f32 %v5338_v36, %v2732_v16  ;;  %v2733_v9 = vmul.f32 %v5333_v60, %v2637_v5 }
 0x508   : > { %v2837_v40 = vadd.f32 %v2805_v51, %v2773_v0  ;;  %v2774_v53 = vadd.f32 %v5338_v36, %v2735_v46  ;;  %v3526_v46 = vld [vmem:[%s3632_s21 + $0x60] sm:$0xff]  }
 0x509   : > { %v2835_v7 = vadd.f32 %v2803_v27, %v2771_v32  ;;  %v2772_v28 = vadd.f32 %v5338_v36, %v2733_v9  ;;  %v2817_v27 = vunpack.c.l.bf16 %v3525_v47 }
 0x50a   : > { %2869 = vst.msk [vmem:[%s5350_s17 + $0x70] sm:$0xff] %vm585_vm1, %v2837_v40  ;;  %v2838_v55 = vadd.f32 %v2806_v13, %v2774_v53  ;;  %v2815_v13 = vunpack.c.l.bf16 %v3526_v46 }
 0x50b   : > { %2867 = vst.msk [vmem:[%s5350_s17 + $0x60] sm:$0xff] %vm585_vm1, %v2835_v7  ;;  %v2836_v44 = vadd.f32 %v2804_v18, %v2772_v28  ;;  %v3183_v61 = vpop.f32.mrb[20].mxu1  ;;  %v2818_v18 = vunpack.c.h.bf16 %v3525_v47  ;;  %v2816_v28 = vunpack.c.h.bf16 %v3526_v46 }
 0x50c   : > { %2870 = vst.msk [vmem:[%s5350_s17 + $0x78] sm:$0xff] %vm585_vm1, %v2838_v55  ;;  %v2738_v62 = vmul.f32 %v3183_v61, %v5333_v60  ;;  %v2650_v29 = vpop.f32.mrb[21].mxu1 }
 0x50d   : > { %2868 = vst.msk [vmem:[%s5350_s17 + $0x68] sm:$0xff] %vm585_vm1, %v2836_v44  ;;  %v2736_v1 = vmul.f32 %v5333_v60, %v2650_v29  ;;  %v3184_v57 = vpop.f32.mrb[22].mxu1 }
 0x50e   : > { %v2777_v34 = vadd.f32 %v5338_v36, %v2738_v62  ;;  %v2739_v58 = vmul.f32 %v3184_v57, %v5333_v60  ;;  %v2653_v54 = vpop.f32.mrb[23].mxu1 }
 0x50f   : > { %v2775_v14 = vadd.f32 %v5338_v36, %v2736_v1  ;;  %v2737_v33 = vmul.f32 %v5333_v60, %v2653_v54 }
 0x510   : > { %v2841_v59 = vadd.f32 %v2809_v63, %v2777_v34  ;;  %v2778_v25 = vadd.f32 %v5338_v36, %v2739_v58  ;;  %v3528_v58 = vld [vmem:[%s3632_s21 + $0x70] sm:$0xff]  }
 0x511   : > { %v2839_v23 = vadd.f32 %v2807_v52, %v2775_v14  ;;  %v2776_v2 = vadd.f32 %v5338_v36, %v2737_v33  ;;  %v2821_v52 = vunpack.c.l.bf16 %v3527_v37 }
 0x512   : > { %2873 = vst.msk [vmem:[%s5350_s17 + $0x90] sm:$0xff] %vm585_vm1, %v2841_v59  ;;  %v2842_v48 = vadd.f32 %v2810_v4, %v2778_v25  ;;  %v2819_v4 = vunpack.c.l.bf16 %v3528_v58 }
 0x513   : > { %2871 = vst.msk [vmem:[%s5350_s17 + $0x80] sm:$0xff] %vm585_vm1, %v2839_v23  ;;  %v2840_v50 = vadd.f32 %v2808_v39, %v2776_v2  ;;  %v3187_v45 = vpop.f32.mrb[24].mxu1  ;;  %v2822_v39 = vunpack.c.h.bf16 %v3527_v37  ;;  %v2820_v2 = vunpack.c.h.bf16 %v3528_v58 }
 0x514   : > { %2874 = vst.msk [vmem:[%s5350_s17 + $0x98] sm:$0xff] %vm585_vm1, %v2842_v48  ;;  %v2742_v8 = vmul.f32 %v3187_v45, %v5333_v60  ;;  %v2666_v11 = vpop.f32.mrb[25].mxu1 }
 0x515   : > { %2872 = vst.msk [vmem:[%s5350_s17 + $0x88] sm:$0xff] %vm585_vm1, %v2840_v50  ;;  %v2740_v26 = vmul.f32 %v5333_v60, %v2666_v11  ;;  %v3188_v31 = vpop.f32.mrb[26].mxu1 }
 0x516   : > { %v2781_v3 = vadd.f32 %v5338_v36, %v2742_v8  ;;  %v2743_v17 = vmul.f32 %v3188_v31, %v5333_v60  ;;  %v2669_v38 = vpop.f32.mrb[27].mxu1 }
 0x517   : > { %v2779_v10 = vadd.f32 %v5338_v36, %v2740_v26  ;;  %v2741_v19 = vmul.f32 %v5333_v60, %v2669_v38 }
 0x518   : > { %v2845_v21 = vadd.f32 %v2813_v6, %v2781_v3  ;;  %v2782_v43 = vadd.f32 %v5338_v36, %v2743_v17 }
 0x519   : > { %v2843_v30 = vadd.f32 %v2811_v35, %v2779_v10  ;;  %v2780_v24 = vadd.f32 %v5338_v36, %v2741_v19 }
 0x51a   : > { %2877 = vst.msk [vmem:[%s5350_s17 + $0xb0] sm:$0xff] %vm585_vm1, %v2845_v21  ;;  %v2846_v42 = vadd.f32 %v2814_v41, %v2782_v43 }
 0x51b   : > { %2875 = vst.msk [vmem:[%s5350_s17 + $0xa0] sm:$0xff] %vm585_vm1, %v2843_v30  ;;  %v2844_v51 = vadd.f32 %v2812_v12, %v2780_v24  ;;  %v3191_v15 = vpop.f32.mrb[28].mxu1 }
 0x51c   : > { %2878 = vst.msk [vmem:[%s5350_s17 + $0xb8] sm:$0xff] %vm585_vm1, %v2846_v42  ;;  %v2746_v16 = vmul.f32 %v3191_v15, %v5333_v60  ;;  %v2682_v20 = vpop.f32.mrb[29].mxu1 }
 0x51d   : > { %2876 = vst.msk [vmem:[%s5350_s17 + $0xa8] sm:$0xff] %vm585_vm1, %v2844_v51  ;;  %v2744_v0 = vmul.f32 %v5333_v60, %v2682_v20  ;;  %v3192_v5 = vpop.f32.mrb[30].mxu1 }
 0x51e   : > { %v2785_v32 = vadd.f32 %v5338_v36, %v2746_v16  ;;  %v2747_v9 = vmul.f32 %v3192_v5, %v5333_v60  ;;  %v2685_v40 = vpop.f32.mrb[31].mxu1 }
 0x51f   : > { %v2783_v53 = vadd.f32 %v5338_v36, %v2744_v0  ;;  %v2745_v7 = vmul.f32 %v5333_v60, %v2685_v40 }
 0x520   : > { %v2849_v55 = vadd.f32 %v2817_v27, %v2785_v32  ;;  %v2786_v44 = vadd.f32 %v5338_v36, %v2747_v9 }
 0x521   : > { %v2847_v61 = vadd.f32 %v2815_v13, %v2783_v53  ;;  %v2784_v62 = vadd.f32 %v5338_v36, %v2745_v7 }
 0x522   : > { %2881 = vst.msk [vmem:[%s5350_s17 + $0xd0] sm:$0xff] %vm585_vm1, %v2849_v55  ;;  %v2850_v49 = vadd.f32 %v2818_v18, %v2786_v44 }
 0x523   : > { %2879 = vst.msk [vmem:[%s5350_s17 + $0xc0] sm:$0xff] %vm585_vm1, %v2847_v61  ;;  %v2848_v63 = vadd.f32 %v2816_v28, %v2784_v62  ;;  %v3195_v29 = vpop.f32.mrb[32].mxu1 }
 0x524   : > { %2882 = vst.msk [vmem:[%s5350_s17 + $0xd8] sm:$0xff] %vm585_vm1, %v2850_v49  ;;  %v2750_v1 = vmul.f32 %v3195_v29, %v5333_v60  ;;  %v2698_v57 = vpop.f32.mrb[33].mxu1 }
 0x525   : > { %2880 = vst.msk [vmem:[%s5350_s17 + $0xc8] sm:$0xff] %vm585_vm1, %v2848_v63  ;;  %v2748_v34 = vmul.f32 %v5333_v60, %v2698_v57  ;;  %v3196_v54 = vpop.f32.mrb[34].mxu1 }
 0x526   : > { %v2789_v14 = vadd.f32 %v5338_v36, %v2750_v1  ;;  %v2751_v33 = vmul.f32 %v3196_v54, %v5333_v60  ;;  %v2701_v59 = vpop.f32.mrb[35].mxu1 }
 0x527   : > { %v2787_v25 = vadd.f32 %v5338_v36, %v2748_v34  ;;  %v2749_v23 = vmul.f32 %v5333_v60, %v2701_v59 }
 0x528   : > { %v2853_v48 = vadd.f32 %v2821_v52, %v2789_v14  ;;  %v2790_v50 = vadd.f32 %v5338_v36, %v2751_v33 }
 0x529   : > { %v2851_v45 = vadd.f32 %v2819_v4, %v2787_v25  ;;  %v2788_v8 = vadd.f32 %v5338_v36, %v2749_v23 }
 0x52a   : > { %2885 = vst.msk [vmem:[%s5350_s17 + $0xf0] sm:$0xff] %vm585_vm1, %v2853_v48  ;;  %v2854_v56 = vadd.f32 %v2822_v39, %v2790_v50 }
 0x52b   : > { %2883 = vst.msk [vmem:[%s5350_s17 + $0xe0] sm:$0xff] %vm585_vm1, %v2851_v45  ;;  %v2852_v6 = vadd.f32 %v2820_v2, %v2788_v8 }
 0x52c   : > { %2886 = vst.msk [vmem:[%s5350_s17 + $0xf8] sm:$0xff] %vm585_vm1, %v2854_v56 }
 0x52d   : > { %2884 = vst.msk [vmem:[%s5350_s17 + $0xe8] sm:$0xff] %vm585_vm1, %v2852_v6 }
 0x52e PF: > { %s24_s29 = sadd.s32 1, %s3535_s29  }
 0x52f   : > { %p21_p4 = scmp.ge.s32.totalorder %s24_s29, 4  }
 0x531   :  { %23 = sbr.rel (!%p21_p4) target bundleno = 1 (0x1), region = 108 }

</bundles_post_ra>
